<compile_context>
chip_gen: v5e
topology: v5e:2x2
jax: 0.10.0
libtpu: 0.0.40
codegen_flags: <defaults>
</compile_context>

<pallas_src>
import functools
import numpy as np
import jax
import jax.numpy as jnp
from jax.experimental import pallas as pl
from jax.experimental.pallas import tpu as pltpu

EPS = 1e-5  # PyTorch LayerNorm default eps


# ----------------------------- VMEM budgeting --------------------------------

def _tpu_vmem_capacity_bytes():
    try:
        info = pltpu.get_tpu_info()
        cap = int(getattr(info, "vmem_capacity_bytes", 0))
        if cap > 0:
            return cap
    except Exception:
        pass
    return 64 * 1024 * 1024          # conservative (v7x per-TensorCore VMEM)


_VMEM_CAP = _tpu_vmem_capacity_bytes()
_VMEM_LIMIT = min(int(_VMEM_CAP * 0.7), 96 * 1024 * 1024)
_VMEM_ACT_BUDGET = _VMEM_LIMIT // 2   # budget for the activation working set


def _mlp_chunk(Hd, max_chunk=512):
    """Hidden-dim chunk for the fused MLP (divides Hd, <= max_chunk)."""
    if Hd <= max_chunk:
        return Hd
    for c in range(max_chunk, 0, -128):
        if c > 0 and Hd % c == 0:
            return c
    for c in range(max_chunk, 0, -1):
        if Hd % c == 0:
            return c
    return Hd


def _choose_row_block(M, min_grid=2):
    cands = [bm for bm in (4096, 2048, 1024, 512, 256, 128, 64, 32, 16)
             if M % bm == 0]
    if not cands:
        return M
    pref = [bm for bm in cands if M // bm >= min_grid]
    return max(pref) if pref else max(cands)


def _choose_window_block(Bw, nW, N, C, chunk, min_grid=2):
    """Largest multiple of nW dividing Bw whose rows fit the VMEM budget,
    preferring a grid of >= min_grid steps (keeps both v7x TCs busy)."""
    assert Bw % nW == 0
    # rough f32 per-row working set (xn, qkv 3C, y, yn, proj, mlp acc, hidden
    # chunk, per-head score rows) + bf16 double-buffered I/O blocks
    bytes_per_row = 4 * (8 * C + chunk + 4 * N) + 2 * 2 * 3 * C
    max_rows = max(nW * N, _VMEM_ACT_BUDGET // max(bytes_per_row, 1))
    cands = [m for m in range(nW, Bw + 1, nW)
             if Bw % m == 0 and m * N <= max_rows]
    if not cands:
        return nW
    pref = [m for m in cands if Bw // m >= min_grid]
    return max(pref) if pref else max(cands)


# ----------------------------- in-kernel helpers -----------------------------

def _layernorm(x, gamma, beta):
    mu = jnp.mean(x, axis=-1, keepdims=True)
    var = jnp.mean((x - mu) ** 2, axis=-1, keepdims=True)
    return (x - mu) * jax.lax.rsqrt(var + EPS) * gamma + beta


# ----------------------------- Pallas kernels --------------------------------

def ln_linear_kernel(x_ref, g_ref, b_ref, w_ref, bias_ref, o_ref):
    """LayerNorm(last dim) + Linear. bf16 I/O / weights, f32 math."""
    xn = _layernorm(x_ref[...].astype(jnp.float32), g_ref[...], b_ref[...])
    y = jnp.dot(xn.astype(jnp.bfloat16), w_ref[...],
                preferred_element_type=jnp.float32) + bias_ref[...]
    o_ref[...] = y.astype(o_ref.dtype)


def _make_attn_mlp_kernel(num_heads, masked, mlp_chunk):
    """Fused: res + Proj(MHSA(LN1(x)))  then  y + W2(GELU(W1(LN2(y))))."""

    def compute(res, x, g1, be1, wqkv, wproj, bproj, biasmask,
                g2, be2, w1, b1, w2, b2):
        WB, N, C = x.shape
        rows = WB * N
        nh = num_heads
        hd = C // nh

        x2d = x.reshape(rows, C).astype(jnp.float32)
        res2d = x2d if res is None else res.reshape(rows, C).astype(jnp.float32)

        # --- attention (fused QKV matmul, scale pre-folded into Q columns) ---
        xn = _layernorm(x2d, g1, be1)
        qkv = jnp.dot(xn.astype(jnp.bfloat16), wqkv,
                      preferred_element_type=jnp.float32).reshape(WB, N, 3 * C)

        proj = None
        for h in range(nh):                       # static, small head loop
            lo, hi = h * hd, (h + 1) * hd
            q = qkv[:, :, lo:hi]
            k = qkv[:, :, C + lo:C + hi]
            v = qkv[:, :, 2 * C + lo:2 * C + hi]
            s = jnp.einsum("wqd,wkd->wqk",
                           q.astype(jnp.bfloat16), k.astype(jnp.bfloat16),
                           preferred_element_type=jnp.float32)     # (WB, N, N)
            if masked:
                # biasmask = rel-pos bias + attention mask, (nh, nW, N, N);
                # windows are batch-major so each nW-group shares the mask.
                nW = biasmask.shape[1]
                s = (s.reshape(WB // nW, nW, N, N)
                     + biasmask[h][None]).reshape(WB, N, N)
            else:
                s = s + biasmask[h][None]                          # bias only
            s = s - jnp.max(s, axis=-1, keepdims=True)
            p = jnp.exp(s)
            p = p * pl.reciprocal(jnp.sum(p, axis=-1, keepdims=True),
                                  approx=True)
            o_h = jnp.einsum("wqk,wkd->wqd",
                             p.astype(jnp.bfloat16), v.astype(jnp.bfloat16),
                             preferred_element_type=jnp.float32)   # (WB, N, hd)
            # project this head immediately with the matching Wproj row slice:
            # no lane-axis head concat, only a cheap sublane weight slice.
            contrib = jnp.dot(o_h.reshape(rows, hd).astype(jnp.bfloat16),
                              wproj[lo:hi, :],
                              preferred_element_type=jnp.float32)
            proj = contrib if proj is None else proj + contrib

        y = res2d + proj + bproj                                   # residual 1

        # --- fused residual MLP, chunked over the hidden dim ---
        yn = _layernorm(y, g2, be2).astype(jnp.bfloat16)
        Hd = w1.shape[1]
        mlp = None
        for c0 in range(0, Hd, mlp_chunk):
            c1 = c0 + mlp_chunk
            hmid = jnp.dot(yn, w1[:, c0:c1],
                           preferred_element_type=jnp.float32) + b1[:, c0:c1]
            # TODO(synk): nn.GELU() default is exact erf-GELU; Mosaic has no
            # erf lowering, so the tanh approximation is used (small drift).
            hmid = jax.nn.gelu(hmid, approximate=True)
            part = jnp.dot(hmid.astype(jnp.bfloat16), w2[c0:c1, :],
                           preferred_element_type=jnp.float32)
            mlp = part if mlp is None else mlp + part
        out = y + mlp + b2                                          # residual 2
        return out.reshape(WB, N, C).astype(jnp.bfloat16)

    if masked:
        def kernel(res_ref, x_ref, g1_ref, be1_ref, wqkv_ref, wproj_ref,
                   bproj_ref, bm_ref, g2_ref, be2_ref, w1_ref, b1_ref,
                   w2_ref, b2_ref, o_ref):
            o_ref[...] = compute(res_ref[...], x_ref[...], g1_ref[...],
                                 be1_ref[...], wqkv_ref[...], wproj_ref[...],
                                 bproj_ref[...], bm_ref[...], g2_ref[...],
                                 be2_ref[...], w1_ref[...], b1_ref[...],
                                 w2_ref[...], b2_ref[...])
    else:
        # un-shifted half: x is its own residual -> single activation input.
        def kernel(x_ref, g1_ref, be1_ref, wqkv_ref, wproj_ref, bproj_ref,
                   bias_ref, g2_ref, be2_ref, w1_ref, b1_ref, w2_ref,
                   b2_ref, o_ref):
            o_ref[...] = compute(None, x_ref[...], g1_ref[...], be1_ref[...],
                                 wqkv_ref[...], wproj_ref[...], bproj_ref[...],
                                 bias_ref[...], g2_ref[...], be2_ref[...],
                                 w1_ref[...], b1_ref[...], w2_ref[...],
                                 b2_ref[...])
    return kernel


# ----------------------------- kernel wrappers --------------------------------

def ln_linear(x2d, gamma, beta, w, bias):
    M, K = x2d.shape
    O = w.shape[1]
    bm = _choose_row_block(M)
    return pl.pallas_call(
        ln_linear_kernel,
        out_shape=jax.ShapeDtypeStruct((M, O), jnp.bfloat16),
        grid=(M // bm,),
        in_specs=[pl.BlockSpec((bm, K), lambda i: (i, 0)),
                  pl.BlockSpec((1, K), lambda i: (0, 0)),
                  pl.BlockSpec((1, K), lambda i: (0, 0)),
                  pl.BlockSpec((K, O), lambda i: (0, 0)),
                  pl.BlockSpec((1, O), lambda i: (0, 0))],
        out_specs=pl.BlockSpec((bm, O), lambda i: (i, 0)),
        compiler_params=pltpu.CompilerParams(
            dimension_semantics=("parallel",),
            vmem_limit_bytes=_VMEM_LIMIT),
    )(x2d, gamma, beta, w, bias)


def attn_mlp(x, norm_p, attn_p, mlp_p, num_heads, nW, res=None, biasmask=None):
    """Fused (residual + window-attention) + (residual MLP) over window batches.

    x (and res): (Bw, N, C) bf16 window batches. biasmask: (nh, nW, N, N) f32
    (rel-pos bias + attention mask) for the shifted variant; None -> unshifted,
    x is its own residual.
    """
    Bw, N, C = x.shape
    Hd = mlp_p["w1"].shape[1]
    nh = num_heads
    masked = biasmask is not None
    if masked:
        assert res is not None
        # window ordering assumption: all nW windows of a sample contiguous
        assert Bw % nW == 0

    chunk = _mlp_chunk(Hd)
    WB = _choose_window_block(Bw, nW, N, C, chunk)
    assert WB % nW == 0 and Bw % WB == 0
    grid = (Bw // WB,)

    wb_map = lambda i: (i, 0, 0)
    c2 = lambda i: (0, 0)
    c3 = lambda i: (0, 0, 0)
    c4 = lambda i: (0, 0, 0, 0)

    # NOTE: grid-invariant operands (weights/LN params/bias) use constant index
    # maps; single-buffering them (pl.Buffered(1)) would reclaim a little more
    # VMEM but is left off for portability across jax versions.
    in_specs, args = [], []
    if masked:
        in_specs.append(pl.BlockSpec((WB, N, C), wb_map)); args.append(res)
    in_specs.append(pl.BlockSpec((WB, N, C), wb_map)); args.append(x)
    in_specs += [pl.BlockSpec((1, C), c2),            # LN1 gamma
                 pl.BlockSpec((1, C), c2),            # LN1 beta
                 pl.BlockSpec((C, 3 * C), c2),        # fused QKV weight (bf16)
                 pl.BlockSpec((C, C), c2),            # proj weight (bf16)
                 pl.BlockSpec((1, C), c2)]            # proj bias
    args += [norm_p["gamma"], norm_p["beta"], attn_p["wqkv"],
             attn_p["wproj"], attn_p["bproj"]]
    if masked:
        in_specs.append(pl.BlockSpec((nh, nW, N, N), c4)); args.append(biasmask)
    else:
        in_specs.append(pl.BlockSpec((nh, N, N), c3)); args.append(attn_p["bias"])
    in_specs += [pl.BlockSpec((1, C), c2),            # LN2 gamma
                 pl.BlockSpec((1, C), c2),            # LN2 beta
                 pl.BlockSpec((C, Hd), c2),           # MLP W1 (bf16)
                 pl.BlockSpec((1, Hd), c2),           # MLP b1
                 pl.BlockSpec((Hd, C), c2),           # MLP W2 (bf16)
                 pl.BlockSpec((1, C), c2)]            # MLP b2
    args += [mlp_p["gamma"], mlp_p["beta"], mlp_p["w1"], mlp_p["b1"],
             mlp_p["w2"], mlp_p["b2"]]

    kernel = _make_attn_mlp_kernel(nh, masked, chunk)
    return pl.pallas_call(
        kernel,
        out_shape=jax.ShapeDtypeStruct((Bw, N, C), jnp.bfloat16),
        grid=grid,
        in_specs=in_specs,
        out_specs=pl.BlockSpec((WB, N, C), wb_map),
        compiler_params=pltpu.CompilerParams(
            dimension_semantics=("parallel",),
            vmem_limit_bytes=_VMEM_LIMIT),
    )(*args)


# ----------------------------- glue (reshapes, masks) ------------------------

def window_partition(x, ws):
    # Exact replication of the PyTorch code (including its raw .view reinterpret
    # which treats the channel axis as the second axis).
    B, D, H, W, C = x.shape
    x = x.reshape(B, C, D // ws, ws, H // ws, ws, W // ws, ws)
    x = jnp.transpose(x, (0, 2, 4, 6, 3, 5, 7, 1))
    return x.reshape(-1, ws ** 3, C)


def window_reverse(wins, window_size, B, D, H, W):
    ws0, ws1, ws2 = window_size
    x = wins.reshape(B, D // ws0, H // ws1, W // ws2, ws0, ws1, ws2, -1)
    x = jnp.transpose(x, (0, 1, 4, 2, 5, 3, 6, 7))
    return x.reshape(B, D, H, W, -1)


def _np_window_partition(x, ws):
    B, D, H, W, C = x.shape
    x = x.reshape(B, C, D // ws, ws, H // ws, ws, W // ws, ws)
    x = np.transpose(x, (0, 2, 4, 6, 3, 5, 7, 1))
    return x.reshape(-1, ws ** 3, C)


def compute_mask(D, H, W, window_size):
    ws0, ws1, ws2 = window_size
    shift = ws0 // 2
    img_mask = np.zeros((1, D, H, W, 1), np.float32)
    cnt = 0
    for d in (slice(None, -ws0), slice(-ws0, -shift), slice(-shift, None)):
        for h in (slice(None, -ws1), slice(-ws1, -shift), slice(-shift, None)):
            for w in (slice(None, -ws2), slice(-ws2, -shift), slice(-shift, None)):
                img_mask[:, d, h, w, :] = cnt
                cnt += 1
    mw = _np_window_partition(img_mask, ws0)[..., 0]          # (nW, N)
    attn = mw[:, None, :] - mw[:, :, None]
    attn = np.where(attn != 0, np.float32(-100.0), np.float32(0.0))
    return jnp.asarray(attn)                                   # (nW, N, N)


def relative_position_index(window_size):
    ws0, ws1, ws2 = window_size
    coords = np.stack(np.meshgrid(np.arange(ws0), np.arange(ws1),
                                  np.arange(ws2), indexing="ij"))
    cf = coords.reshape(3, -1)
    rel = (cf[:, :, None] - cf[:, None, :]).transpose(1, 2, 0).astype(np.int64)
    rel[:, :, 0] += ws0 - 1
    rel[:, :, 1] += ws1 - 1
    rel[:, :, 2] += ws2 - 1
    rel[:, :, 0] *= (2 * ws1 - 1) * (2 * ws2 - 1)
    rel[:, :, 1] *= (2 * ws2 - 1)
    return rel.sum(-1)  # (N, N)


# ----------------------------- parameters ------------------------------------

def init_params(key, in_channels, hidden_dimension, downscaling_factor,
                num_heads, window_size, depth):
    ws0, ws1, ws2 = window_size
    C = hidden_dimension
    Kmerge = in_channels * downscaling_factor ** 3
    N = ws0 * ws1 * ws2
    nbias = (2 * ws0 - 1) * (2 * ws1 - 1) * (2 * ws2 - 1)
    rpi = relative_position_index(window_size)
    scale = float(C // num_heads) ** (-0.5)

    keys = iter(jax.random.split(key, 4 + depth * 16))

    def rnd(shape, std=0.02):
        return jax.random.normal(next(keys), shape, jnp.float32) * std

    params = {
        "merge": {"gamma": jnp.ones((1, Kmerge), jnp.float32),
                  "beta": jnp.zeros((1, Kmerge), jnp.float32),
                  "w": rnd((Kmerge, C)).astype(jnp.bfloat16),
                  "b": jnp.zeros((1, C), jnp.float32)},
        "blocks": [],
    }
    for _ in range(depth):
        blk = {}
        for name in ("attn1", "attn2"):
            table = rnd((nbias, num_heads))          # relative_position_bias_table
            bias = table[np.asarray(rpi).reshape(-1)].reshape(N, N, num_heads)
            bias = jnp.transpose(bias, (2, 0, 1))    # (nh, N, N)
            wqkv = rnd((C, 3 * C))
            wqkv = wqkv.at[:, :C].multiply(scale)    # fold attn scale into Q cols
            blk[name] = {"wqkv": wqkv.astype(jnp.bfloat16),
                         "wproj": rnd((C, C)).astype(jnp.bfloat16),
                         "bproj": jnp.zeros((1, C), jnp.float32),
                         "bias": bias}
        for name in ("norm1", "norm2"):
            blk[name] = {"gamma": jnp.ones((1, C), jnp.float32),
                         "beta": jnp.zeros((1, C), jnp.float32)}
        for name in ("mlp1", "mlp2"):
            blk[name] = {"gamma": jnp.ones((1, C), jnp.float32),
                         "beta": jnp.zeros((1, C), jnp.float32),
                         "w1": rnd((C, 4 * C)).astype(jnp.bfloat16),
                         "b1": jnp.zeros((1, 4 * C), jnp.float32),
                         "w2": rnd((4 * C, C)).astype(jnp.bfloat16),
                         "b2": jnp.zeros((1, C), jnp.float32)}
        params["blocks"].append(blk)
    return params


# ----------------------------- forward pass ----------------------------------

def swin_block(x, mask, p, window_size, num_heads):
    B, D, H, W, C = x.shape
    ws = window_size[0]
    nW = mask.shape[0]

    # first half: un-shifted windows, no mask; x is its own residual
    xw = window_partition(x, ws)                       # (Bw, N, C) bf16
    assert xw.shape[0] % nW == 0                       # batch-major windows
    x1 = attn_mlp(xw, p["norm1"], p["attn1"], p["mlp1"], num_heads, nW)

    # second half: residual = pre-shift windows (per the PyTorch reference),
    # attention runs on the cyclically shifted partition with the mask, and the
    # result is window_reverse'd WITHOUT undoing the shift (matching the spec).
    # TODO(synk): the shift + re-partition stays in XLA; window_partition's raw
    # .view reinterpret mixes channels into the partition, so it is not a
    # channel-preserving row permutation and cannot become a row-gather
    # index_map without changing semantics.  Glue runs in bf16 to halve traffic.
    residual = x1
    xr = window_reverse(x1, window_size, B, D, H, W)
    disp = -window_size[0] // 2                        # CyclicShift(-ws // 2)
    xs = jnp.roll(xr, (disp, disp, disp), axis=(1, 2, 3))
    xsw = window_partition(xs, ws)
    biasmask = p["attn2"]["bias"][:, None, :, :] + mask[None]   # (nh, nW, N, N)
    x2 = attn_mlp(xsw, p["norm2"], p["attn2"], p["mlp2"], num_heads, nW,
                  res=residual, biasmask=biasmask)
    return window_reverse(x2, window_size, B, D, H, W)


def stage_module_forward(x, params, cfg):
    window_size = cfg["window_size"]
    num_heads = cfg["num_heads"]
    df = cfg["downscaling_factor"]

    # PatchMerging (downscale path: not upsample / not first_block / not mid)
    # TODO(synk): the unfold/transpose is left in XLA (fusing the df^3 gather
    # into the ln_linear index_map would need a per-voxel grid); it is fed bf16.
    m = params["merge"]
    B, Dx, Hx, Wx, Cin = x.shape
    s = Hx // df
    xm = x.astype(jnp.bfloat16)
    xm = xm.reshape(B, Dx // df, df, Hx // df, df, Wx // df, df, Cin)
    xm = jnp.transpose(xm, (0, 1, 3, 5, 7, 2, 4, 6))        # torch .unfold order
    xm = xm.reshape(B * s * s * s, Cin * df ** 3)
    xm = ln_linear(xm, m["gamma"], m["beta"], m["w"], m["b"])   # bf16 out
    x = xm.reshape(B, s, s, s, -1)

    _, D, H, W, _ = x.shape
    mask = compute_mask(D, H, W, window_size)               # (nW, N, N)
    for blk in params["blocks"]:
        x = swin_block(x, mask, blk, window_size, num_heads)
    # residual stream is carried in bf16 between kernels; return f32 like the
    # PyTorch reference interface.
    return x.astype(jnp.float32)


# ----------------------------- main -------------------------------------------

if __name__ == "__main__":
    cfg = dict(in_channels=4, hidden_dimension=32, downscaling_factor=2,
               num_heads=2, window_size=(2, 2, 2), depth=1)

    key = jax.random.PRNGKey(0)
    pkey, xkey = jax.random.split(key)
    params = init_params(pkey, **cfg)

    B, Dspatial = 2, 8
    x = jax.random.normal(xkey, (B, Dspatial, Dspatial, Dspatial,
                                 cfg["in_channels"]), jnp.float32)

    fwd = jax.jit(functools.partial(stage_module_forward, cfg=cfg))
    y = fwd(x, params)
    jax.block_until_ready(y)
    assert y.shape == (B, Dspatial // 2, Dspatial // 2, Dspatial // 2,
                       cfg["hidden_dimension"])
    assert bool(jnp.all(jnp.isfinite(y)))
    print("KERNEL_OK")
</pallas_src>

<mosaic_0001>
module attributes {stable_mosaic.version = 11 : i64} {
  func.func @ln_linear_kernel(%arg0: i32, %arg1: memref<64x32xbf16, #tpu.memory_space<vmem>>, %arg2: memref<1x32xf32, #tpu.memory_space<vmem>>, %arg3: memref<1x32xf32, #tpu.memory_space<vmem>>, %arg4: memref<32x32xbf16, #tpu.memory_space<vmem>>, %arg5: memref<1x32xf32, #tpu.memory_space<vmem>>, %arg6: memref<64x32xbf16, #tpu.memory_space<vmem>>) attributes {dimension_semantics = [#tpu.dimension_semantics<parallel>], iteration_bounds = array<i64: 2>, scalar_prefetch = 0 : i64, scratch_operands = 0 : i64, tpu.core_type = #tpu.core_type<tc>, window_params = [{transform_indices = @transform_0, window_bounds = array<i64: 64, 32>}, {pipeline_mode = #tpu.pipeline_mode<synchronous>, transform_indices = @transform_1, window_bounds = array<i64: 1, 32>}, {pipeline_mode = #tpu.pipeline_mode<synchronous>, transform_indices = @transform_2, window_bounds = array<i64: 1, 32>}, {pipeline_mode = #tpu.pipeline_mode<synchronous>, transform_indices = @transform_3, window_bounds = array<i64: 32, 32>}, {pipeline_mode = #tpu.pipeline_mode<synchronous>, transform_indices = @transform_4, window_bounds = array<i64: 1, 32>}, {transform_indices = @transform_5, window_bounds = array<i64: 64, 32>}]} {
    %c0 = arith.constant 0 : index
    %c0_0 = arith.constant 0 : index
    %0 = vector.load %arg1[%c0, %c0_0] : memref<64x32xbf16, #tpu.memory_space<vmem>>, vector<64x32xbf16>
    %1 = arith.extf %0 : vector<64x32xbf16> to vector<64x32xf32>
    %c0_1 = arith.constant 0 : index
    %c0_2 = arith.constant 0 : index
    %2 = vector.load %arg2[%c0_1, %c0_2] : memref<1x32xf32, #tpu.memory_space<vmem>>, vector<1x32xf32>
    %c0_3 = arith.constant 0 : index
    %c0_4 = arith.constant 0 : index
    %3 = vector.load %arg3[%c0_3, %c0_4] : memref<1x32xf32, #tpu.memory_space<vmem>>, vector<1x32xf32>
    %cst = arith.constant dense<0.000000e+00> : vector<64xf32>
    %4 = vector.multi_reduction <add>, %1, %cst [1] : vector<64x32xf32> to vector<64xf32>
    %5 = vector.shape_cast %4 : vector<64xf32> to vector<64x1xf32>
    %cst_5 = arith.constant 3.200000e+01 : f32
    %6 = vector.broadcast %cst_5 : f32 to vector<64x1xf32>
    %7 = arith.divf %5, %6 : vector<64x1xf32>
    %8 = vector.broadcast %7 : vector<64x1xf32> to vector<64x32xf32>
    %9 = arith.subf %1, %8 : vector<64x32xf32>
    %10 = arith.mulf %9, %9 : vector<64x32xf32>
    %cst_6 = arith.constant dense<0.000000e+00> : vector<64xf32>
    %11 = vector.multi_reduction <add>, %10, %cst_6 [1] : vector<64x32xf32> to vector<64xf32>
    %12 = vector.shape_cast %11 : vector<64xf32> to vector<64x1xf32>
    %cst_7 = arith.constant 3.200000e+01 : f32
    %13 = vector.broadcast %cst_7 : f32 to vector<64x1xf32>
    %14 = arith.divf %12, %13 : vector<64x1xf32>
    %15 = vector.broadcast %7 : vector<64x1xf32> to vector<64x32xf32>
    %16 = arith.subf %1, %15 : vector<64x32xf32>
    %cst_8 = arith.constant 9.99999974E-6 : f32
    %17 = vector.broadcast %cst_8 : f32 to vector<64x1xf32>
    %18 = arith.addf %14, %17 : vector<64x1xf32>
    %19 = math.rsqrt %18 : vector<64x1xf32>
    %20 = vector.broadcast %19 : vector<64x1xf32> to vector<64x32xf32>
    %21 = arith.mulf %16, %20 : vector<64x32xf32>
    %22 = vector.broadcast %2 : vector<1x32xf32> to vector<64x32xf32>
    %23 = arith.mulf %21, %22 : vector<64x32xf32>
    %24 = vector.broadcast %3 : vector<1x32xf32> to vector<64x32xf32>
    %25 = arith.addf %23, %24 : vector<64x32xf32>
    %26 = arith.truncf %25 : vector<64x32xf32> to vector<64x32xbf16>
    %c0_9 = arith.constant 0 : index
    %c0_10 = arith.constant 0 : index
    %27 = vector.load %arg4[%c0_9, %c0_10] : memref<32x32xbf16, #tpu.memory_space<vmem>>, vector<32x32xbf16>
    %cst_11 = arith.constant dense<0.000000e+00> : vector<64x32xf32>
    %28 = tpu.matmul %26, %27, %cst_11 {dimension_numbers = #tpu.dot_dimension_numbers<[1], [0], [0], [1], [0, 0, 1, 1], [], []>} : vector<64x32xbf16>, vector<32x32xbf16>, vector<64x32xf32> -> vector<64x32xf32>
    %c0_12 = arith.constant 0 : index
    %c0_13 = arith.constant 0 : index
    %29 = vector.load %arg5[%c0_12, %c0_13] : memref<1x32xf32, #tpu.memory_space<vmem>>, vector<1x32xf32>
    %30 = vector.broadcast %29 : vector<1x32xf32> to vector<64x32xf32>
    %31 = arith.addf %28, %30 : vector<64x32xf32>
    %32 = arith.truncf %31 : vector<64x32xf32> to vector<64x32xbf16>
    %c0_14 = arith.constant 0 : index
    %c0_15 = arith.constant 0 : index
    %33 = vector.load %arg6[%c0_14, %c0_15] : memref<64x32xbf16, #tpu.memory_space<vmem>>, vector<64x32xbf16>
    tpu.vector_store %arg6[%c0_14, %c0_15], %32 {strides = array<i32>} : memref<64x32xbf16, #tpu.memory_space<vmem>>, vector<64x32xbf16>,
    return
  }
  func.func @transform_0(%arg0: i32) -> (i32, i32) {
    %c0_i32 = arith.constant 0 : i32
    %c0_i32_0 = arith.constant 0 : i32
    return %arg0, %c0_i32 : i32, i32
  }
  func.func @transform_1(%arg0: i32) -> (i32, i32) {
    %c0_i32 = arith.constant 0 : i32
    %c0_i32_0 = arith.constant 0 : i32
    %c0_i32_1 = arith.constant 0 : i32
    return %c0_i32, %c0_i32_0 : i32, i32
  }
  func.func @transform_2(%arg0: i32) -> (i32, i32) {
    %c0_i32 = arith.constant 0 : i32
    %c0_i32_0 = arith.constant 0 : i32
    %c0_i32_1 = arith.constant 0 : i32
    return %c0_i32, %c0_i32_0 : i32, i32
  }
  func.func @transform_3(%arg0: i32) -> (i32, i32) {
    %c0_i32 = arith.constant 0 : i32
    %c0_i32_0 = arith.constant 0 : i32
    %c0_i32_1 = arith.constant 0 : i32
    return %c0_i32, %c0_i32_0 : i32, i32
  }
  func.func @transform_4(%arg0: i32) -> (i32, i32) {
    %c0_i32 = arith.constant 0 : i32
    %c0_i32_0 = arith.constant 0 : i32
    %c0_i32_1 = arith.constant 0 : i32
    return %c0_i32, %c0_i32_0 : i32, i32
  }
  func.func @transform_5(%arg0: i32) -> (i32, i32) {
    %c0_i32 = arith.constant 0 : i32
    %c0_i32_0 = arith.constant 0 : i32
    return %arg0, %c0_i32 : i32, i32
  }
}

module attributes {stable_mosaic.version = 11 : i64} {
  func.func @kernel(%arg0: i32, %arg1: memref<8x8x32xbf16, #tpu.memory_space<vmem>>, %arg2: memref<1x32xf32, #tpu.memory_space<vmem>>, %arg3: memref<1x32xf32, #tpu.memory_space<vmem>>, %arg4: memref<32x96xbf16, #tpu.memory_space<vmem>>, %arg5: memref<32x32xbf16, #tpu.memory_space<vmem>>, %arg6: memref<1x32xf32, #tpu.memory_space<vmem>>, %arg7: memref<2x8x8xf32, #tpu.memory_space<vmem>>, %arg8: memref<1x32xf32, #tpu.memory_space<vmem>>, %arg9: memref<1x32xf32, #tpu.memory_space<vmem>>, %arg10: memref<32x128xbf16, #tpu.memory_space<vmem>>, %arg11: memref<1x128xf32, #tpu.memory_space<vmem>>, %arg12: memref<128x32xbf16, #tpu.memory_space<vmem>>, %arg13: memref<1x32xf32, #tpu.memory_space<vmem>>, %arg14: memref<8x8x32xbf16, #tpu.memory_space<vmem>>) attributes {dimension_semantics = [#tpu.dimension_semantics<parallel>], iteration_bounds = array<i64: 2>, scalar_prefetch = 0 : i64, scratch_operands = 0 : i64, tpu.core_type = #tpu.core_type<tc>, window_params = [{transform_indices = @transform_0, window_bounds = array<i64: 8, 8, 32>}, {pipeline_mode = #tpu.pipeline_mode<synchronous>, transform_indices = @transform_1, window_bounds = array<i64: 1, 32>}, {pipeline_mode = #tpu.pipeline_mode<synchronous>, transform_indices = @transform_2, window_bounds = array<i64: 1, 32>}, {pipeline_mode = #tpu.pipeline_mode<synchronous>, transform_indices = @transform_3, window_bounds = array<i64: 32, 96>}, {pipeline_mode = #tpu.pipeline_mode<synchronous>, transform_indices = @transform_4, window_bounds = array<i64: 32, 32>}, {pipeline_mode = #tpu.pipeline_mode<synchronous>, transform_indices = @transform_5, window_bounds = array<i64: 1, 32>}, {pipeline_mode = #tpu.pipeline_mode<synchronous>, transform_indices = @transform_6, window_bounds = array<i64: 2, 8, 8>}, {pipeline_mode = #tpu.pipeline_mode<synchronous>, transform_indices = @transform_7, window_bounds = array<i64: 1, 32>}, {pipeline_mode = #tpu.pipeline_mode<synchronous>, transform_indices = @transform_8, window_bounds = array<i64: 1, 32>}, {pipeline_mode = #tpu.pipeline_mode<synchronous>, transform_indices = @transform_9, window_bounds = array<i64: 32, 128>}, {pipeline_mode = #tpu.pipeline_mode<synchronous>, transform_indices = @transform_10, window_bounds = array<i64: 1, 128>}, {pipeline_mode = #tpu.pipeline_mode<synchronous>, transform_indices = @transform_11, window_bounds = array<i64: 128, 32>}, {pipeline_mode = #tpu.pipeline_mode<synchronous>, transform_indices = @transform_12, window_bounds = array<i64: 1, 32>}, {transform_indices = @transform_13, window_bounds = array<i64: 8, 8, 32>}]} {
    %c0 = arith.constant 0 : index
    %c0_0 = arith.constant 0 : index
    %c0_1 = arith.constant 0 : index
    %0 = vector.load %arg1[%c0, %c0_0, %c0_1] : memref<8x8x32xbf16, #tpu.memory_space<vmem>>, vector<8x8x32xbf16>
    %c0_2 = arith.constant 0 : index
    %c0_3 = arith.constant 0 : index
    %1 = vector.load %arg2[%c0_2, %c0_3] : memref<1x32xf32, #tpu.memory_space<vmem>>, vector<1x32xf32>
    %c0_4 = arith.constant 0 : index
    %c0_5 = arith.constant 0 : index
    %2 = vector.load %arg3[%c0_4, %c0_5] : memref<1x32xf32, #tpu.memory_space<vmem>>, vector<1x32xf32>
    %c0_6 = arith.constant 0 : index
    %c0_7 = arith.constant 0 : index
    %3 = vector.load %arg4[%c0_6, %c0_7] : memref<32x96xbf16, #tpu.memory_space<vmem>>, vector<32x96xbf16>
    %c0_8 = arith.constant 0 : index
    %c0_9 = arith.constant 0 : index
    %4 = vector.load %arg5[%c0_8, %c0_9] : memref<32x32xbf16, #tpu.memory_space<vmem>>, vector<32x32xbf16>
    %c0_10 = arith.constant 0 : index
    %c0_11 = arith.constant 0 : index
    %5 = vector.load %arg6[%c0_10, %c0_11] : memref<1x32xf32, #tpu.memory_space<vmem>>, vector<1x32xf32>
    %c0_12 = arith.constant 0 : index
    %c0_13 = arith.constant 0 : index
    %c0_14 = arith.constant 0 : index
    %6 = vector.load %arg7[%c0_12, %c0_13, %c0_14] : memref<2x8x8xf32, #tpu.memory_space<vmem>>, vector<2x8x8xf32>
    %c0_15 = arith.constant 0 : index
    %c0_16 = arith.constant 0 : index
    %7 = vector.load %arg8[%c0_15, %c0_16] : memref<1x32xf32, #tpu.memory_space<vmem>>, vector<1x32xf32>
    %c0_17 = arith.constant 0 : index
    %c0_18 = arith.constant 0 : index
    %8 = vector.load %arg9[%c0_17, %c0_18] : memref<1x32xf32, #tpu.memory_space<vmem>>, vector<1x32xf32>
    %c0_19 = arith.constant 0 : index
    %c0_20 = arith.constant 0 : index
    %9 = vector.load %arg10[%c0_19, %c0_20] : memref<32x128xbf16, #tpu.memory_space<vmem>>, vector<32x128xbf16>
    %c0_21 = arith.constant 0 : index
    %c0_22 = arith.constant 0 : index
    %10 = vector.load %arg11[%c0_21, %c0_22] : memref<1x128xf32, #tpu.memory_space<vmem>>, vector<1x128xf32>
    %c0_23 = arith.constant 0 : index
    %c0_24 = arith.constant 0 : index
    %11 = vector.load %arg12[%c0_23, %c0_24] : memref<128x32xbf16, #tpu.memory_space<vmem>>, vector<128x32xbf16>
    %c0_25 = arith.constant 0 : index
    %c0_26 = arith.constant 0 : index
    %12 = vector.load %arg13[%c0_25, %c0_26] : memref<1x32xf32, #tpu.memory_space<vmem>>, vector<1x32xf32>
    %13 = vector.shape_cast %0 : vector<8x8x32xbf16> to vector<64x32xbf16>
    %14 = arith.extf %13 : vector<64x32xbf16> to vector<64x32xf32>
    %cst = arith.constant dense<0.000000e+00> : vector<64xf32>
    %15 = vector.multi_reduction <add>, %14, %cst [1] : vector<64x32xf32> to vector<64xf32>
    %16 = vector.shape_cast %15 : vector<64xf32> to vector<64x1xf32>
    %cst_27 = arith.constant 3.200000e+01 : f32
    %17 = vector.broadcast %cst_27 : f32 to vector<64x1xf32>
    %18 = arith.divf %16, %17 : vector<64x1xf32>
    %19 = vector.broadcast %18 : vector<64x1xf32> to vector<64x32xf32>
    %20 = arith.subf %14, %19 : vector<64x32xf32>
    %21 = arith.mulf %20, %20 : vector<64x32xf32>
    %cst_28 = arith.constant dense<0.000000e+00> : vector<64xf32>
    %22 = vector.multi_reduction <add>, %21, %cst_28 [1] : vector<64x32xf32> to vector<64xf32>
    %23 = vector.shape_cast %22 : vector<64xf32> to vector<64x1xf32>
    %cst_29 = arith.constant 3.200000e+01 : f32
    %24 = vector.broadcast %cst_29 : f32 to vector<64x1xf32>
    %25 = arith.divf %23, %24 : vector<64x1xf32>
    %26 = vector.broadcast %18 : vector<64x1xf32> to vector<64x32xf32>
    %27 = arith.subf %14, %26 : vector<64x32xf32>
    %cst_30 = arith.constant 9.99999974E-6 : f32
    %28 = vector.broadcast %cst_30 : f32 to vector<64x1xf32>
    %29 = arith.addf %25, %28 : vector<64x1xf32>
    %30 = math.rsqrt %29 : vector<64x1xf32>
    %31 = vector.broadcast %30 : vector<64x1xf32> to vector<64x32xf32>
    %32 = arith.mulf %27, %31 : vector<64x32xf32>
    %33 = vector.broadcast %1 : vector<1x32xf32> to vector<64x32xf32>
    %34 = arith.mulf %32, %33 : vector<64x32xf32>
    %35 = vector.broadcast %2 : vector<1x32xf32> to vector<64x32xf32>
    %36 = arith.addf %34, %35 : vector<64x32xf32>
    %37 = arith.truncf %36 : vector<64x32xf32> to vector<64x32xbf16>
    %cst_31 = arith.constant dense<0.000000e+00> : vector<64x96xf32>
    %38 = tpu.matmul %37, %3, %cst_31 {dimension_numbers = #tpu.dot_dimension_numbers<[1], [0], [0], [1], [0, 0, 1, 1], [], []>} : vector<64x32xbf16>, vector<32x96xbf16>, vector<64x96xf32> -> vector<64x96xf32>
    %39 = vector.shape_cast %38 : vector<64x96xf32> to vector<8x8x96xf32>
    %40 = vector.extract_strided_slice %39 {offsets = [0, 0, 0], sizes = [8, 8, 16], strides = [1, 1, 1]} : vector<8x8x96xf32> to vector<8x8x16xf32>
    %41 = vector.extract_strided_slice %39 {offsets = [0, 0, 32], sizes = [8, 8, 16], strides = [1, 1, 1]} : vector<8x8x96xf32> to vector<8x8x16xf32>
    %42 = vector.extract_strided_slice %39 {offsets = [0, 0, 64], sizes = [8, 8, 16], strides = [1, 1, 1]} : vector<8x8x96xf32> to vector<8x8x16xf32>
    %43 = arith.truncf %40 : vector<8x8x16xf32> to vector<8x8x16xbf16>
    %44 = arith.truncf %41 : vector<8x8x16xf32> to vector<8x8x16xbf16>
    "tpu.trace_start"() <{level = 10 : i32, message = "wqd,wkd->wqk"}> : () -> ()
    %cst_32 = arith.constant dense<0.000000e+00> : vector<8x8x8xf32>
    %45 = tpu.matmul %43, %44, %cst_32 {dimension_numbers = #tpu.dot_dimension_numbers<[2], [2], [1], [1], [0, 0, 0, 1, 1, 1], [0], [0]>} : vector<8x8x16xbf16>, vector<8x8x16xbf16>, vector<8x8x8xf32> -> vector<8x8x8xf32>
    "tpu.trace_stop"() : () -> ()
    %46 = vector.extract_strided_slice %6 {offsets = [0, 0, 0], sizes = [1, 8, 8], strides = [1, 1, 1]} : vector<2x8x8xf32> to vector<1x8x8xf32>
    %47 = vector.shape_cast %46 : vector<1x8x8xf32> to vector<8x8xf32>
    %48 = vector.shape_cast %47 : vector<8x8xf32> to vector<1x8x8xf32>
    %49 = vector.broadcast %48 : vector<1x8x8xf32> to vector<8x8x8xf32>
    %50 = arith.addf %45, %49 : vector<8x8x8xf32>
    %cst_33 = arith.constant dense<0xFF800000> : vector<8x8xf32>
    %51 = vector.multi_reduction <maximumf>, %50, %cst_33 [2] : vector<8x8x8xf32> to vector<8x8xf32>
    %52 = vector.shape_cast %51 : vector<8x8xf32> to vector<8x8x1xf32>
    %53 = vector.broadcast %52 : vector<8x8x1xf32> to vector<8x8x8xf32>
    %54 = arith.subf %50, %53 : vector<8x8x8xf32>
    %55 = math.exp %54 : vector<8x8x8xf32>
    %cst_34 = arith.constant dense<0.000000e+00> : vector<8x8xf32>
    %56 = vector.multi_reduction <add>, %55, %cst_34 [2] : vector<8x8x8xf32> to vector<8x8xf32>
    %57 = vector.shape_cast %56 : vector<8x8xf32> to vector<8x8x1xf32>
    %58 = tpu.reciprocal %57 {approx = true} : vector<8x8x1xf32> -> vector<8x8x1xf32>
    %59 = vector.broadcast %58 : vector<8x8x1xf32> to vector<8x8x8xf32>
    %60 = arith.mulf %55, %59 : vector<8x8x8xf32>
    %61 = arith.truncf %60 : vector<8x8x8xf32> to vector<8x8x8xbf16>
    %62 = arith.truncf %42 : vector<8x8x16xf32> to vector<8x8x16xbf16>
    "tpu.trace_start"() <{level = 10 : i32, message = "wqk,wkd->wqd"}> : () -> ()
    %cst_35 = arith.constant dense<0.000000e+00> : vector<8x8x16xf32>
    %63 = tpu.matmul %61, %62, %cst_35 {dimension_numbers = #tpu.dot_dimension_numbers<[2], [1], [1], [2], [0, 0, 0, 1, 1, 2], [0], [0]>} : vector<8x8x8xbf16>, vector<8x8x16xbf16>, vector<8x8x16xf32> -> vector<8x8x16xf32>
    "tpu.trace_stop"() : () -> ()
    %64 = vector.shape_cast %63 : vector<8x8x16xf32> to vector<64x16xf32>
    %65 = arith.truncf %64 : vector<64x16xf32> to vector<64x16xbf16>
    %66 = vector.extract_strided_slice %4 {offsets = [0, 0], sizes = [16, 32], strides = [1, 1]} : vector<32x32xbf16> to vector<16x32xbf16>
    %cst_36 = arith.constant dense<0.000000e+00> : vector<64x32xf32>
    %67 = tpu.matmul %65, %66, %cst_36 {dimension_numbers = #tpu.dot_dimension_numbers<[1], [0], [0], [1], [0, 0, 1, 1], [], []>} : vector<64x16xbf16>, vector<16x32xbf16>, vector<64x32xf32> -> vector<64x32xf32>
    %68 = vector.extract_strided_slice %39 {offsets = [0, 0, 16], sizes = [8, 8, 16], strides = [1, 1, 1]} : vector<8x8x96xf32> to vector<8x8x16xf32>
    %69 = vector.extract_strided_slice %39 {offsets = [0, 0, 48], sizes = [8, 8, 16], strides = [1, 1, 1]} : vector<8x8x96xf32> to vector<8x8x16xf32>
    %70 = vector.extract_strided_slice %39 {offsets = [0, 0, 80], sizes = [8, 8, 16], strides = [1, 1, 1]} : vector<8x8x96xf32> to vector<8x8x16xf32>
    %71 = arith.truncf %68 : vector<8x8x16xf32> to vector<8x8x16xbf16>
    %72 = arith.truncf %69 : vector<8x8x16xf32> to vector<8x8x16xbf16>
    "tpu.trace_start"() <{level = 10 : i32, message = "wqd,wkd->wqk"}> : () -> ()
    %cst_37 = arith.constant dense<0.000000e+00> : vector<8x8x8xf32>
    %73 = tpu.matmul %71, %72, %cst_37 {dimension_numbers = #tpu.dot_dimension_numbers<[2], [2], [1], [1], [0, 0, 0, 1, 1, 1], [0], [0]>} : vector<8x8x16xbf16>, vector<8x8x16xbf16>, vector<8x8x8xf32> -> vector<8x8x8xf32>
    "tpu.trace_stop"() : () -> ()
    %74 = vector.extract_strided_slice %6 {offsets = [1, 0, 0], sizes = [1, 8, 8], strides = [1, 1, 1]} : vector<2x8x8xf32> to vector<1x8x8xf32>
    %75 = vector.shape_cast %74 : vector<1x8x8xf32> to vector<8x8xf32>
    %76 = vector.shape_cast %75 : vector<8x8xf32> to vector<1x8x8xf32>
    %77 = vector.broadcast %76 : vector<1x8x8xf32> to vector<8x8x8xf32>
    %78 = arith.addf %73, %77 : vector<8x8x8xf32>
    %cst_38 = arith.constant dense<0xFF800000> : vector<8x8xf32>
    %79 = vector.multi_reduction <maximumf>, %78, %cst_38 [2] : vector<8x8x8xf32> to vector<8x8xf32>
    %80 = vector.shape_cast %79 : vector<8x8xf32> to vector<8x8x1xf32>
    %81 = vector.broadcast %80 : vector<8x8x1xf32> to vector<8x8x8xf32>
    %82 = arith.subf %78, %81 : vector<8x8x8xf32>
    %83 = math.exp %82 : vector<8x8x8xf32>
    %cst_39 = arith.constant dense<0.000000e+00> : vector<8x8xf32>
    %84 = vector.multi_reduction <add>, %83, %cst_39 [2] : vector<8x8x8xf32> to vector<8x8xf32>
    %85 = vector.shape_cast %84 : vector<8x8xf32> to vector<8x8x1xf32>
    %86 = tpu.reciprocal %85 {approx = true} : vector<8x8x1xf32> -> vector<8x8x1xf32>
    %87 = vector.broadcast %86 : vector<8x8x1xf32> to vector<8x8x8xf32>
    %88 = arith.mulf %83, %87 : vector<8x8x8xf32>
    %89 = arith.truncf %88 : vector<8x8x8xf32> to vector<8x8x8xbf16>
    %90 = arith.truncf %70 : vector<8x8x16xf32> to vector<8x8x16xbf16>
    "tpu.trace_start"() <{level = 10 : i32, message = "wqk,wkd->wqd"}> : () -> ()
    %cst_40 = arith.constant dense<0.000000e+00> : vector<8x8x16xf32>
    %91 = tpu.matmul %89, %90, %cst_40 {dimension_numbers = #tpu.dot_dimension_numbers<[2], [1], [1], [2], [0, 0, 0, 1, 1, 2], [0], [0]>} : vector<8x8x8xbf16>, vector<8x8x16xbf16>, vector<8x8x16xf32> -> vector<8x8x16xf32>
    "tpu.trace_stop"() : () -> ()
    %92 = vector.shape_cast %91 : vector<8x8x16xf32> to vector<64x16xf32>
    %93 = arith.truncf %92 : vector<64x16xf32> to vector<64x16xbf16>
    %94 = vector.extract_strided_slice %4 {offsets = [16, 0], sizes = [16, 32], strides = [1, 1]} : vector<32x32xbf16> to vector<16x32xbf16>
    %cst_41 = arith.constant dense<0.000000e+00> : vector<64x32xf32>
    %95 = tpu.matmul %93, %94, %cst_41 {dimension_numbers = #tpu.dot_dimension_numbers<[1], [0], [0], [1], [0, 0, 1, 1], [], []>} : vector<64x16xbf16>, vector<16x32xbf16>, vector<64x32xf32> -> vector<64x32xf32>
    %96 = arith.addf %67, %95 : vector<64x32xf32>
    %97 = arith.addf %14, %96 : vector<64x32xf32>
    %98 = vector.broadcast %5 : vector<1x32xf32> to vector<64x32xf32>
    %99 = arith.addf %97, %98 : vector<64x32xf32>
    %cst_42 = arith.constant dense<0.000000e+00> : vector<64xf32>
    %100 = vector.multi_reduction <add>, %99, %cst_42 [1] : vector<64x32xf32> to vector<64xf32>
    %101 = vector.shape_cast %100 : vector<64xf32> to vector<64x1xf32>
    %cst_43 = arith.constant 3.200000e+01 : f32
    %102 = vector.broadcast %cst_43 : f32 to vector<64x1xf32>
    %103 = arith.divf %101, %102 : vector<64x1xf32>
    %104 = vector.broadcast %103 : vector<64x1xf32> to vector<64x32xf32>
    %105 = arith.subf %99, %104 : vector<64x32xf32>
    %106 = arith.mulf %105, %105 : vector<64x32xf32>
    %cst_44 = arith.constant dense<0.000000e+00> : vector<64xf32>
    %107 = vector.multi_reduction <add>, %106, %cst_44 [1] : vector<64x32xf32> to vector<64xf32>
    %108 = vector.shape_cast %107 : vector<64xf32> to vector<64x1xf32>
    %cst_45 = arith.constant 3.200000e+01 : f32
    %109 = vector.broadcast %cst_45 : f32 to vector<64x1xf32>
    %110 = arith.divf %108, %109 : vector<64x1xf32>
    %111 = vector.broadcast %103 : vector<64x1xf32> to vector<64x32xf32>
    %112 = arith.subf %99, %111 : vector<64x32xf32>
    %cst_46 = arith.constant 9.99999974E-6 : f32
    %113 = vector.broadcast %cst_46 : f32 to vector<64x1xf32>
    %114 = arith.addf %110, %113 : vector<64x1xf32>
    %115 = math.rsqrt %114 : vector<64x1xf32>
    %116 = vector.broadcast %115 : vector<64x1xf32> to vector<64x32xf32>
    %117 = arith.mulf %112, %116 : vector<64x32xf32>
    %118 = vector.broadcast %7 : vector<1x32xf32> to vector<64x32xf32>
    %119 = arith.mulf %117, %118 : vector<64x32xf32>
    %120 = vector.broadcast %8 : vector<1x32xf32> to vector<64x32xf32>
    %121 = arith.addf %119, %120 : vector<64x32xf32>
    %122 = arith.truncf %121 : vector<64x32xf32> to vector<64x32xbf16>
    %cst_47 = arith.constant dense<0.000000e+00> : vector<64x128xf32>
    %123 = tpu.matmul %122, %9, %cst_47 {dimension_numbers = #tpu.dot_dimension_numbers<[1], [0], [0], [1], [0, 0, 1, 1], [], []>} : vector<64x32xbf16>, vector<32x128xbf16>, vector<64x128xf32> -> vector<64x128xf32>
    %124 = vector.broadcast %10 : vector<1x128xf32> to vector<64x128xf32>
    %125 = arith.addf %123, %124 : vector<64x128xf32>
    %126 = arith.mulf %125, %125 : vector<64x128xf32>
    %127 = arith.mulf %125, %126 : vector<64x128xf32>
    %cst_48 = arith.constant 4.471500e-02 : f32
    %128 = vector.broadcast %cst_48 : f32 to vector<64x128xf32>
    %129 = arith.mulf %128, %127 : vector<64x128xf32>
    %130 = arith.addf %125, %129 : vector<64x128xf32>
    %cst_49 = arith.constant 0.797884583 : f32
    %131 = vector.broadcast %cst_49 : f32 to vector<64x128xf32>
    %132 = arith.mulf %131, %130 : vector<64x128xf32>
    %133 = math.tanh %132 : vector<64x128xf32>
    %cst_50 = arith.constant 1.000000e+00 : f32
    %134 = vector.broadcast %cst_50 : f32 to vector<64x128xf32>
    %135 = arith.addf %134, %133 : vector<64x128xf32>
    %cst_51 = arith.constant 5.000000e-01 : f32
    %136 = vector.broadcast %cst_51 : f32 to vector<64x128xf32>
    %137 = arith.mulf %136, %135 : vector<64x128xf32>
    %138 = arith.mulf %125, %137 : vector<64x128xf32>
    %139 = arith.truncf %138 : vector<64x128xf32> to vector<64x128xbf16>
    %cst_52 = arith.constant dense<0.000000e+00> : vector<64x32xf32>
    %140 = tpu.matmul %139, %11, %cst_52 {dimension_numbers = #tpu.dot_dimension_numbers<[1], [0], [0], [1], [0, 0, 1, 1], [], []>} : vector<64x128xbf16>, vector<128x32xbf16>, vector<64x32xf32> -> vector<64x32xf32>
    %141 = arith.addf %99, %140 : vector<64x32xf32>
    %142 = vector.broadcast %12 : vector<1x32xf32> to vector<64x32xf32>
    %143 = arith.addf %141, %142 : vector<64x32xf32>
    %144 = vector.shape_cast %143 : vector<64x32xf32> to vector<8x8x32xf32>
    %145 = arith.truncf %144 : vector<8x8x32xf32> to vector<8x8x32xbf16>
    %c0_53 = arith.constant 0 : index
    %c0_54 = arith.constant 0 : index
    %c0_55 = arith.constant 0 : index
    %146 = vector.load %arg14[%c0_53, %c0_54, %c0_55] : memref<8x8x32xbf16, #tpu.memory_space<vmem>>, vector<8x8x32xbf16>
    tpu.vector_store %arg14[%c0_53, %c0_54, %c0_55], %145 {strides = array<i32>} : memref<8x8x32xbf16, #tpu.memory_space<vmem>>, vector<8x8x32xbf16>,
    return
  }
  func.func @transform_0(%arg0: i32) -> (i32, i32, i32) {
    %c0_i32 = arith.constant 0 : i32
    %c0_i32_0 = arith.constant 0 : i32
    %c0_i32_1 = arith.constant 0 : i32
    return %arg0, %c0_i32, %c0_i32_0 : i32, i32, i32
  }
  func.func @transform_1(%arg0: i32) -> (i32, i32) {
    %c0_i32 = arith.constant 0 : i32
    %c0_i32_0 = arith.constant 0 : i32
    %c0_i32_1 = arith.constant 0 : i32
    return %c0_i32, %c0_i32_0 : i32, i32
  }
  func.func @transform_2(%arg0: i32) -> (i32, i32) {
    %c0_i32 = arith.constant 0 : i32
    %c0_i32_0 = arith.constant 0 : i32
    %c0_i32_1 = arith.constant 0 : i32
    return %c0_i32, %c0_i32_0 : i32, i32
  }
  func.func @transform_3(%arg0: i32) -> (i32, i32) {
    %c0_i32 = arith.constant 0 : i32
    %c0_i32_0 = arith.constant 0 : i32
    %c0_i32_1 = arith.constant 0 : i32
    return %c0_i32, %c0_i32_0 : i32, i32
  }
  func.func @transform_4(%arg0: i32) -> (i32, i32) {
    %c0_i32 = arith.constant 0 : i32
    %c0_i32_0 = arith.constant 0 : i32
    %c0_i32_1 = arith.constant 0 : i32
    return %c0_i32, %c0_i32_0 : i32, i32
  }
  func.func @transform_5(%arg0: i32) -> (i32, i32) {
    %c0_i32 = arith.constant 0 : i32
    %c0_i32_0 = arith.constant 0 : i32
    %c0_i32_1 = arith.constant 0 : i32
    return %c0_i32, %c0_i32_0 : i32, i32
  }
  func.func @transform_6(%arg0: i32) -> (i32, i32, i32) {
    %c0_i32 = arith.constant 0 : i32
    %c0_i32_0 = arith.constant 0 : i32
    %c0_i32_1 = arith.constant 0 : i32
    %c0_i32_2 = arith.constant 0 : i32
    return %c0_i32, %c0_i32_0, %c0_i32_1 : i32, i32, i32
  }
  func.func @transform_7(%arg0: i32) -> (i32, i32) {
    %c0_i32 = arith.constant 0 : i32
    %c0_i32_0 = arith.constant 0 : i32
    %c0_i32_1 = arith.constant 0 : i32
    return %c0_i32, %c0_i32_0 : i32, i32
  }
  func.func @transform_8(%arg0: i32) -> (i32, i32) {
    %c0_i32 = arith.constant 0 : i32
    %c0_i32_0 = arith.constant 0 : i32
    %c0_i32_1 = arith.constant 0 : i32
    return %c0_i32, %c0_i32_0 : i32, i32
  }
  func.func @transform_9(%arg0: i32) -> (i32, i32) {
    %c0_i32 = arith.constant 0 : i32
    %c0_i32_0 = arith.constant 0 : i32
    %c0_i32_1 = arith.constant 0 : i32
    return %c0_i32, %c0_i32_0 : i32, i32
  }
  func.func @transform_10(%arg0: i32) -> (i32, i32) {
    %c0_i32 = arith.constant 0 : i32
    %c0_i32_0 = arith.constant 0 : i32
    %c0_i32_1 = arith.constant 0 : i32
    return %c0_i32, %c0_i32_0 : i32, i32
  }
  func.func @transform_11(%arg0: i32) -> (i32, i32) {
    %c0_i32 = arith.constant 0 : i32
    %c0_i32_0 = arith.constant 0 : i32
    %c0_i32_1 = arith.constant 0 : i32
    return %c0_i32, %c0_i32_0 : i32, i32
  }
  func.func @transform_12(%arg0: i32) -> (i32, i32) {
    %c0_i32 = arith.constant 0 : i32
    %c0_i32_0 = arith.constant 0 : i32
    %c0_i32_1 = arith.constant 0 : i32
    return %c0_i32, %c0_i32_0 : i32, i32
  }
  func.func @transform_13(%arg0: i32) -> (i32, i32, i32) {
    %c0_i32 = arith.constant 0 : i32
    %c0_i32_0 = arith.constant 0 : i32
    %c0_i32_1 = arith.constant 0 : i32
    return %arg0, %c0_i32, %c0_i32_0 : i32, i32, i32
  }
}

module attributes {stable_mosaic.version = 11 : i64} {
  func.func @kernel(%arg0: i32, %arg1: memref<8x8x32xbf16, #tpu.memory_space<vmem>>, %arg2: memref<8x8x32xbf16, #tpu.memory_space<vmem>>, %arg3: memref<1x32xf32, #tpu.memory_space<vmem>>, %arg4: memref<1x32xf32, #tpu.memory_space<vmem>>, %arg5: memref<32x96xbf16, #tpu.memory_space<vmem>>, %arg6: memref<32x32xbf16, #tpu.memory_space<vmem>>, %arg7: memref<1x32xf32, #tpu.memory_space<vmem>>, %arg8: memref<2x8x8x8xf32, #tpu.memory_space<vmem>>, %arg9: memref<1x32xf32, #tpu.memory_space<vmem>>, %arg10: memref<1x32xf32, #tpu.memory_space<vmem>>, %arg11: memref<32x128xbf16, #tpu.memory_space<vmem>>, %arg12: memref<1x128xf32, #tpu.memory_space<vmem>>, %arg13: memref<128x32xbf16, #tpu.memory_space<vmem>>, %arg14: memref<1x32xf32, #tpu.memory_space<vmem>>, %arg15: memref<8x8x32xbf16, #tpu.memory_space<vmem>>) attributes {dimension_semantics = [#tpu.dimension_semantics<parallel>], iteration_bounds = array<i64: 2>, scalar_prefetch = 0 : i64, scratch_operands = 0 : i64, tpu.core_type = #tpu.core_type<tc>, window_params = [{transform_indices = @transform_0, window_bounds = array<i64: 8, 8, 32>}, {transform_indices = @transform_1, window_bounds = array<i64: 8, 8, 32>}, {pipeline_mode = #tpu.pipeline_mode<synchronous>, transform_indices = @transform_2, window_bounds = array<i64: 1, 32>}, {pipeline_mode = #tpu.pipeline_mode<synchronous>, transform_indices = @transform_3, window_bounds = array<i64: 1, 32>}, {pipeline_mode = #tpu.pipeline_mode<synchronous>, transform_indices = @transform_4, window_bounds = array<i64: 32, 96>}, {pipeline_mode = #tpu.pipeline_mode<synchronous>, transform_indices = @transform_5, window_bounds = array<i64: 32, 32>}, {pipeline_mode = #tpu.pipeline_mode<synchronous>, transform_indices = @transform_6, window_bounds = array<i64: 1, 32>}, {pipeline_mode = #tpu.pipeline_mode<synchronous>, transform_indices = @transform_7, window_bounds = array<i64: 2, 8, 8, 8>}, {pipeline_mode = #tpu.pipeline_mode<synchronous>, transform_indices = @transform_8, window_bounds = array<i64: 1, 32>}, {pipeline_mode = #tpu.pipeline_mode<synchronous>, transform_indices = @transform_9, window_bounds = array<i64: 1, 32>}, {pipeline_mode = #tpu.pipeline_mode<synchronous>, transform_indices = @transform_10, window_bounds = array<i64: 32, 128>}, {pipeline_mode = #tpu.pipeline_mode<synchronous>, transform_indices = @transform_11, window_bounds = array<i64: 1, 128>}, {pipeline_mode = #tpu.pipeline_mode<synchronous>, transform_indices = @transform_12, window_bounds = array<i64: 128, 32>}, {pipeline_mode = #tpu.pipeline_mode<synchronous>, transform_indices = @transform_13, window_bounds = array<i64: 1, 32>}, {transform_indices = @transform_14, window_bounds = array<i64: 8, 8, 32>}]} {
    %c0 = arith.constant 0 : index
    %c0_0 = arith.constant 0 : index
    %c0_1 = arith.constant 0 : index
    %0 = vector.load %arg1[%c0, %c0_0, %c0_1] : memref<8x8x32xbf16, #tpu.memory_space<vmem>>, vector<8x8x32xbf16>
    %c0_2 = arith.constant 0 : index
    %c0_3 = arith.constant 0 : index
    %c0_4 = arith.constant 0 : index
    %1 = vector.load %arg2[%c0_2, %c0_3, %c0_4] : memref<8x8x32xbf16, #tpu.memory_space<vmem>>, vector<8x8x32xbf16>
    %c0_5 = arith.constant 0 : index
    %c0_6 = arith.constant 0 : index
    %2 = vector.load %arg3[%c0_5, %c0_6] : memref<1x32xf32, #tpu.memory_space<vmem>>, vector<1x32xf32>
    %c0_7 = arith.constant 0 : index
    %c0_8 = arith.constant 0 : index
    %3 = vector.load %arg4[%c0_7, %c0_8] : memref<1x32xf32, #tpu.memory_space<vmem>>, vector<1x32xf32>
    %c0_9 = arith.constant 0 : index
    %c0_10 = arith.constant 0 : index
    %4 = vector.load %arg5[%c0_9, %c0_10] : memref<32x96xbf16, #tpu.memory_space<vmem>>, vector<32x96xbf16>
    %c0_11 = arith.constant 0 : index
    %c0_12 = arith.constant 0 : index
    %5 = vector.load %arg6[%c0_11, %c0_12] : memref<32x32xbf16, #tpu.memory_space<vmem>>, vector<32x32xbf16>
    %c0_13 = arith.constant 0 : index
    %c0_14 = arith.constant 0 : index
    %6 = vector.load %arg7[%c0_13, %c0_14] : memref<1x32xf32, #tpu.memory_space<vmem>>, vector<1x32xf32>
    %c0_15 = arith.constant 0 : index
    %c0_16 = arith.constant 0 : index
    %c0_17 = arith.constant 0 : index
    %c0_18 = arith.constant 0 : index
    %7 = vector.load %arg8[%c0_15, %c0_16, %c0_17, %c0_18] : memref<2x8x8x8xf32, #tpu.memory_space<vmem>>, vector<2x8x8x8xf32>
    %c0_19 = arith.constant 0 : index
    %c0_20 = arith.constant 0 : index
    %8 = vector.load %arg9[%c0_19, %c0_20] : memref<1x32xf32, #tpu.memory_space<vmem>>, vector<1x32xf32>
    %c0_21 = arith.constant 0 : index
    %c0_22 = arith.constant 0 : index
    %9 = vector.load %arg10[%c0_21, %c0_22] : memref<1x32xf32, #tpu.memory_space<vmem>>, vector<1x32xf32>
    %c0_23 = arith.constant 0 : index
    %c0_24 = arith.constant 0 : index
    %10 = vector.load %arg11[%c0_23, %c0_24] : memref<32x128xbf16, #tpu.memory_space<vmem>>, vector<32x128xbf16>
    %c0_25 = arith.constant 0 : index
    %c0_26 = arith.constant 0 : index
    %11 = vector.load %arg12[%c0_25, %c0_26] : memref<1x128xf32, #tpu.memory_space<vmem>>, vector<1x128xf32>
    %c0_27 = arith.constant 0 : index
    %c0_28 = arith.constant 0 : index
    %12 = vector.load %arg13[%c0_27, %c0_28] : memref<128x32xbf16, #tpu.memory_space<vmem>>, vector<128x32xbf16>
    %c0_29 = arith.constant 0 : index
    %c0_30 = arith.constant 0 : index
    %13 = vector.load %arg14[%c0_29, %c0_30] : memref<1x32xf32, #tpu.memory_space<vmem>>, vector<1x32xf32>
    %14 = vector.shape_cast %1 : vector<8x8x32xbf16> to vector<64x32xbf16>
    %15 = arith.extf %14 : vector<64x32xbf16> to vector<64x32xf32>
    %16 = vector.shape_cast %0 : vector<8x8x32xbf16> to vector<64x32xbf16>
    %17 = arith.extf %16 : vector<64x32xbf16> to vector<64x32xf32>
    %cst = arith.constant dense<0.000000e+00> : vector<64xf32>
    %18 = vector.multi_reduction <add>, %15, %cst [1] : vector<64x32xf32> to vector<64xf32>
    %19 = vector.shape_cast %18 : vector<64xf32> to vector<64x1xf32>
    %cst_31 = arith.constant 3.200000e+01 : f32
    %20 = vector.broadcast %cst_31 : f32 to vector<64x1xf32>
    %21 = arith.divf %19, %20 : vector<64x1xf32>
    %22 = vector.broadcast %21 : vector<64x1xf32> to vector<64x32xf32>
    %23 = arith.subf %15, %22 : vector<64x32xf32>
    %24 = arith.mulf %23, %23 : vector<64x32xf32>
    %cst_32 = arith.constant dense<0.000000e+00> : vector<64xf32>
    %25 = vector.multi_reduction <add>, %24, %cst_32 [1] : vector<64x32xf32> to vector<64xf32>
    %26 = vector.shape_cast %25 : vector<64xf32> to vector<64x1xf32>
    %cst_33 = arith.constant 3.200000e+01 : f32
    %27 = vector.broadcast %cst_33 : f32 to vector<64x1xf32>
    %28 = arith.divf %26, %27 : vector<64x1xf32>
    %29 = vector.broadcast %21 : vector<64x1xf32> to vector<64x32xf32>
    %30 = arith.subf %15, %29 : vector<64x32xf32>
    %cst_34 = arith.constant 9.99999974E-6 : f32
    %31 = vector.broadcast %cst_34 : f32 to vector<64x1xf32>
    %32 = arith.addf %28, %31 : vector<64x1xf32>
    %33 = math.rsqrt %32 : vector<64x1xf32>
    %34 = vector.broadcast %33 : vector<64x1xf32> to vector<64x32xf32>
    %35 = arith.mulf %30, %34 : vector<64x32xf32>
    %36 = vector.broadcast %2 : vector<1x32xf32> to vector<64x32xf32>
    %37 = arith.mulf %35, %36 : vector<64x32xf32>
    %38 = vector.broadcast %3 : vector<1x32xf32> to vector<64x32xf32>
    %39 = arith.addf %37, %38 : vector<64x32xf32>
    %40 = arith.truncf %39 : vector<64x32xf32> to vector<64x32xbf16>
    %cst_35 = arith.constant dense<0.000000e+00> : vector<64x96xf32>
    %41 = tpu.matmul %40, %4, %cst_35 {dimension_numbers = #tpu.dot_dimension_numbers<[1], [0], [0], [1], [0, 0, 1, 1], [], []>} : vector<64x32xbf16>, vector<32x96xbf16>, vector<64x96xf32> -> vector<64x96xf32>
    %42 = vector.shape_cast %41 : vector<64x96xf32> to vector<8x8x96xf32>
    %43 = vector.extract_strided_slice %42 {offsets = [0, 0, 0], sizes = [8, 8, 16], strides = [1, 1, 1]} : vector<8x8x96xf32> to vector<8x8x16xf32>
    %44 = vector.extract_strided_slice %42 {offsets = [0, 0, 32], sizes = [8, 8, 16], strides = [1, 1, 1]} : vector<8x8x96xf32> to vector<8x8x16xf32>
    %45 = vector.extract_strided_slice %42 {offsets = [0, 0, 64], sizes = [8, 8, 16], strides = [1, 1, 1]} : vector<8x8x96xf32> to vector<8x8x16xf32>
    %46 = arith.truncf %43 : vector<8x8x16xf32> to vector<8x8x16xbf16>
    %47 = arith.truncf %44 : vector<8x8x16xf32> to vector<8x8x16xbf16>
    "tpu.trace_start"() <{level = 10 : i32, message = "wqd,wkd->wqk"}> : () -> ()
    %cst_36 = arith.constant dense<0.000000e+00> : vector<8x8x8xf32>
    %48 = tpu.matmul %46, %47, %cst_36 {dimension_numbers = #tpu.dot_dimension_numbers<[2], [2], [1], [1], [0, 0, 0, 1, 1, 1], [0], [0]>} : vector<8x8x16xbf16>, vector<8x8x16xbf16>, vector<8x8x8xf32> -> vector<8x8x8xf32>
    "tpu.trace_stop"() : () -> ()
    %49 = vector.shape_cast %48 : vector<8x8x8xf32> to vector<1x8x8x8xf32>
    %50 = vector.extract_strided_slice %7 {offsets = [0, 0, 0, 0], sizes = [1, 8, 8, 8], strides = [1, 1, 1, 1]} : vector<2x8x8x8xf32> to vector<1x8x8x8xf32>
    %51 = vector.shape_cast %50 : vector<1x8x8x8xf32> to vector<8x8x8xf32>
    %52 = vector.shape_cast %51 : vector<8x8x8xf32> to vector<1x8x8x8xf32>
    %53 = arith.addf %49, %52 : vector<1x8x8x8xf32>
    %54 = vector.shape_cast %53 : vector<1x8x8x8xf32> to vector<8x8x8xf32>
    %cst_37 = arith.constant dense<0xFF800000> : vector<8x8xf32>
    %55 = vector.multi_reduction <maximumf>, %54, %cst_37 [2] : vector<8x8x8xf32> to vector<8x8xf32>
    %56 = vector.shape_cast %55 : vector<8x8xf32> to vector<8x8x1xf32>
    %57 = vector.broadcast %56 : vector<8x8x1xf32> to vector<8x8x8xf32>
    %58 = arith.subf %54, %57 : vector<8x8x8xf32>
    %59 = math.exp %58 : vector<8x8x8xf32>
    %cst_38 = arith.constant dense<0.000000e+00> : vector<8x8xf32>
    %60 = vector.multi_reduction <add>, %59, %cst_38 [2] : vector<8x8x8xf32> to vector<8x8xf32>
    %61 = vector.shape_cast %60 : vector<8x8xf32> to vector<8x8x1xf32>
    %62 = tpu.reciprocal %61 {approx = true} : vector<8x8x1xf32> -> vector<8x8x1xf32>
    %63 = vector.broadcast %62 : vector<8x8x1xf32> to vector<8x8x8xf32>
    %64 = arith.mulf %59, %63 : vector<8x8x8xf32>
    %65 = arith.truncf %64 : vector<8x8x8xf32> to vector<8x8x8xbf16>
    %66 = arith.truncf %45 : vector<8x8x16xf32> to vector<8x8x16xbf16>
    "tpu.trace_start"() <{level = 10 : i32, message = "wqk,wkd->wqd"}> : () -> ()
    %cst_39 = arith.constant dense<0.000000e+00> : vector<8x8x16xf32>
    %67 = tpu.matmul %65, %66, %cst_39 {dimension_numbers = #tpu.dot_dimension_numbers<[2], [1], [1], [2], [0, 0, 0, 1, 1, 2], [0], [0]>} : vector<8x8x8xbf16>, vector<8x8x16xbf16>, vector<8x8x16xf32> -> vector<8x8x16xf32>
    "tpu.trace_stop"() : () -> ()
    %68 = vector.shape_cast %67 : vector<8x8x16xf32> to vector<64x16xf32>
    %69 = arith.truncf %68 : vector<64x16xf32> to vector<64x16xbf16>
    %70 = vector.extract_strided_slice %5 {offsets = [0, 0], sizes = [16, 32], strides = [1, 1]} : vector<32x32xbf16> to vector<16x32xbf16>
    %cst_40 = arith.constant dense<0.000000e+00> : vector<64x32xf32>
    %71 = tpu.matmul %69, %70, %cst_40 {dimension_numbers = #tpu.dot_dimension_numbers<[1], [0], [0], [1], [0, 0, 1, 1], [], []>} : vector<64x16xbf16>, vector<16x32xbf16>, vector<64x32xf32> -> vector<64x32xf32>
    %72 = vector.extract_strided_slice %42 {offsets = [0, 0, 16], sizes = [8, 8, 16], strides = [1, 1, 1]} : vector<8x8x96xf32> to vector<8x8x16xf32>
    %73 = vector.extract_strided_slice %42 {offsets = [0, 0, 48], sizes = [8, 8, 16], strides = [1, 1, 1]} : vector<8x8x96xf32> to vector<8x8x16xf32>
    %74 = vector.extract_strided_slice %42 {offsets = [0, 0, 80], sizes = [8, 8, 16], strides = [1, 1, 1]} : vector<8x8x96xf32> to vector<8x8x16xf32>
    %75 = arith.truncf %72 : vector<8x8x16xf32> to vector<8x8x16xbf16>
    %76 = arith.truncf %73 : vector<8x8x16xf32> to vector<8x8x16xbf16>
    "tpu.trace_start"() <{level = 10 : i32, message = "wqd,wkd->wqk"}> : () -> ()
    %cst_41 = arith.constant dense<0.000000e+00> : vector<8x8x8xf32>
    %77 = tpu.matmul %75, %76, %cst_41 {dimension_numbers = #tpu.dot_dimension_numbers<[2], [2], [1], [1], [0, 0, 0, 1, 1, 1], [0], [0]>} : vector<8x8x16xbf16>, vector<8x8x16xbf16>, vector<8x8x8xf32> -> vector<8x8x8xf32>
    "tpu.trace_stop"() : () -> ()
    %78 = vector.shape_cast %77 : vector<8x8x8xf32> to vector<1x8x8x8xf32>
    %79 = vector.extract_strided_slice %7 {offsets = [1, 0, 0, 0], sizes = [1, 8, 8, 8], strides = [1, 1, 1, 1]} : vector<2x8x8x8xf32> to vector<1x8x8x8xf32>
    %80 = vector.shape_cast %79 : vector<1x8x8x8xf32> to vector<8x8x8xf32>
    %81 = vector.shape_cast %80 : vector<8x8x8xf32> to vector<1x8x8x8xf32>
    %82 = arith.addf %78, %81 : vector<1x8x8x8xf32>
    %83 = vector.shape_cast %82 : vector<1x8x8x8xf32> to vector<8x8x8xf32>
    %cst_42 = arith.constant dense<0xFF800000> : vector<8x8xf32>
    %84 = vector.multi_reduction <maximumf>, %83, %cst_42 [2] : vector<8x8x8xf32> to vector<8x8xf32>
    %85 = vector.shape_cast %84 : vector<8x8xf32> to vector<8x8x1xf32>
    %86 = vector.broadcast %85 : vector<8x8x1xf32> to vector<8x8x8xf32>
    %87 = arith.subf %83, %86 : vector<8x8x8xf32>
    %88 = math.exp %87 : vector<8x8x8xf32>
    %cst_43 = arith.constant dense<0.000000e+00> : vector<8x8xf32>
    %89 = vector.multi_reduction <add>, %88, %cst_43 [2] : vector<8x8x8xf32> to vector<8x8xf32>
    %90 = vector.shape_cast %89 : vector<8x8xf32> to vector<8x8x1xf32>
    %91 = tpu.reciprocal %90 {approx = true} : vector<8x8x1xf32> -> vector<8x8x1xf32>
    %92 = vector.broadcast %91 : vector<8x8x1xf32> to vector<8x8x8xf32>
    %93 = arith.mulf %88, %92 : vector<8x8x8xf32>
    %94 = arith.truncf %93 : vector<8x8x8xf32> to vector<8x8x8xbf16>
    %95 = arith.truncf %74 : vector<8x8x16xf32> to vector<8x8x16xbf16>
    "tpu.trace_start"() <{level = 10 : i32, message = "wqk,wkd->wqd"}> : () -> ()
    %cst_44 = arith.constant dense<0.000000e+00> : vector<8x8x16xf32>
    %96 = tpu.matmul %94, %95, %cst_44 {dimension_numbers = #tpu.dot_dimension_numbers<[2], [1], [1], [2], [0, 0, 0, 1, 1, 2], [0], [0]>} : vector<8x8x8xbf16>, vector<8x8x16xbf16>, vector<8x8x16xf32> -> vector<8x8x16xf32>
    "tpu.trace_stop"() : () -> ()
    %97 = vector.shape_cast %96 : vector<8x8x16xf32> to vector<64x16xf32>
    %98 = arith.truncf %97 : vector<64x16xf32> to vector<64x16xbf16>
    %99 = vector.extract_strided_slice %5 {offsets = [16, 0], sizes = [16, 32], strides = [1, 1]} : vector<32x32xbf16> to vector<16x32xbf16>
    %cst_45 = arith.constant dense<0.000000e+00> : vector<64x32xf32>
    %100 = tpu.matmul %98, %99, %cst_45 {dimension_numbers = #tpu.dot_dimension_numbers<[1], [0], [0], [1], [0, 0, 1, 1], [], []>} : vector<64x16xbf16>, vector<16x32xbf16>, vector<64x32xf32> -> vector<64x32xf32>
    %101 = arith.addf %71, %100 : vector<64x32xf32>
    %102 = arith.addf %17, %101 : vector<64x32xf32>
    %103 = vector.broadcast %6 : vector<1x32xf32> to vector<64x32xf32>
    %104 = arith.addf %102, %103 : vector<64x32xf32>
    %cst_46 = arith.constant dense<0.000000e+00> : vector<64xf32>
    %105 = vector.multi_reduction <add>, %104, %cst_46 [1] : vector<64x32xf32> to vector<64xf32>
    %106 = vector.shape_cast %105 : vector<64xf32> to vector<64x1xf32>
    %cst_47 = arith.constant 3.200000e+01 : f32
    %107 = vector.broadcast %cst_47 : f32 to vector<64x1xf32>
    %108 = arith.divf %106, %107 : vector<64x1xf32>
    %109 = vector.broadcast %108 : vector<64x1xf32> to vector<64x32xf32>
    %110 = arith.subf %104, %109 : vector<64x32xf32>
    %111 = arith.mulf %110, %110 : vector<64x32xf32>
    %cst_48 = arith.constant dense<0.000000e+00> : vector<64xf32>
    %112 = vector.multi_reduction <add>, %111, %cst_48 [1] : vector<64x32xf32> to vector<64xf32>
    %113 = vector.shape_cast %112 : vector<64xf32> to vector<64x1xf32>
    %cst_49 = arith.constant 3.200000e+01 : f32
    %114 = vector.broadcast %cst_49 : f32 to vector<64x1xf32>
    %115 = arith.divf %113, %114 : vector<64x1xf32>
    %116 = vector.broadcast %108 : vector<64x1xf32> to vector<64x32xf32>
    %117 = arith.subf %104, %116 : vector<64x32xf32>
    %cst_50 = arith.constant 9.99999974E-6 : f32
    %118 = vector.broadcast %cst_50 : f32 to vector<64x1xf32>
    %119 = arith.addf %115, %118 : vector<64x1xf32>
    %120 = math.rsqrt %119 : vector<64x1xf32>
    %121 = vector.broadcast %120 : vector<64x1xf32> to vector<64x32xf32>
    %122 = arith.mulf %117, %121 : vector<64x32xf32>
    %123 = vector.broadcast %8 : vector<1x32xf32> to vector<64x32xf32>
    %124 = arith.mulf %122, %123 : vector<64x32xf32>
    %125 = vector.broadcast %9 : vector<1x32xf32> to vector<64x32xf32>
    %126 = arith.addf %124, %125 : vector<64x32xf32>
    %127 = arith.truncf %126 : vector<64x32xf32> to vector<64x32xbf16>
    %cst_51 = arith.constant dense<0.000000e+00> : vector<64x128xf32>
    %128 = tpu.matmul %127, %10, %cst_51 {dimension_numbers = #tpu.dot_dimension_numbers<[1], [0], [0], [1], [0, 0, 1, 1], [], []>} : vector<64x32xbf16>, vector<32x128xbf16>, vector<64x128xf32> -> vector<64x128xf32>
    %129 = vector.broadcast %11 : vector<1x128xf32> to vector<64x128xf32>
    %130 = arith.addf %128, %129 : vector<64x128xf32>
    %131 = arith.mulf %130, %130 : vector<64x128xf32>
    %132 = arith.mulf %130, %131 : vector<64x128xf32>
    %cst_52 = arith.constant 4.471500e-02 : f32
    %133 = vector.broadcast %cst_52 : f32 to vector<64x128xf32>
    %134 = arith.mulf %133, %132 : vector<64x128xf32>
    %135 = arith.addf %130, %134 : vector<64x128xf32>
    %cst_53 = arith.constant 0.797884583 : f32
    %136 = vector.broadcast %cst_53 : f32 to vector<64x128xf32>
    %137 = arith.mulf %136, %135 : vector<64x128xf32>
    %138 = math.tanh %137 : vector<64x128xf32>
    %cst_54 = arith.constant 1.000000e+00 : f32
    %139 = vector.broadcast %cst_54 : f32 to vector<64x128xf32>
    %140 = arith.addf %139, %138 : vector<64x128xf32>
    %cst_55 = arith.constant 5.000000e-01 : f32
    %141 = vector.broadcast %cst_55 : f32 to vector<64x128xf32>
    %142 = arith.mulf %141, %140 : vector<64x128xf32>
    %143 = arith.mulf %130, %142 : vector<64x128xf32>
    %144 = arith.truncf %143 : vector<64x128xf32> to vector<64x128xbf16>
    %cst_56 = arith.constant dense<0.000000e+00> : vector<64x32xf32>
    %145 = tpu.matmul %144, %12, %cst_56 {dimension_numbers = #tpu.dot_dimension_numbers<[1], [0], [0], [1], [0, 0, 1, 1], [], []>} : vector<64x128xbf16>, vector<128x32xbf16>, vector<64x32xf32> -> vector<64x32xf32>
    %146 = arith.addf %104, %145 : vector<64x32xf32>
    %147 = vector.broadcast %13 : vector<1x32xf32> to vector<64x32xf32>
    %148 = arith.addf %146, %147 : vector<64x32xf32>
    %149 = vector.shape_cast %148 : vector<64x32xf32> to vector<8x8x32xf32>
    %150 = arith.truncf %149 : vector<8x8x32xf32> to vector<8x8x32xbf16>
    %c0_57 = arith.constant 0 : index
    %c0_58 = arith.constant 0 : index
    %c0_59 = arith.constant 0 : index
    %151 = vector.load %arg15[%c0_57, %c0_58, %c0_59] : memref<8x8x32xbf16, #tpu.memory_space<vmem>>, vector<8x8x32xbf16>
    tpu.vector_store %arg15[%c0_57, %c0_58, %c0_59], %150 {strides = array<i32>} : memref<8x8x32xbf16, #tpu.memory_space<vmem>>, vector<8x8x32xbf16>,
    return
  }
  func.func @transform_0(%arg0: i32) -> (i32, i32, i32) {
    %c0_i32 = arith.constant 0 : i32
    %c0_i32_0 = arith.constant 0 : i32
    %c0_i32_1 = arith.constant 0 : i32
    return %arg0, %c0_i32, %c0_i32_0 : i32, i32, i32
  }
  func.func @transform_1(%arg0: i32) -> (i32, i32, i32) {
    %c0_i32 = arith.constant 0 : i32
    %c0_i32_0 = arith.constant 0 : i32
    %c0_i32_1 = arith.constant 0 : i32
    return %arg0, %c0_i32, %c0_i32_0 : i32, i32, i32
  }
  func.func @transform_2(%arg0: i32) -> (i32, i32) {
    %c0_i32 = arith.constant 0 : i32
    %c0_i32_0 = arith.constant 0 : i32
    %c0_i32_1 = arith.constant 0 : i32
    return %c0_i32, %c0_i32_0 : i32, i32
  }
  func.func @transform_3(%arg0: i32) -> (i32, i32) {
    %c0_i32 = arith.constant 0 : i32
    %c0_i32_0 = arith.constant 0 : i32
    %c0_i32_1 = arith.constant 0 : i32
    return %c0_i32, %c0_i32_0 : i32, i32
  }
  func.func @transform_4(%arg0: i32) -> (i32, i32) {
    %c0_i32 = arith.constant 0 : i32
    %c0_i32_0 = arith.constant 0 : i32
    %c0_i32_1 = arith.constant 0 : i32
    return %c0_i32, %c0_i32_0 : i32, i32
  }
  func.func @transform_5(%arg0: i32) -> (i32, i32) {
    %c0_i32 = arith.constant 0 : i32
    %c0_i32_0 = arith.constant 0 : i32
    %c0_i32_1 = arith.constant 0 : i32
    return %c0_i32, %c0_i32_0 : i32, i32
  }
  func.func @transform_6(%arg0: i32) -> (i32, i32) {
    %c0_i32 = arith.constant 0 : i32
    %c0_i32_0 = arith.constant 0 : i32
    %c0_i32_1 = arith.constant 0 : i32
    return %c0_i32, %c0_i32_0 : i32, i32
  }
  func.func @transform_7(%arg0: i32) -> (i32, i32, i32, i32) {
    %c0_i32 = arith.constant 0 : i32
    %c0_i32_0 = arith.constant 0 : i32
    %c0_i32_1 = arith.constant 0 : i32
    %c0_i32_2 = arith.constant 0 : i32
    %c0_i32_3 = arith.constant 0 : i32
    return %c0_i32, %c0_i32_0, %c0_i32_1, %c0_i32_2 : i32, i32, i32, i32
  }
  func.func @transform_8(%arg0: i32) -> (i32, i32) {
    %c0_i32 = arith.constant 0 : i32
    %c0_i32_0 = arith.constant 0 : i32
    %c0_i32_1 = arith.constant 0 : i32
    return %c0_i32, %c0_i32_0 : i32, i32
  }
  func.func @transform_9(%arg0: i32) -> (i32, i32) {
    %c0_i32 = arith.constant 0 : i32
    %c0_i32_0 = arith.constant 0 : i32
    %c0_i32_1 = arith.constant 0 : i32
    return %c0_i32, %c0_i32_0 : i32, i32
  }
  func.func @transform_10(%arg0: i32) -> (i32, i32) {
    %c0_i32 = arith.constant 0 : i32
    %c0_i32_0 = arith.constant 0 : i32
    %c0_i32_1 = arith.constant 0 : i32
    return %c0_i32, %c0_i32_0 : i32, i32
  }
  func.func @transform_11(%arg0: i32) -> (i32, i32) {
    %c0_i32 = arith.constant 0 : i32
    %c0_i32_0 = arith.constant 0 : i32
    %c0_i32_1 = arith.constant 0 : i32
    return %c0_i32, %c0_i32_0 : i32, i32
  }
  func.func @transform_12(%arg0: i32) -> (i32, i32) {
    %c0_i32 = arith.constant 0 : i32
    %c0_i32_0 = arith.constant 0 : i32
    %c0_i32_1 = arith.constant 0 : i32
    return %c0_i32, %c0_i32_0 : i32, i32
  }
  func.func @transform_13(%arg0: i32) -> (i32, i32) {
    %c0_i32 = arith.constant 0 : i32
    %c0_i32_0 = arith.constant 0 : i32
    %c0_i32_1 = arith.constant 0 : i32
    return %c0_i32, %c0_i32_0 : i32, i32
  }
  func.func @transform_14(%arg0: i32) -> (i32, i32, i32) {
    %c0_i32 = arith.constant 0 : i32
    %c0_i32_0 = arith.constant 0 : i32
    %c0_i32_1 = arith.constant 0 : i32
    return %arg0, %c0_i32, %c0_i32_0 : i32, i32, i32
  }
}

</mosaic_0001>

<bundles_post_ra>
// kernel: stage_module_forward.3
= control target key start
LH: loop header
LB: loop body
LE: loop exit
PB: predicated region body
PF: predicated region fallthrough
CT: control target
= control target key end

     0   :  { %s710_s18 = smov 0   ;;  %s905_s0 = inlined_call_operand.vmem [shape: bf16[128,32], index: 0, kind: input, shape index: {}]   ;;  %s906_s1 = inlined_call_operand.vmem [shape: f32[1,32], index: 1, kind: input, shape index: {}]   ;;  %s907_s2 = inlined_call_operand.vmem [shape: f32[1,32], index: 2, kind: input, shape index: {}]   ;;  %s908_s3 = inlined_call_operand.vmem [shape: bf16[32,32], index: 3, kind: input, shape index: {}]   ;;  %s909_s4 = inlined_call_operand.vmem [shape: f32[1,32], index: 4, kind: input, shape index: {}]   ;;  %s910_s5 = inlined_call_operand.vmem [shape: bf16[128,32], index: 5, kind: output, shape index: {}]  }
   0x1 LB: > { %s591_s19 = sadd.s32 4294967295, %s677_s18   ;;  %p595_p0 = scmp.ge.s32.totalorder %s677_s18, 1  ;;  %s677_s18 = sphi %s710_s18, %s15_s18  }
   0x2   : > { %p188_p1 = scmp.lt.s32.totalorder %s677_s18, 3 }
   0x4   : > { %p189_p2 = pnand %p595_p0, %p188_p1 }
   0x5   : > { %s596_s20 = sshll.u32 (!%p189_p2), %s591_s19, 3 }
   0x6   : > { %192 = sbr.rel (%p189_p2) target bundleno = 451 (0x1c3), region = 40  ;;  %p217_p3 = scmp.lt.s32.totalorder (!%p189_p2), %s596_s20, 15 }
   0xb   : > { %s918_s20 = smov (!%p217_p3, %s596_s20), 15  ;;  %vm247_vm0 = vcmask 261120   ;;  %v679_v20 = vmov 32.0  }
   0xc   : > { %s597_s21 = sshll.u32 %s918_s20, 2  ;;  %653 = vrcp.f32 %v679_v20 }
   0xd   : > { %s220_s24 = scalar_lea.vmem %s905_s0, %s597_s21  ;;  %s884_s12 = scalar_lea.vmem %s910_s5, %s597_s21 }
   0xe   : > { %v634_v0 = vld [vmem:[%s220_s24 + $0x18] sm:$0xff]   ;;  %v633_v1 = vld [vmem:[%s220_s24 + $0x10] sm:$0xff]   ;;  %v617_v2 = vld [vmem:[%s220_s24] sm:$0xff]  }
   0xf   : > { %v630_v3 = vunpack.c.l.bf16 %v634_v0  ;;  %v626_v4 = vunpack.c.l.bf16 %v633_v1  ;;  %v618_v5 = vunpack.c.l.bf16 %v617_v2  ;;  %v631_v9 = vunpack.c.h.bf16 %v634_v0  ;;  %v632_v15 = vld [vmem:[%s220_s24 + $0x8] sm:$0xff]  }
  0x10   : > { %v627_v10 = vunpack.c.h.bf16 %v633_v1  ;;  %v619_v11 = vunpack.c.h.bf16 %v617_v2  ;;  %v622_v16 = vunpack.c.l.bf16 %v632_v15  ;;  %v623_v17 = vunpack.c.h.bf16 %v632_v15 }
  0x11   : > { %v266_v6 = vsel %vm247_vm0, %v630_v3, 0.0  ;;  %v260_v7 = vsel %vm247_vm0, %v626_v4, 0.0  ;;  %v248_v8 = vsel %vm247_vm0, %v618_v5, 0.0  ;;  %v269_v12 = vsel %vm247_vm0, %v631_v9, 0.0 }
  0x12   : > { %267 = vadd.xlane.f32.xlu1 %v266_v6  ;;  %261 = vadd.xlane.f32.xlu0 %v260_v7  ;;  %v263_v13 = vsel %vm247_vm0, %v627_v10, 0.0  ;;  %v251_v14 = vsel %vm247_vm0, %v619_v11, 0.0  ;;  %v254_v18 = vsel %vm247_vm0, %v622_v16, 0.0  ;;  %v257_v19 = vsel %vm247_vm0, %v623_v17, 0.0  ;;  %v654_v21 = vpop.eup %653  ;;  %v615_v7 = vld [vmem:[%s908_s3 + $0x8] sm:$0xff] }
  0x13   : > { %249 = vadd.xlane.f32.xlu2 %v248_v8  ;;  %v273_v22 = vmul.f32 32.0, %v654_v21  ;;  %vm277_vm1 = vweird.f32 %v654_v21  ;;  %636 = vmatpush.bf16.msra.mxu2 %v615_v7 }
  0x14   : > { %637 = vmatpush.bf16.msra.mxu3 %v615_v7  ;;  %495 = vmatpush.bf16.msra.mxu0 %v615_v7 }
  0x15   : > { %v274_v23 = vsub.f32 1.0, %v273_v22  ;;  %635 = vmatpush.bf16.msra.mxu1 %v615_v7 }
  0x17   : > { %v275_v24 = vmul.f32 %v654_v21, %v274_v23 }
  0x19   : > { %v276_v25 = vadd.f32 %v654_v21, %v275_v24 }
  0x1a   : > { %270 = vadd.xlane.f32.xlu1 %v269_v12  ;;  %264 = vadd.xlane.f32.xlu0 %v263_v13 }
  0x1b   : > { %252 = vadd.xlane.f32.xlu2 %v251_v14  ;;  %v734_v26 = vsel %vm277_vm1, %v654_v21, %v276_v25 }
  0x22   : > { %255 = vadd.xlane.f32.xlu0 %v254_v18  ;;  %258 = vadd.xlane.f32.xlu1 %v257_v19 }
  0x85   : > { %v268_v27 = vpop.xlane.xlu1 %267  ;;  %v262_v28 = vpop.xlane.xlu0 %261 }
  0x86   : > { %v285_v29 = vmul.f32 %v734_v26, %v268_v27  ;;  %v283_v30 = vmul.f32 %v734_v26, %v262_v28  ;;  %v250_v31 = vpop.xlane.xlu2 %249 }
  0x87   : > { %v279_v40 = vmul.f32 %v734_v26, %v250_v31 }
  0x88   : > { %v738_v32 = vsub.f32 %v630_v3, %v285_v29  ;;  %v740_v33 = vsub.f32 %v626_v4, %v283_v30 }
  0x89   : > { %v758_v48 = vsub.f32 %v618_v5, %v279_v40 }
  0x8a   : > { %v301_v34 = vmul.f32 %v738_v32, %v738_v32  ;;  %v299_v35 = vmul.f32 %v740_v33, %v740_v33 }
  0x8b   : > { %v295_v59 = vmul.f32 %v758_v48, %v758_v48 }
  0x8c   : > { %v321_v36 = vsel %vm247_vm0, %v301_v34, 0.0  ;;  %v315_v37 = vsel %vm247_vm0, %v299_v35, 0.0 }
  0x8d   : > { %v271_v38 = vpop.xlane.xlu1 %270  ;;  %v265_v39 = vpop.xlane.xlu0 %264  ;;  %322 = vadd.xlane.f32.xlu1 %v321_v36  ;;  %316 = vadd.xlane.f32.xlu2 %v315_v37  ;;  %v303_v63 = vsel %vm247_vm0, %v295_v59, 0.0 }
  0x8e   : > { %v286_v41 = vmul.f32 %v734_v26, %v271_v38  ;;  %v284_v42 = vmul.f32 %v734_v26, %v265_v39  ;;  %v253_v43 = vpop.xlane.xlu2 %252 }
  0x8f   : > { %v280_v44 = vmul.f32 %v734_v26, %v253_v43 }
  0x90   : > { %v752_v45 = vsub.f32 %v631_v9, %v286_v41  ;;  %v754_v46 = vsub.f32 %v627_v10, %v284_v42  ;;  %v614_v10 = vld [vmem:[%s908_s3] sm:$0xff] }
  0x91   : > { %v756_v47 = vsub.f32 %v619_v11, %v280_v44  ;;  %639 = vmatpush.bf16.msra.mxu2 %v614_v10  ;;  %640 = vmatpush.bf16.msra.mxu3 %v614_v10 }
  0x92   : > { %v300_v49 = vmul.f32 %v754_v46, %v754_v46  ;;  %v302_v50 = vmul.f32 %v752_v45, %v752_v45  ;;  %496 = vmatpush.bf16.msra.mxu0 %v614_v10  ;;  %638 = vmatpush.bf16.msra.mxu1 %v614_v10 }
  0x93   : > { %v296_v51 = vmul.f32 %v756_v47, %v756_v47 }
  0x94   : > { %v318_v52 = vsel %vm247_vm0, %v300_v49, 0.0  ;;  %v324_v53 = vsel %vm247_vm0, %v302_v50, 0.0 }
  0x95   : > { %319 = vadd.xlane.f32.xlu0 %v318_v52  ;;  %v256_v54 = vpop.xlane.xlu0 %255  ;;  %325 = vadd.xlane.f32.xlu2 %v324_v53  ;;  %v306_v55 = vsel %vm247_vm0, %v296_v51, 0.0  ;;  %v259_v56 = vpop.xlane.xlu1 %258 }
  0x96   : > { %v281_v57 = vmul.f32 %v734_v26, %v256_v54  ;;  %307 = vadd.xlane.f32.xlu1 %v306_v55  ;;  %v282_v58 = vmul.f32 %v734_v26, %v259_v56 }
  0x98   : > { %v773_v60 = vsub.f32 %v622_v16, %v281_v57  ;;  %v775_v61 = vsub.f32 %v623_v17, %v282_v58 }
  0x9a   : > { %v297_v62 = vmul.f32 %v773_v60, %v773_v60  ;;  %v298_v1 = vmul.f32 %v775_v61, %v775_v61 }
  0x9c   : > { %v309_v0 = vsel %vm247_vm0, %v297_v62, 0.0  ;;  %v312_v2 = vsel %vm247_vm0, %v298_v1, 0.0 }
  0x9d   : > { %310 = vadd.xlane.f32.xlu2 %v309_v0  ;;  %304 = vadd.xlane.f32.xlu0 %v303_v63 }
  0xa5   : > { %313 = vadd.xlane.f32.xlu0 %v312_v2 }
 0x100   : > { %v323_v3 = vpop.xlane.xlu1 %322  ;;  %v317_v4 = vpop.xlane.xlu2 %316 }
 0x101   : > { %v333_v5 = vmul.f32 %v323_v3, %v734_v26  ;;  %v331_v6 = vmul.f32 %v317_v4, %v734_v26  ;;  %v831_v3 = vld [vmem:[%s906_s1] ss:$0 sm:$0xff] }
 0x103   : > { %v341_v8 = vadd.f32 1e-05, %v333_v5  ;;  %v339_v9 = vadd.f32 1e-05, %v331_v6 }
 0x105   : > { %655 = vrsqrt.f32 %v341_v8  ;;  %vm409_vm2 = vweird.f32 %v341_v8  ;;  %vm389_vm5 = vweird.f32 %v339_v9 }
 0x106   : > { %657 = vrsqrt.f32 %v339_v9 }
 0x108   : > { %v320_v11 = vpop.xlane.xlu0 %319  ;;  %v326_v12 = vpop.xlane.xlu2 %325 }
 0x109   : > { %v332_v13 = vmul.f32 %v320_v11, %v734_v26  ;;  %v308_v14 = vpop.xlane.xlu1 %307  ;;  %v334_v15 = vmul.f32 %v326_v12, %v734_v26 }
 0x10a   : > { %v328_v16 = vmul.f32 %v308_v14, %v734_v26 }
 0x10b   : > { %v656_v17 = vpop.eup %655  ;;  %v340_v18 = vadd.f32 1e-05, %v332_v13  ;;  %v795_v19 = vadd.f32 1e-05, %v334_v15  ;;  %v651_v15 = vld [vmem:[%s907_s2] ss:$0 sm:$0xff] }
 0x10c   : > { %v658_v20 = vpop.eup %657  ;;  %v404_v21 = vmul.f32 %v656_v17, %v341_v8  ;;  %v336_v22 = vadd.f32 1e-05, %v328_v16  ;;  %vm410_vm4 = vweird.f32 %v656_v17 }
 0x10d   : > { %v384_v23 = vmul.f32 %v658_v20, %v339_v9  ;;  %659 = vrsqrt.f32 %v340_v18  ;;  %vm390_vm3 = vweird.f32 %v658_v20  ;;  %vm399_vm7 = vweird.f32 %v340_v18  ;;  %vm818_vm8 = vmor %vm409_vm2, %vm410_vm4 }
 0x10e   : > { %v405_v24 = vmul.f32 %v656_v17, %v404_v21  ;;  %661 = vrsqrt.f32 %v336_v22  ;;  %vm808_vm6 = vmor %vm389_vm5, %vm390_vm3  ;;  %vm359_vm9 = vweird.f32 %v336_v22  ;;  %vm419_vm12 = vweird.f32 %v795_v19 }
 0x10f   : > { %v385_v25 = vmul.f32 %v658_v20, %v384_v23  ;;  %663 = vrsqrt.f32 %v795_v19 }
 0x110   : > { %v406_v27 = vmul.f32 0.5, %v405_v24  ;;  %v305_v28 = vpop.xlane.xlu0 %304  ;;  %v311_v29 = vpop.xlane.xlu2 %310 }
 0x111   : > { %v386_v30 = vmul.f32 0.5, %v385_v25  ;;  %v327_v31 = vmul.f32 %v305_v28, %v734_v26  ;;  %v329_v34 = vmul.f32 %v311_v29, %v734_v26 }
 0x112   : > { %v407_v35 = vsub.f32 1.5, %v406_v27 }
 0x113   : > { %v660_v36 = vpop.eup %659  ;;  %v387_v37 = vsub.f32 1.5, %v386_v30  ;;  %v800_v38 = vadd.f32 1e-05, %v327_v31  ;;  %v804_v41 = vadd.f32 1e-05, %v329_v34 }
 0x114   : > { %v802_v39 = vpop.eup %661  ;;  %v394_v40 = vmul.f32 %v660_v36, %v340_v18  ;;  %v408_v43 = vmul.f32 %v656_v17, %v407_v35  ;;  %vm400_vm10 = vweird.f32 %v660_v36 }
 0x115   : > { %v664_v42 = vpop.eup %663  ;;  %v388_v44 = vmul.f32 %v658_v20, %v387_v37  ;;  %v354_v49 = vmul.f32 %v802_v39, %v336_v22  ;;  %665 = vrsqrt.f32 %v800_v38  ;;  %vm360_vm11 = vweird.f32 %v802_v39  ;;  %vm401_vm14 = vmor %vm399_vm7, %vm400_vm10 }
 0x116   : > { %v395_v51 = vmul.f32 %v660_v36, %v394_v40  ;;  %v414_v52 = vmul.f32 %v664_v42, %v795_v19  ;;  %667 = vrsqrt.f32 %v804_v41  ;;  %v412_v59 = vsel %vm818_vm8, %v656_v17, %v408_v43  ;;  %vm840_vm15 = vmor %vm359_vm9, %vm360_vm11 }
 0x117   : > { %v392_v53 = vsel %vm808_vm6, %v658_v20, %v388_v44  ;;  %v355_v54 = vmul.f32 %v802_v39, %v354_v49  ;;  %vm420_vm13 = vweird.f32 %v664_v42  ;;  %v429_v7 = vmul.f32 %v412_v59, %v738_v32 }
 0x118   : > { %v396_v56 = vmul.f32 0.5, %v395_v51  ;;  %v415_v57 = vmul.f32 %v664_v42, %v414_v52  ;;  %v314_v58 = vpop.xlane.xlu0 %313  ;;  %v427_v0 = vmul.f32 %v392_v53, %v740_v33  ;;  %vm421_vm1 = vmor %vm419_vm12, %vm420_vm13  ;;  %vm349_vm2 = vweird.f32 %v800_v38 }
 0x119   : > { %v356_v62 = vmul.f32 0.5, %v355_v54  ;;  %v330_v63 = vmul.f32 %v314_v58, %v734_v26  ;;  %v440_v22 = vmul.f32 %v831_v3, %v429_v7  ;;  %vm369_vm4 = vweird.f32 %v804_v41 }
 0x11a   : > { %v397_v1 = vsub.f32 1.5, %v396_v56  ;;  %v416_v2 = vmul.f32 0.5, %v415_v57  ;;  %v438_v32 = vmul.f32 %v831_v3, %v427_v0  ;;  %vm526_vm11 = vcmask 257024  }
 0x11b   : > { %v666_v4 = vpop.eup %665  ;;  %v357_v5 = vsub.f32 1.5, %v356_v62  ;;  %v338_v6 = vadd.f32 1e-05, %v330_v63 }
 0x11c   : > { %v398_v26 = vmul.f32 %v660_v36, %v397_v1  ;;  %v417_v33 = vsub.f32 1.5, %v416_v2  ;;  %v344_v8 = vmul.f32 %v666_v4, %v800_v38  ;;  %v668_v11 = vpop.eup %667  ;;  %vm350_vm3 = vweird.f32 %v666_v4 }
 0x11d   : > { %v358_v9 = vmul.f32 %v802_v39, %v357_v5  ;;  %669 = vrsqrt.f32 %v338_v6  ;;  %v364_v17 = vmul.f32 %v668_v11, %v804_v41  ;;  %v449_v19 = vadd.f32 %v651_v15, %v438_v32  ;;  %vm351_vm5 = vmor %vm349_vm2, %vm350_vm3 }
 0x11e   : > { %v402_v12 = vsel %vm401_vm14, %v660_v36, %v398_v26  ;;  %v418_v13 = vmul.f32 %v664_v42, %v417_v33  ;;  %v345_v14 = vmul.f32 %v666_v4, %v344_v8  ;;  %vm370_vm6 = vweird.f32 %v668_v11 }
 0x11f   : > { %v428_v16 = vmul.f32 %v402_v12, %v754_v46  ;;  %v362_v18 = vsel %vm840_vm15, %v802_v39, %v358_v9  ;;  %v365_v24 = vmul.f32 %v668_v11, %v364_v17  ;;  %vm371_vm7 = vmor %vm369_vm4, %vm370_vm6  ;;  %vm379_vm9 = vweird.f32 %v338_v6 }
 0x120   : > { %v422_v20 = vsel %vm421_vm1, %v664_v42, %v418_v13  ;;  %v346_v21 = vmul.f32 0.5, %v345_v14  ;;  %v424_v28 = vmul.f32 %v362_v18, %v756_v47 }
 0x121   : > { %v430_v23 = vmul.f32 %v422_v20, %v752_v45  ;;  %v439_v25 = vmul.f32 %v831_v3, %v428_v16  ;;  %v366_v29 = vmul.f32 0.5, %v365_v24  ;;  %v451_v45 = vadd.f32 %v651_v15, %v440_v22 }
 0x122   : > { %v347_v46 = vsub.f32 1.5, %v346_v21  ;;  %v435_v44 = vmul.f32 %v831_v3, %v424_v28 }
 0x123   : > { %v670_v27 = vpop.eup %669  ;;  %v450_v30 = vadd.f32 %v651_v15, %v439_v25  ;;  %v441_v31 = vmul.f32 %v831_v3, %v430_v23  ;;  %v367_v36 = vsub.f32 1.5, %v366_v29 }
 0x124   : > { %v348_v34 = vmul.f32 %v666_v4, %v347_v46  ;;  %v374_v35 = vmul.f32 %v670_v27, %v338_v6  ;;  %vm380_vm8 = vweird.f32 %v670_v27  ;;  %v446_v54 = vadd.f32 %v651_v15, %v435_v44 }
 0x125   : > { %v455_v37 = vpack.c.bf16 %v450_v30, %v449_v19  ;;  %v452_v39 = vadd.f32 %v651_v15, %v441_v31  ;;  %v368_v43 = vmul.f32 %v668_v11, %v367_v36  ;;  %vm381_vm10 = vmor %vm379_vm9, %vm380_vm8 }
 0x126   : > { %v352_v38 = vsel %vm351_vm5, %v666_v4, %v348_v34  ;;  %v375_v40 = vmul.f32 %v670_v27, %v374_v35 }
 0x127   : > { %v423_v42 = vmul.f32 %v352_v38, %v758_v48  ;;  %610 = vmatmul.msk.bf16.vlgmr.msra.gmra.mxu2 %vm247_vm0, %v455_v37  ;;  %v456_v47 = vpack.c.bf16 %v452_v39, %v451_v45  ;;  %v372_v50 = vsel %vm371_vm7, %v668_v11, %v368_v43 }
 0x128   : > { %v376_v49 = vmul.f32 0.5, %v375_v40  ;;  %v425_v53 = vmul.f32 %v372_v50, %v773_v60  ;;  %v652_v60 = vld [vmem:[%s909_s4] ss:$0 sm:$0xff] }
 0x129   : > { %611 = vmatmul.msk.bf16.vlgmr.msra.gmra.mxu3 %vm247_vm0, %v456_v47  ;;  %v434_v51 = vmul.f32 %v831_v3, %v423_v42 }
 0x12a   : > { %v377_v52 = vsub.f32 1.5, %v376_v49  ;;  %v436_v58 = vmul.f32 %v831_v3, %v425_v53 }
 0x12b   : > { %v445_v48 = vadd.f32 %v651_v15, %v434_v51 }
 0x12c   : > { %v378_v55 = vmul.f32 %v670_v27, %v377_v52  ;;  %v447_v62 = vadd.f32 %v651_v15, %v436_v58 }
 0x12d   : > { %v453_v56 = vpack.c.bf16 %v446_v54, %v445_v48 }
 0x12e   : > { %v382_v57 = vsel %vm381_vm10, %v670_v27, %v378_v55 }
 0x12f   : > { %v426_v41 = vmul.f32 %v382_v57, %v775_v61  ;;  %608 = vmatmul.msk.bf16.vlgmr.msra.gmra.mxu0 %vm247_vm0, %v453_v56 }
 0x131   : > { %v437_v59 = vmul.f32 %v831_v3, %v426_v41 }
 0x133   : > { %v448_v63 = vadd.f32 %v651_v15, %v437_v59 }
 0x135   : > { %v454_v0 = vpack.c.bf16 %v448_v63, %v447_v62 }
 0x137   : > { %609 = vmatmul.msk.bf16.vlgmr.msra.gmra.mxu1 %vm247_vm0, %v454_v0 }
 0x1aa   : > { %v508_v1 = vpop.f32.mrf.mxu2 }
 0x1ab   : > { %v509_v2 = vadd.f32 %v652_v60, %v508_v1 }
 0x1ac   : > { %v513_v61 = vpop.f32.mrf.mxu3  ;;  %v498_v3 = vpop.f32.mrf.mxu0 }
 0x1ad   : > { %v522_v4 = vpack.c.bf16 %v509_v2, %v509_v2  ;;  %v514_v5 = vadd.f32 %v652_v60, %v513_v61  ;;  %v499_v6 = vadd.f32 %v652_v60, %v498_v3 }
 0x1af   : > { %531 = vst.msk [vmem:[%s884_s12 + $0x10] sm:$0xf] %vm526_vm11, %v522_v4  ;;  %v524_v7 = vpack.c.bf16 %v514_v5, %v514_v5  ;;  %v518_v26 = vpack.c.bf16 %v499_v6, %v499_v6 }
 0x1b1   : > { %533 = vst.msk [vmem:[%s884_s12 + $0x18] sm:$0xf] %vm526_vm11, %v524_v7 }
 0x1b2   : > { %527 = vst.msk [vmem:[%s884_s12] sm:$0xf] %vm526_vm11, %v518_v26  ;;  %v510_v33 = vpop.f32.mrf.mxu2 }
 0x1b3   : > { %v511_v8 = vadd.f32 %v652_v60, %v510_v33 }
 0x1b4   : > { %v515_v9 = vpop.f32.mrf.mxu3  ;;  %v500_v10 = vpop.f32.mrf.mxu0 }
 0x1b5   : > { %v523_v11 = vpack.c.bf16 %v511_v8, %v511_v8  ;;  %v516_v12 = vadd.f32 %v652_v60, %v515_v9  ;;  %v501_v13 = vadd.f32 %v652_v60, %v500_v10  ;;  %v503_v14 = vpop.f32.mrf.mxu1 }
 0x1b6   : > { %v504_v32 = vadd.f32 %v652_v60, %v503_v14 }
 0x1b7   : > { %532 = vst.msk [vmem:[%s884_s12 + $0x14] sm:$0xf] %vm526_vm11, %v523_v11  ;;  %v525_v15 = vpack.c.bf16 %v516_v12, %v516_v12  ;;  %v519_v16 = vpack.c.bf16 %v501_v13, %v501_v13 }
 0x1b8   : > { %v520_v17 = vpack.c.bf16 %v504_v32, %v504_v32 }
 0x1b9   : > { %534 = vst.msk [vmem:[%s884_s12 + $0x1c] sm:$0xf] %vm526_vm11, %v525_v15 }
 0x1ba   : > { %528 = vst.msk [vmem:[%s884_s12 + $0x4] sm:$0xf] %vm526_vm11, %v519_v16 }
 0x1bb   : > { %529 = vst.msk [vmem:[%s884_s12 + $0x8] sm:$0xf] %vm526_vm11, %v520_v17 }
 0x1bd   : > { %v505_v18 = vpop.f32.mrf.mxu1 }
 0x1be   : > { %v506_v20 = vadd.f32 %v652_v60, %v505_v18 }
 0x1c0   : > { %v521_v21 = vpack.c.bf16 %v506_v20, %v506_v20 }
 0x1c2   : > { %530 = vst.msk [vmem:[%s884_s12 + $0xc] sm:$0xf] %vm526_vm11, %v521_v21 }
 0x1c3 PF: > { %s15_s18 = sadd.s32 1, %s677_s18  }
 0x1c4   : > { %p12_p4 = scmp.ge.s32.totalorder %s15_s18, 4  }
 0x1c6   :  { %14 = sbr.rel (!%p12_p4) target bundleno = 1 (0x1), region = 70 }

// kernel: stage_module_forward.4
= control target key start
LH: loop header
LB: loop body
LE: loop exit
PB: predicated region body
PF: predicated region fallthrough
CT: control target
= control target key end

     0   :  { %s2667_s25 = smov 0   ;;  %s3380_s0 = inlined_call_operand.vmem [shape: bf16[16,8,32], index: 0, kind: input, shape index: {}]   ;;  %s3381_s1 = inlined_call_operand.vmem [shape: f32[1,32], index: 1, kind: input, shape index: {}]   ;;  %s3382_s2 = inlined_call_operand.vmem [shape: f32[1,32], index: 2, kind: input, shape index: {}]   ;;  %s3383_s3 = inlined_call_operand.vmem [shape: bf16[32,96], index: 3, kind: input, shape index: {}]   ;;  %s3384_s4 = inlined_call_operand.vmem [shape: bf16[32,32], index: 4, kind: input, shape index: {}]   ;;  %s3385_s5 = inlined_call_operand.vmem [shape: f32[1,32], index: 5, kind: input, shape index: {}]   ;;  %s3386_s6 = inlined_call_operand.vmem [shape: f32[2,8,8], index: 6, kind: input, shape index: {}]   ;;  %s3387_s7 = inlined_call_operand.vmem [shape: f32[1,32], index: 7, kind: input, shape index: {}]   ;;  %s3388_s8 = inlined_call_operand.vmem [shape: f32[1,32], index: 8, kind: input, shape index: {}]   ;;  %s3389_s9 = inlined_call_operand.vmem [shape: bf16[32,128], index: 9, kind: input, shape index: {}]   ;;  %s3390_s10 = inlined_call_operand.vmem [shape: f32[1,128], index: 10, kind: input, shape index: {}]   ;;  %s3391_s11 = inlined_call_operand.vmem [shape: bf16[128,32], index: 11, kind: input, shape index: {}]   ;;  %s3392_s12 = inlined_call_operand.vmem [shape: f32[1,32], index: 12, kind: input, shape index: {}]   ;;  %s3393_s13 = inlined_call_operand.vmem [shape: bf16[16,8,32], index: 13, kind: output, shape index: {}]  }
   0x1 LB: > { %s2300_s26 = sadd.s32 4294967295, %s2589_s25   ;;  %p2304_p0 = scmp.ge.s32.totalorder %s2589_s25, 1  ;;  %s2589_s25 = sphi %s2667_s25, %s23_s25  }
   0x2   : > { %p388_p1 = scmp.lt.s32.totalorder %s2589_s25, 3 }
   0x4   : > { %p389_p2 = pnand %p2304_p0, %p388_p1 }
   0x5   : > { %s2305_s27 = sshll.u32 (!%p389_p2), %s2300_s26, 3  ;;  %s2592_s23 = smov (!%p389_p2), 96  }
   0x6   : > { %392 = sbr.rel (%p389_p2) target bundleno = 2422 (0x976), region = 72  ;;  %p433_p3 = scmp.lt.s32.totalorder (!%p389_p2), %s2305_s27, 15 }
   0x7   : > { %s2593_s24 = smov (!%p389_p2), 64   ;;  %s2594_s26 = smov (!%p389_p2), 80  }
   0x8   : > { %s2596_s15 = smov (!%p389_p2), 48  }
   0xb   : > { %s3395_s27 = smov (!%p433_p3, %s2305_s27), 15  ;;  %vm498_vm0 = vcmask 261120   ;;  %v2591_v18 = vmov 32.0   ;;  %v2416_v62 = vld [vmem:[%s3383_s3 + $0x8] sm:$0xff] }
   0xc   : > { %s2306_s28 = sshll.u32 %s3395_s27, 2  ;;  %2469 = vrcp.f32 %v2591_v18  ;;  %738 = vmatpush.bf16.msra.mxu0 %v2416_v62 }
   0xd   : > { %s436_s14 = scalar_lea.vmem %s3380_s0, %s2306_s28  ;;  %s3352_s29 = scalar_lea.vmem %s3393_s13, %s2306_s28 }
   0xe   : > { %v2446_v0 = vld [vmem:[%s436_s14 + $0x10] sm:$0xff]   ;;  %v2445_v1 = vld [vmem:[%s436_s14 + $0x8] sm:$0xff]   ;;  %v2430_v2 = vld [vmem:[%s436_s14] sm:$0xff]  }
   0xf   : > { %v2683_v3 = vunpack.c.l.bf16 %v2446_v0  ;;  %v2685_v4 = vunpack.c.l.bf16 %v2445_v1  ;;  %v2687_v5 = vunpack.c.l.bf16 %v2430_v2  ;;  %v2695_v9 = vunpack.c.h.bf16 %v2446_v0  ;;  %v2447_v15 = vld [vmem:[%s436_s14 + $0x18] sm:$0xff]   ;;  %s2595_s14 = smov 112  }
  0x10   : > { %v2697_v10 = vunpack.c.h.bf16 %v2445_v1  ;;  %v2699_v11 = vunpack.c.h.bf16 %v2430_v2  ;;  %v2707_v16 = vunpack.c.l.bf16 %v2447_v15  ;;  %v2724_v39 = vunpack.c.h.bf16 %v2447_v15  ;;  %v2415_v2 = vld [vmem:[%s3383_s3] sm:$0xff] }
  0x11   : > { %v511_v6 = vsel %vm498_vm0, %v2683_v3, 0.0  ;;  %v505_v7 = vsel %vm498_vm0, %v2685_v4, 0.0  ;;  %v499_v8 = vsel %vm498_vm0, %v2687_v5, 0.0  ;;  %v514_v12 = vsel %vm498_vm0, %v2695_v9, 0.0  ;;  %739 = vmatpush.bf16.msra.mxu0 %v2415_v2 }
  0x12   : > { %512 = vadd.xlane.f32.xlu2 %v511_v6  ;;  %506 = vadd.xlane.f32.xlu1 %v505_v7  ;;  %v508_v13 = vsel %vm498_vm0, %v2697_v10, 0.0  ;;  %v502_v14 = vsel %vm498_vm0, %v2699_v11, 0.0  ;;  %v517_v17 = vsel %vm498_vm0, %v2707_v16, 0.0  ;;  %v2470_v19 = vpop.eup %2469  ;;  %v520_v45 = vsel %vm498_vm0, %v2724_v39, 0.0 }
  0x13   : > { %500 = vadd.xlane.f32.xlu0 %v499_v8  ;;  %v524_v20 = vmul.f32 32.0, %v2470_v19  ;;  %vm528_vm1 = vweird.f32 %v2470_v19 }
  0x15   : > { %v525_v21 = vsub.f32 1.0, %v524_v20 }
  0x17   : > { %v526_v22 = vmul.f32 %v2470_v19, %v525_v21 }
  0x19   : > { %v527_v23 = vadd.f32 %v2470_v19, %v526_v22 }
  0x1a   : > { %515 = vadd.xlane.f32.xlu2 %v514_v12  ;;  %509 = vadd.xlane.f32.xlu1 %v508_v13 }
  0x1b   : > { %503 = vadd.xlane.f32.xlu0 %v502_v14  ;;  %v2711_v24 = vsel %vm528_vm1, %v2470_v19, %v527_v23 }
  0x22   : > { %518 = vadd.xlane.f32.xlu2 %v517_v17 }
  0x85   : > { %v513_v25 = vpop.xlane.xlu2 %512  ;;  %v507_v26 = vpop.xlane.xlu1 %506 }
  0x86   : > { %v501_v27 = vpop.xlane.xlu0 %500  ;;  %v534_v36 = vmul.f32 %v2711_v24, %v513_v25  ;;  %v532_v37 = vmul.f32 %v2711_v24, %v507_v26 }
  0x87   : > { %v530_v28 = vmul.f32 %v2711_v24, %v501_v27 }
  0x88   : > { %v2735_v43 = vsub.f32 %v2683_v3, %v534_v36  ;;  %v2738_v44 = vsub.f32 %v2685_v4, %v532_v37 }
  0x89   : > { %v2715_v29 = vsub.f32 %v2687_v5, %v530_v28 }
  0x8a   : > { %v550_v52 = vmul.f32 %v2735_v43, %v2735_v43  ;;  %v548_v53 = vmul.f32 %v2738_v44, %v2738_v44 }
  0x8b   : > { %v546_v30 = vmul.f32 %v2715_v29, %v2715_v29 }
  0x8c   : > { %v566_v57 = vsel %vm498_vm0, %v550_v52, 0.0  ;;  %v560_v58 = vsel %vm498_vm0, %v548_v53, 0.0 }
  0x8d   : > { %v516_v31 = vpop.xlane.xlu2 %515  ;;  %v510_v32 = vpop.xlane.xlu1 %509  ;;  %v554_v33 = vsel %vm498_vm0, %v546_v30, 0.0 }
  0x8e   : > { %v533_v34 = vmul.f32 %v2711_v24, %v510_v32  ;;  %555 = vadd.xlane.f32.xlu0 %v554_v33  ;;  %v504_v35 = vpop.xlane.xlu0 %503  ;;  %v535_v51 = vmul.f32 %v2711_v24, %v516_v31 }
  0x8f   : > { %v531_v38 = vmul.f32 %v2711_v24, %v504_v35 }
  0x90   : > { %v2727_v40 = vsub.f32 %v2697_v10, %v533_v34  ;;  %v2758_v56 = vsub.f32 %v2695_v9, %v535_v51 }
  0x91   : > { %v2730_v41 = vsub.f32 %v2699_v11, %v531_v38 }
  0x92   : > { %v549_v42 = vmul.f32 %v2727_v40, %v2727_v40  ;;  %v551_v60 = vmul.f32 %v2758_v56, %v2758_v56 }
  0x93   : > { %v547_v46 = vmul.f32 %v2730_v41, %v2730_v41 }
  0x94   : > { %v563_v47 = vsel %vm498_vm0, %v549_v42, 0.0  ;;  %v569_v61 = vsel %vm498_vm0, %v551_v60, 0.0 }
  0x95   : > { %v519_v48 = vpop.xlane.xlu2 %518  ;;  %564 = vadd.xlane.f32.xlu2 %v563_v47  ;;  %v557_v49 = vsel %vm498_vm0, %v547_v46, 0.0 }
  0x96   : > { %v536_v50 = vmul.f32 %v2711_v24, %v519_v48  ;;  %521 = vadd.xlane.f32.xlu0 %v520_v45  ;;  %558 = vadd.xlane.f32.xlu1 %v557_v49 }
  0x98   : > { %v2753_v54 = vsub.f32 %v2707_v16, %v536_v50 }
  0x9a   : > { %v552_v55 = vmul.f32 %v2753_v54, %v2753_v54 }
  0x9c   : > { %v572_v59 = vsel %vm498_vm0, %v552_v55, 0.0 }
  0x9d   : > { %573 = vadd.xlane.f32.xlu2 %v572_v59 }
  0x9e   : > { %567 = vadd.xlane.f32.xlu0 %v566_v57  ;;  %561 = vadd.xlane.f32.xlu1 %v560_v58  ;;  %v2797_v58 = vld [vmem:[%s3381_s1] ss:$0 sm:$0xff] }
  0xa6   : > { %570 = vadd.xlane.f32.xlu1 %v569_v61 }
 0x101   : > { %v556_v63 = vpop.xlane.xlu0 %555 }
 0x102   : > { %v578_v0 = vmul.f32 %v556_v63, %v2711_v24 }
 0x104   : > { %v586_v1 = vadd.f32 1e-05, %v578_v0 }
 0x106   : > { %2471 = vrsqrt.f32 %v586_v1  ;;  %vm600_vm3 = vweird.f32 %v586_v1 }
 0x108   : > { %v565_v6 = vpop.xlane.xlu2 %564 }
 0x109   : > { %v581_v7 = vmul.f32 %v565_v6, %v2711_v24  ;;  %v559_v8 = vpop.xlane.xlu1 %558  ;;  %v522_v12 = vpop.xlane.xlu0 %521 }
 0x10a   : > { %v579_v13 = vmul.f32 %v559_v8, %v2711_v24  ;;  %v537_v14 = vmul.f32 %v2711_v24, %v522_v12 }
 0x10b   : > { %v2776_v15 = vadd.f32 1e-05, %v581_v7 }
 0x10c   : > { %v2472_v17 = vpop.eup %2471  ;;  %v587_v18 = vadd.f32 1e-05, %v579_v13  ;;  %v2779_v19 = vsub.f32 %v2724_v39, %v537_v14 }
 0x10d   : > { %v595_v20 = vmul.f32 %v2472_v17, %v586_v1  ;;  %2473 = vrsqrt.f32 %v2776_v15  ;;  %vm601_vm2 = vweird.f32 %v2472_v17  ;;  %vm630_vm10 = vweird.f32 %v2776_v15 }
 0x10e   : > { %2475 = vrsqrt.f32 %v587_v18  ;;  %v553_v21 = vmul.f32 %v2779_v19, %v2779_v19  ;;  %vm602_vm4 = vmor %vm600_vm3, %vm601_vm2  ;;  %vm610_vm5 = vweird.f32 %v587_v18 }
 0x10f   : > { %v596_v22 = vmul.f32 %v2472_v17, %v595_v20 }
 0x110   : > { %v575_v23 = vsel %vm498_vm0, %v553_v21, 0.0 }
 0x111   : > { %v597_v25 = vmul.f32 0.5, %v596_v22  ;;  %v562_v26 = vpop.xlane.xlu1 %561  ;;  %576 = vadd.xlane.f32.xlu0 %v575_v23  ;;  %v568_v28 = vpop.xlane.xlu0 %567 }
 0x112   : > { %v580_v27 = vmul.f32 %v562_v26, %v2711_v24  ;;  %v582_v35 = vmul.f32 %v568_v28, %v2711_v24 }
 0x113   : > { %v2786_v30 = vpop.eup %2473  ;;  %v598_v31 = vsub.f32 1.5, %v597_v25 }
 0x114   : > { %v2476_v32 = vpop.eup %2475  ;;  %v588_v33 = vadd.f32 1e-05, %v580_v27  ;;  %v625_v37 = vmul.f32 %v2786_v30, %v2776_v15  ;;  %v590_v45 = vadd.f32 1e-05, %v582_v35  ;;  %vm631_vm11 = vweird.f32 %v2786_v30 }
 0x115   : > { %v605_v34 = vmul.f32 %v2476_v32, %v587_v18  ;;  %v599_v36 = vmul.f32 %v2472_v17, %v598_v31  ;;  %vm611_vm6 = vweird.f32 %v2476_v32  ;;  %vm632_vm13 = vmor %vm630_vm10, %vm631_vm11  ;;  %vm774_vm11 = vcmask 130048  }
 0x116   : > { %2477 = vrsqrt.f32 %v588_v33  ;;  %v626_v48 = vmul.f32 %v2786_v30, %v625_v37  ;;  %vm612_vm7 = vmor %vm610_vm5, %vm611_vm6  ;;  %vm620_vm8 = vweird.f32 %v588_v33  ;;  %vm640_vm1 = vweird.f32 %v590_v45 }
 0x117   : > { %v606_v38 = vmul.f32 %v2476_v32, %v605_v34  ;;  %v603_v47 = vsel %vm602_vm4, %v2472_v17, %v599_v36  ;;  %2479 = vrsqrt.f32 %v590_v45 }
 0x118   : > { %v674_v53 = vmul.f32 %v603_v47, %v2715_v29  ;;  %v627_v59 = vmul.f32 0.5, %v626_v48  ;;  %v2804_v29 = vld [vmem:[%s3382_s2] ss:$0 sm:$0xff] }
 0x119   : > { %v607_v42 = vmul.f32 0.5, %v606_v38  ;;  %v571_v46 = vpop.xlane.xlu1 %570 }
 0x11a   : > { %v583_v49 = vmul.f32 %v571_v46, %v2711_v24  ;;  %v685_v0 = vmul.f32 %v2797_v58, %v674_v53  ;;  %v628_v1 = vsub.f32 1.5, %v627_v59 }
 0x11b   : > { %v608_v50 = vsub.f32 1.5, %v607_v42 }
 0x11c   : > { %v2478_v51 = vpop.eup %2477  ;;  %v591_v52 = vadd.f32 1e-05, %v583_v49  ;;  %v696_v13 = vadd.f32 %v2804_v29, %v685_v0  ;;  %v629_v14 = vmul.f32 %v2786_v30, %v628_v1 }
 0x11d   : > { %v609_v55 = vmul.f32 %v2476_v32, %v608_v50  ;;  %v615_v57 = vmul.f32 %v2478_v51, %v588_v33  ;;  %vm621_vm9 = vweird.f32 %v2478_v51  ;;  %v2480_v6 = vpop.eup %2479 }
 0x11e   : > { %2481 = vrsqrt.f32 %v591_v52  ;;  %vm622_vm12 = vmor %vm620_vm8, %vm621_vm9  ;;  %v635_v17 = vmul.f32 %v2480_v6, %v590_v45  ;;  %v633_v15 = vsel %vm632_vm13, %v2786_v30, %v629_v14  ;;  %vm650_vm14 = vweird.f32 %v591_v52 }
 0x11f   : > { %v613_v60 = vsel %vm612_vm7, %v2476_v32, %v609_v55  ;;  %v616_v61 = vmul.f32 %v2478_v51, %v615_v57  ;;  %v677_v27 = vmul.f32 %v633_v15, %v2727_v40  ;;  %vm641_vm2 = vweird.f32 %v2480_v6 }
 0x120   : > { %v675_v62 = vmul.f32 %v613_v60, %v2730_v41  ;;  %v636_v23 = vmul.f32 %v2480_v6, %v635_v17  ;;  %vm642_vm4 = vmor %vm640_vm1, %vm641_vm2  ;;  %vm962_vm13 = vcmask 64512  }
 0x121   : > { %v617_v63 = vmul.f32 0.5, %v616_v61  ;;  %v688_v33 = vmul.f32 %v2797_v58, %v677_v27 }
 0x122   : > { %v686_v2 = vmul.f32 %v2797_v58, %v675_v62  ;;  %v637_v28 = vmul.f32 0.5, %v636_v23 }
 0x123   : > { %v618_v7 = vsub.f32 1.5, %v617_v63 }
 0x124   : > { %v697_v41 = vadd.f32 %v2804_v29, %v686_v2  ;;  %v2482_v8 = vpop.eup %2481  ;;  %v638_v34 = vsub.f32 1.5, %v637_v28 }
 0x125   : > { %v619_v12 = vmul.f32 %v2478_v51, %v618_v7  ;;  %v645_v18 = vmul.f32 %v2482_v8, %v591_v52  ;;  %vm651_vm15 = vweird.f32 %v2482_v8 }
 0x126   : > { %v704_v20 = vpack.c.bf16 %v697_v41, %v696_v13  ;;  %vm652_vm3 = vmor %vm650_vm14, %vm651_vm15  ;;  %v639_v36 = vmul.f32 %v2480_v6, %v638_v34 }
 0x127   : > { %v623_v21 = vsel %vm622_vm12, %v2478_v51, %v619_v12  ;;  %v646_v22 = vmul.f32 %v2482_v8, %v645_v18  ;;  %v574_v51 = vpop.xlane.xlu2 %573  ;;  %vm1064_vm12 = vcmask 1043456  }
 0x128   : > { %2317 = vmatmul.msk.bf16.vlgmr.msra.gmra.mxu0 %vm498_vm0, %v704_v20  ;;  %v676_v25 = vmul.f32 %v623_v21, %v2738_v44  ;;  %v699_v44 = vadd.f32 %v2804_v29, %v688_v33  ;;  %v643_v38 = vsel %vm642_vm4, %v2480_v6, %v639_v36  ;;  %v584_v52 = vmul.f32 %v574_v51, %v2711_v24 }
 0x129   : > { %v647_v26 = vmul.f32 0.5, %v646_v22  ;;  %v678_v46 = vmul.f32 %v643_v38, %v2735_v43 }
 0x12a   : > { %v687_v31 = vmul.f32 %v2797_v58, %v676_v25  ;;  %v592_v53 = vadd.f32 1e-05, %v584_v52 }
 0x12b   : > { %v648_v32 = vsub.f32 1.5, %v647_v26  ;;  %v689_v45 = vmul.f32 %v2797_v58, %v678_v46 }
 0x12c   : > { %v698_v35 = vadd.f32 %v2804_v29, %v687_v31  ;;  %2483 = vrsqrt.f32 %v592_v53  ;;  %vm660_vm5 = vweird.f32 %v592_v53 }
 0x12d   : > { %v649_v30 = vmul.f32 %v2482_v8, %v648_v32  ;;  %v700_v49 = vadd.f32 %v2804_v29, %v689_v45 }
 0x12e   : > { %v705_v40 = vpack.c.bf16 %v699_v44, %v698_v35 }
 0x12f   : > { %v653_v37 = vsel %vm652_vm3, %v2482_v8, %v649_v30 }
 0x130   : > { %v679_v42 = vmul.f32 %v653_v37, %v2758_v56 }
 0x132   : > { %v690_v47 = vmul.f32 %v2797_v58, %v679_v42  ;;  %v2484_v55 = vpop.eup %2483 }
 0x133   : > { %v655_v56 = vmul.f32 %v2484_v55, %v592_v53  ;;  %vm661_vm6 = vweird.f32 %v2484_v55 }
 0x134   : > { %v701_v48 = vadd.f32 %v2804_v29, %v690_v47  ;;  %vm662_vm7 = vmor %vm660_vm5, %vm661_vm6 }
 0x135   : > { %v656_v57 = vmul.f32 %v2484_v55, %v655_v56 }
 0x136   : > { %v706_v50 = vpack.c.bf16 %v701_v48, %v700_v49 }
 0x137   : > { %v657_v61 = vmul.f32 0.5, %v656_v57 }
 0x138   : > { %2318 = vmatmul.msk.bf16.gmra.mxu0 %vm498_vm0, %v705_v40 }
 0x139   : > { %v658_v62 = vsub.f32 1.5, %v657_v61 }
 0x13b   : > { %v659_v0 = vmul.f32 %v2484_v55, %v658_v62 }
 0x13d   : > { %v663_v6 = vsel %vm662_vm7, %v2484_v55, %v659_v0 }
 0x13e   : > { %v680_v8 = vmul.f32 %v663_v6, %v2753_v54 }
 0x140   : > { %v691_v17 = vmul.f32 %v2797_v58, %v680_v8 }
 0x142   : > { %v702_v20 = vadd.f32 %v2804_v29, %v691_v17 }
 0x148   : > { %2319 = vmatmul.msk.bf16.gmra.mxu0 %vm498_vm0, %v706_v50 }
 0x184   : > { %v577_v43 = vpop.xlane.xlu0 %576 }
 0x185   : > { %v585_v59 = vmul.f32 %v577_v43, %v2711_v24 }
 0x187   : > { %v593_v60 = vadd.f32 1e-05, %v585_v59 }
 0x189   : > { %2485 = vrsqrt.f32 %v593_v60  ;;  %vm670_vm9 = vweird.f32 %v593_v60 }
 0x18f   : > { %v2486_v63 = vpop.eup %2485 }
 0x190   : > { %v665_v1 = vmul.f32 %v2486_v63, %v593_v60  ;;  %vm671_vm8 = vweird.f32 %v2486_v63 }
 0x191   : > { %vm672_vm10 = vmor %vm670_vm9, %vm671_vm8 }
 0x192   : > { %v666_v2 = vmul.f32 %v2486_v63, %v665_v1 }
 0x194   : > { %v667_v7 = vmul.f32 0.5, %v666_v2 }
 0x196   : > { %v668_v41 = vsub.f32 1.5, %v667_v7 }
 0x198   : > { %v669_v12 = vmul.f32 %v2486_v63, %v668_v41 }
 0x19a   : > { %v673_v13 = vsel %vm672_vm10, %v2486_v63, %v669_v12 }
 0x19b   : > { %v681_v14 = vmul.f32 %v673_v13, %v2779_v19 }
 0x19d   : > { %v692_v18 = vmul.f32 %v2797_v58, %v681_v14 }
 0x19f   : > { %v703_v21 = vadd.f32 %v2804_v29, %v692_v18 }
 0x1a1   : > { %v707_v22 = vpack.c.bf16 %v703_v21, %v702_v20  ;;  %v2911_v20 = vld [vmem:[%s3386_s6] sm:$0xff] }
 0x1a3   : > { %2320 = vmatmul.msk.bf16.gmra.mxu0 %vm498_vm0, %v707_v22 }
 0x1a5   : > { %v741_v15 = vpop.f32.mrf.mxu0 }
 0x1a6   : > { %v761_v23 = vpack.c.bf16 %v741_v15, %v741_v15 }
 0x1a8   : > { %v770_v54 = vunpack.c.l.b16 %v761_v23 }
 0x1aa   : > { %v2837_v25 = vpack.c.b16 %v770_v54, %v770_v54 }
 0x1ac   : > { %772 = vrot.lane.b32.xlu2 %v2837_v25, %s2592_s23 }
 0x1ad   : > { %v743_v19 = vpop.f32.mrf.mxu0 }
 0x1ae   : > { %v762_v26 = vpack.c.bf16 %v743_v19, %v743_v19 }
 0x1b0   : > { %v795_v27 = vunpack.c.l.b16 %v762_v26 }
 0x1b2   : > { %v2841_v58 = vpack.c.b16 %v795_v27, %v795_v27 }
 0x1b4   : > { %797 = vrot.lane.b32.xlu1 %v2841_v58, %s2592_s23 }
 0x1b5   : > { %v746_v29 = vpop.f32.mrf.mxu0 }
 0x1b6   : > { %v763_v28 = vpack.c.bf16 %v746_v29, %v746_v29 }
 0x1b8   : > { %v819_v31 = vunpack.c.l.b16 %v763_v28 }
 0x1ba   : > { %v2845_v32 = vpack.c.b16 %v819_v31, %v819_v31 }
 0x1bc   : > { %821 = vrot.lane.b32.xlu0 %v2845_v32, %s2592_s23 }
 0x1bd   : > { %v748_v33 = vpop.f32.mrf.mxu0 }
 0x1be   : > { %v764_v34 = vpack.c.bf16 %v748_v33, %v748_v33 }
 0x1c0   : > { %v843_v35 = vunpack.c.l.b16 %v764_v34 }
 0x1c2   : > { %v2849_v30 = vpack.c.b16 %v843_v35, %v843_v35 }
 0x1c4   : > { %845 = vrot.lane.b32.xlu1 %v2849_v30, %s2592_s23 }
 0x1c5   : > { %v751_v44 = vpop.f32.mrf.mxu0 }
 0x1c6   : > { %v765_v36 = vpack.c.bf16 %v751_v44, %v751_v44 }
 0x1c8   : > { %v867_v40 = vunpack.c.l.b16 %v765_v36 }
 0x1ca   : > { %v2853_v37 = vpack.c.b16 %v867_v40, %v867_v40 }
 0x1cc   : > { %869 = vrot.lane.b32.xlu2 %v2853_v37, %s2592_s23 }
 0x1cd   : > { %v753_v38 = vpop.f32.mrf.mxu0 }
 0x1ce   : > { %v766_v42 = vpack.c.bf16 %v753_v38, %v753_v38 }
 0x1d0   : > { %v891_v46 = vunpack.c.l.b16 %v766_v42 }
 0x1d2   : > { %v2857_v47 = vpack.c.b16 %v891_v46, %v891_v46 }
 0x1d4   : > { %893 = vrot.lane.b32.xlu0 %v2857_v47, %s2592_s23 }
 0x1dc   : > { %1059 = vrot.lane.b32.xlu0 %v2837_v25, %s2593_s24 }
 0x1e4   : > { %1123 = vrot.lane.b32.xlu0 %v2849_v30, %s2593_s24 }
 0x1ec   : > { %1144 = vrot.lane.b32.xlu0 %v2853_v37, %s2593_s24 }
 0x1f4   : > { %1257 = vrot.lane.b32.xlu0 %v2841_v58, %s2594_s26 }
 0x206   : > { %v773_v45 = vpop.permute.xlu2 %772 }
 0x207   : > { %v779_v48 = vsel %vm774_vm11, %v773_v45, 0 }
 0x208   : > { %788 = vmatpush.bf16.xpose.msra.mxu1 %v779_v48 }
 0x20f   : > { %2321 = vmatmul.msk.bf16.vlgmr.msra.gmra.mxu1 %vm774_vm11, %v761_v23 }
 0x220   : > { %v756_v49 = vpop.f32.mrf.mxu0 }
 0x221   : > { %v2871_v50 = vpack.c.bf16 %v756_v49, %v756_v49 }
 0x223   : > { %v915_v51 = vunpack.c.l.b16 %v2871_v50 }
 0x225   : > { %v2874_v52 = vpack.c.b16 %v915_v51, %v915_v51 }
 0x226   : > { %v798_v53 = vpop.permute.xlu1 %797  ;;  %v870_v55 = vpop.permute.xlu2 %869 }
 0x227   : > { %917 = vrot.lane.b32.xlu1 %v2874_v52, %s2592_s23  ;;  %v803_v57 = vsel %vm774_vm11, %v798_v53, 0  ;;  %v875_v43 = vsel %vm774_vm11, %v870_v55, 0 }
 0x228   : > { %v758_v56 = vpop.f32.mrf.mxu0  ;;  %812 = vmatpush.bf16.xpose.msra.mxu2 %v803_v57 }
 0x229   : > { %v768_v59 = vpack.c.bf16 %v758_v56, %v758_v56 }
 0x22b   : > { %v939_v60 = vunpack.c.l.b16 %v768_v59 }
 0x22d   : > { %v2880_v61 = vpack.c.b16 %v939_v60, %v939_v60 }
 0x22e   : > { %v822_v62 = vpop.permute.xlu0 %821 }
 0x22f   : > { %1081 = vrot.lane.b32.xlu1 %v2841_v58, %s2593_s24  ;;  %1207 = vrot.lane.b32.xlu0 %v2880_v61, %s2593_s24  ;;  %v827_v63 = vsel %vm774_vm11, %v822_v62, 0 }
 0x230   : > { %884 = vmatpush.bf16.xpose.msrb.mxu2 %v875_v43  ;;  %941 = vrot.lane.b32.xlu2 %v2880_v61, %s2592_s23 }
 0x231   : > { %2322 = vmatmul.msk.bf16.vlgmr.msra.gmra.mxu2 %vm774_vm11, %v762_v26  ;;  %836 = vmatpush.bf16.xpose.msra.mxu3 %v827_v63 }
 0x236   : > { %v846_v0 = vpop.permute.xlu1 %845 }
 0x237   : > { %1165 = vrot.lane.b32.xlu1 %v2857_v47, %s2593_s24  ;;  %v851_v1 = vsel %vm774_vm11, %v846_v0, 0 }
 0x238   : > { %1102 = vrot.lane.b32.xlu2 %v2845_v32, %s2593_s24  ;;  %2323 = vmatmul.msk.bf16.vlgmr.msra.gmra.mxu3 %vm774_vm11, %v763_v28 }
 0x239   : > { %860 = vmatpush.bf16.xpose.msrb.mxu1 %v851_v1 }
 0x23f   : > { %1234 = vrot.lane.b32.xlu1 %v2837_v25, %s2594_s26 }
 0x240   : > { %2324 = vmatmul.msk.bf16.vlgmr.msrb.gmra.mxu1 %vm774_vm11, %v764_v34  ;;  %1186 = vrot.lane.b32.xlu2 %v2874_v52, %s2593_s24 }
 0x241   : > { %2325 = vmatmul.msk.bf16.vlgmr.msrb.gmra.mxu2 %vm774_vm11, %v765_v36 }
 0x246   : > { %v894_v2 = vpop.permute.xlu0 %893 }
 0x247   : > { %v899_v6 = vsel %vm774_vm11, %v894_v2, 0 }
 0x248   : > { %908 = vmatpush.bf16.xpose.msrb.mxu3 %v899_v6 }
 0x24e   : > { %v1060_v7 = vpop.permute.xlu0 %1059 }
 0x24f   : > { %v1066_v41 = vsel %vm1064_vm12, %v1060_v7, 0  ;;  %2326 = vmatmul.msk.bf16.vlgmr.msrb.gmra.mxu3 %vm774_vm11, %v766_v42 }
 0x250   : > { %1075 = vmatpush.bf16.msra.mxu3 %v1066_v41 }
 0x256   : > { %v1124_v8 = vpop.permute.xlu0 %1123 }
 0x257   : > { %v1129_v12 = vsel %vm1064_vm12, %v1124_v8, 0 }
 0x258   : > { %1138 = vmatpush.bf16.msrb.mxu3 %v1129_v12 }
 0x25e   : > { %v1145_v13 = vpop.permute.xlu0 %1144 }
 0x25f   : > { %v1150_v14 = vsel %vm1064_vm12, %v1145_v13, 0 }
 0x260   : > { %1159 = vmatpush.bf16.msrb.mxu0 %v1150_v14 }
 0x266   : > { %v2934_v2 = vpop.permute.xlu0 %1257 }
 0x28a   : > { %v942_v17 = vpop.permute.xlu2 %941 }
 0x28b   : > { %v947_v18 = vsel %vm774_vm11, %v942_v17, 0 }
 0x28c   : > { %956 = vmatpush.bf16.xpose.msra.mxu2 %v947_v18  ;;  %v790_v21 = vpop.f32.mrf.mxu1 }
 0x28d   : > { %v791_v22 = vadd.f32 %v790_v21, %v2911_v20 }
 0x28f   : > { %v963_v15 = vsel %vm962_vm13, %v791_v22, -inf }
 0x290   : > { %964 = vmax.xlane.f32.xlu0 %v963_v15 }
 0x292   : > { %v1103_v23 = vpop.permute.xlu2 %1102 }
 0x293   : > { %v1108_v54 = vsel %vm1064_vm12, %v1103_v23, 0  ;;  %2328 = vmatmul.msk.bf16.vlgmr.msra.gmra.mxu2 %vm774_vm11, %v768_v59 }
 0x294   : > { %1117 = vmatpush.bf16.msrb.mxu2 %v1108_v54  ;;  %v792_v19 = vpop.f32.mrf.mxu1 }
 0x299   : > { %v918_v26 = vpop.permute.xlu1 %917 }
 0x29a   : > { %v923_v27 = vsel %vm774_vm11, %v918_v26, 0  ;;  %v1187_v29 = vpop.permute.xlu2 %1186 }
 0x29b   : > { %932 = vmatpush.bf16.xpose.msra.mxu1 %v923_v27  ;;  %v1192_v28 = vsel %vm1064_vm12, %v1187_v29, 0 }
 0x29c   : > { %1201 = vmatpush.bf16.msra.mxu2 %v1192_v28 }
 0x2a1   : > { %v1082_v31 = vpop.permute.xlu1 %1081  ;;  %v2936_v6 = vpop.permute.xlu0 %1207 }
 0x2a2   : > { %v1087_v33 = vsel %vm1064_vm12, %v1082_v31, 0  ;;  %2327 = vmatmul.msk.bf16.vlgmr.msra.gmra.mxu1 %vm774_vm11, %v2871_v50 }
 0x2a3   : > { %1096 = vmatpush.bf16.msrb.mxu1 %v1087_v33 }
 0x2a9   : > { %v1166_v34 = vpop.permute.xlu1 %1165 }
 0x2aa   : > { %v1171_v35 = vsel %vm1064_vm12, %v1166_v34, 0 }
 0x2ab   : > { %1180 = vmatpush.bf16.msra.mxu1 %v1171_v35 }
 0x2b1   : > { %v1235_v44 = vpop.permute.xlu1 %1234 }
 0x2b2   : > { %v1240_v36 = vsel %vm774_vm11, %v1235_v44, 0 }
 0x2b3   : > { %1249 = vmatpush.bf16.xpose.msra.mxu0 %v1240_v36 }
 0x2b4   : > { %v814_v40 = vpop.f32.mrf.mxu2 }
 0x2b5   : > { %v815_v38 = vadd.f32 %v814_v40, %v2911_v20 }
 0x2b7   : > { %v966_v42 = vsel %vm962_vm13, %v815_v38, -inf }
 0x2b8   : > { %967 = vmax.xlane.f32.xlu2 %v966_v42 }
 0x2bb   : > { %v838_v45 = vpop.f32.mrf.mxu3 }
 0x2bc   : > { %v816_v46 = vpop.f32.mrf.mxu2  ;;  %v839_v48 = vadd.f32 %v838_v45, %v2911_v20 }
 0x2bd   : > { %v862_v49 = vpop.f32.mrf.mxu1 }
 0x2be   : > { %v863_v50 = vadd.f32 %v862_v49, %v2911_v20  ;;  %v969_v51 = vsel %vm962_vm13, %v839_v48, -inf }
 0x2bf   : > { %970 = vmax.xlane.f32.xlu1 %v969_v51 }
 0x2c0   : > { %v972_v53 = vsel %vm962_vm13, %v863_v50, -inf }
 0x2c1   : > { %973 = vmax.xlane.f32.xlu0 %v972_v53 }
 0x2c3   : > { %v840_v55 = vpop.f32.mrf.mxu3 }
 0x2c4   : > { %v886_v56 = vpop.f32.mrf.mxu2 }
 0x2c5   : > { %v887_v57 = vadd.f32 %v886_v56, %v2911_v20  ;;  %v864_v43 = vpop.f32.mrf.mxu1 }
 0x2c7   : > { %v975_v59 = vsel %vm962_vm13, %v887_v57, -inf }
 0x2c8   : > { %976 = vmax.xlane.f32.xlu2 %v975_v59 }
 0x2cc   : > { %v888_v60 = vpop.f32.mrf.mxu2 }
 0x2d2   : > { %v910_v62 = vpop.f32.mrf.mxu3 }
 0x2d3   : > { %v911_v63 = vadd.f32 %v910_v62, %v2911_v20 }
 0x2d5   : > { %v978_v0 = vsel %vm962_vm13, %v911_v63, -inf }
 0x2d6   : > { %979 = vmax.xlane.f32.xlu1 %v978_v0 }
 0x2da   : > { %v912_v1 = vpop.f32.mrf.mxu3 }
 0x2db   : > { %v1213_v1 = vsel %vm1064_vm12, %v2936_v6, 0 }
 0x303   : > { %v965_v7 = vpop.xlane.xlu0 %964 }
 0x304   : > { %v987_v41 = vsub.f32 %v791_v22, %v965_v7 }
 0x306   : > { %v995_v8 = vmul.f32 1.442695, %v987_v41 }
 0x308   : > { %2487 = vpow2.f32 %v995_v8 }
 0x30e   : > { %v2488_v12 = vpop.eup %2487 }
 0x30f   : > { %v1011_v13 = vsel %vm962_vm13, %v2488_v12, 0.0 }
 0x310   : > { %1012 = vadd.xlane.f32.xlu1 %v1011_v13 }
 0x316   : > { %v958_v14 = vpop.f32.mrf.mxu2 }
 0x317   : > { %v959_v17 = vadd.f32 %v958_v14, %v2911_v20 }
 0x319   : > { %v984_v18 = vsel %vm962_vm13, %v959_v17, -inf }
 0x31a   : > { %985 = vmax.xlane.f32.xlu2 %v984_v18 }
 0x31e   : > { %v960_v21 = vpop.f32.mrf.mxu2 }
 0x31f   : > { %v934_v15 = vpop.f32.mrf.mxu1 }
 0x320   : > { %v935_v23 = vadd.f32 %v934_v15, %v2911_v20 }
 0x322   : > { %v981_v54 = vsel %vm962_vm13, %v935_v23, -inf }
 0x323   : > { %982 = vmax.xlane.f32.xlu0 %v981_v54 }
 0x327   : > { %v936_v22 = vpop.f32.mrf.mxu1 }
 0x329   : > { %1303 = vrot.lane.b32.xlu1 %v2849_v30, %s2594_s26 }
 0x32b   : > { %v968_v27 = vpop.xlane.xlu2 %967 }
 0x32c   : > { %v988_v28 = vsub.f32 %v815_v38, %v968_v27 }
 0x32e   : > { %v997_v34 = vmul.f32 1.442695, %v988_v28 }
 0x332   : > { %1280 = vrot.lane.b32.xlu2 %v2845_v32, %s2594_s26  ;;  %v971_v19 = vpop.xlane.xlu1 %970 }
 0x333   : > { %v989_v26 = vsub.f32 %v839_v48, %v971_v19 }
 0x334   : > { %v974_v35 = vpop.xlane.xlu0 %973 }
 0x335   : > { %v999_v29 = vmul.f32 1.442695, %v989_v26  ;;  %v990_v42 = vsub.f32 %v863_v50, %v974_v35  ;;  %v1263_v35 = vsel %vm774_vm11, %v2934_v2, 0 }
 0x337   : > { %1232 = vrot.lane.b32.xlu0 %v2837_v25, %s2595_s14  ;;  %2489 = vpow2.f32 %v999_v29  ;;  %v1001_v48 = vmul.f32 1.442695, %v990_v42 }
 0x338   : > { %2491 = vpow2.f32 %v997_v34 }
 0x33b   : > { %v977_v33 = vpop.xlane.xlu2 %976 }
 0x33c   : > { %v991_v36 = vsub.f32 %v887_v57, %v977_v33 }
 0x33d   : > { %v2490_v40 = vpop.eup %2489 }
 0x33e   : > { %v1003_v46 = vmul.f32 1.442695, %v991_v36  ;;  %v1017_v45 = vsel %vm962_vm13, %v2490_v40, 0.0  ;;  %v2950_v49 = vpop.eup %2491 }
 0x33f   : > { %v1014_v51 = vsel %vm962_vm13, %v2950_v49, 0.0 }
 0x349   : > { %v980_v20 = vpop.xlane.xlu1 %979 }
 0x34a   : > { %v992_v31 = vsub.f32 %v911_v63, %v980_v20 }
 0x34c   : > { %v1005_v44 = vmul.f32 1.442695, %v992_v31 }
 0x34e   : > { %2493 = vpow2.f32 %v1005_v44 }
 0x34f   : > { %2495 = vpow2.f32 %v1003_v46 }
 0x350   : > { %2497 = vpow2.f32 %v1001_v48 }
 0x353   : > { %1018 = vadd.xlane.f32.xlu1 %v1017_v45 }
 0x354   : > { %v2952_v38 = vpop.eup %2493 }
 0x355   : > { %v1026_v53 = vsel %vm962_vm13, %v2952_v38, 0.0  ;;  %v2958_v50 = vpop.eup %2495 }
 0x356   : > { %v2960_v55 = vpop.eup %2497  ;;  %v1023_v56 = vsel %vm962_vm13, %v2958_v50, 0.0 }
 0x357   : > { %v1020_v57 = vsel %vm962_vm13, %v2960_v55, 0.0 }
 0x35b   : > { %1015 = vadd.xlane.f32.xlu2 %v1014_v51  ;;  %1027 = vadd.xlane.f32.xlu1 %v1026_v53 }
 0x361   : > { %1024 = vadd.xlane.f32.xlu0 %v1023_v56 }
 0x363   : > { %1021 = vadd.xlane.f32.xlu2 %v1020_v57 }
 0x374   : > { %1278 = vrot.lane.b32.xlu1 %v2845_v32, %s2595_s14 }
 0x37c   : > { %1349 = vrot.lane.b32.xlu1 %v2857_v47, %s2594_s26 }
 0x383   : > { %v1013_v43 = vpop.xlane.xlu1 %1012 }
 0x384   : > { %2499 = vrcp.f32 %v1013_v43  ;;  %1324 = vrot.lane.b32.xlu1 %v2853_v37, %s2595_s14 }
 0x38a   : > { %v2500_v59 = vpop.eup %2499 }
 0x38b   : > { %v1043_v60 = vmul.f32 %v2500_v59, %v2488_v12 }
 0x38c   : > { %1393 = vrot.lane.b32.xlu1 %v2880_v61, %s2595_s14 }
 0x38d   : > { %v986_v62 = vpop.xlane.xlu2 %985  ;;  %v1051_v63 = vpack.c.bf16 %v1043_v60, %v1043_v60 }
 0x38e   : > { %v994_v0 = vsub.f32 %v959_v17, %v986_v62 }
 0x38f   : > { %2329 = vmatmul.msk.bf16.vlgmr.msra.gmra.mxu3 %vm962_vm13, %v1051_v63 }
 0x390   : > { %v1009_v7 = vmul.f32 1.442695, %v994_v0  ;;  %1222 = vmatpush.bf16.msra.mxu3 %v1213_v1 }
 0x392   : > { %2501 = vpow2.f32 %v1009_v7 }
 0x395   : > { %v1281_v21 = vpop.permute.xlu2 %1280 }
 0x396   : > { %v983_v41 = vpop.xlane.xlu0 %982  ;;  %v1286_v27 = vsel %vm774_vm11, %v1281_v21, 0 }
 0x397   : > { %v993_v8 = vsub.f32 %v935_v23, %v983_v41 }
 0x398   : > { %v2977_v13 = vpop.eup %2501 }
 0x399   : > { %v1007_v14 = vmul.f32 1.442695, %v993_v8  ;;  %v1032_v12 = vsel %vm962_vm13, %v2977_v13, 0.0 }
 0x39a   : > { %1033 = vadd.xlane.f32.xlu0 %v1032_v12 }
 0x39b   : > { %2503 = vpow2.f32 %v1007_v14  ;;  %v1304_v17 = vpop.permute.xlu1 %1303 }
 0x39c   : > { %v1309_v2 = vsel %vm774_vm11, %v1304_v17, 0 }
 0x3a1   : > { %v2981_v18 = vpop.eup %2503 }
 0x3a2   : > { %v1029_v6 = vsel %vm962_vm13, %v2981_v18, 0.0 }
 0x3a3   : > { %1030 = vadd.xlane.f32.xlu2 %v1029_v6 }
 0x3a9   : > { %v1233_v23 = vpop.permute.xlu0 %1232 }
 0x3ae   : > { %1301 = vrot.lane.b32.xlu0 %v2849_v30, %s2595_s14 }
 0x3b6   : > { %1372 = vrot.lane.b32.xlu0 %v2874_v52, %s2594_s26 }
 0x3bb   : > { %1255 = vrot.lane.b32.xlu2 %v2841_v58, %s2595_s14 }
 0x3be   : > { %1347 = vrot.lane.b32.xlu0 %v2857_v47, %s2595_s14 }
 0x3c3   : > { %1326 = vrot.lane.b32.xlu2 %v2853_v37, %s2594_s26 }
 0x3c6   : > { %v1019_v15 = vpop.xlane.xlu1 %1018 }
 0x3c7   : > { %2505 = vrcp.f32 %v1019_v15 }
 0x3cb   : > { %1395 = vrot.lane.b32.xlu2 %v2880_v61, %s2594_s26 }
 0x3cd   : > { %v2506_v54 = vpop.eup %2505 }
 0x3ce   : > { %v1016_v22 = vpop.xlane.xlu2 %1015  ;;  %v1045_v19 = vmul.f32 %v2506_v54, %v2490_v40  ;;  %v1028_v34 = vpop.xlane.xlu1 %1027 }
 0x3cf   : > { %2507 = vrcp.f32 %v1016_v22 }
 0x3d0   : > { %v1053_v26 = vpack.c.bf16 %v1045_v19, %v1045_v19 }
 0x3d2   : > { %2331 = vmatmul.msk.bf16.vlgmr.msrb.gmra.mxu2 %vm962_vm13, %v1053_v26 }
 0x3d3   : > { %1370 = vrot.lane.b32.xlu2 %v2874_v52, %s2595_s14  ;;  %1295 = vmatpush.bf16.xpose.msrb.mxu2 %v1286_v27 }
 0x3d4   : > { %v1025_v29 = vpop.xlane.xlu0 %1024 }
 0x3d5   : > { %v2508_v28 = vpop.eup %2507  ;;  %2509 = vrcp.f32 %v1025_v29 }
 0x3d6   : > { %v1044_v20 = vmul.f32 %v2508_v28, %v2950_v49  ;;  %v1022_v31 = vpop.xlane.xlu2 %1021 }
 0x3d7   : > { %2511 = vrcp.f32 %v1022_v31 }
 0x3d8   : > { %v1052_v33 = vpack.c.bf16 %v1044_v20, %v1044_v20  ;;  %2513 = vrcp.f32 %v1028_v34 }
 0x3da   : > { %2330 = vmatmul.msk.bf16.vlgmr.msrb.gmra.mxu1 %vm962_vm13, %v1052_v33 }
 0x3db   : > { %v2510_v44 = vpop.eup %2509  ;;  %1272 = vmatpush.bf16.xpose.msrb.mxu1 %v1263_v35  ;;  %1512 = vrot.lane.b32.xlu2 %v2837_v25, %s2596_s15 }
 0x3dc   : > { %v1047_v36 = vmul.f32 %v2510_v44, %v2958_v50  ;;  %v465_v44 = vld [vmem:[%s3386_s6 + $0x8] sm:$0xff] }
 0x3dd   : > { %v2512_v40 = vpop.eup %2511 }
 0x3de   : > { %v1046_v42 = vmul.f32 %v2512_v40, %v2960_v55  ;;  %v1055_v46 = vpack.c.bf16 %v1047_v36, %v1047_v36  ;;  %v2514_v48 = vpop.eup %2513 }
 0x3df   : > { %v1048_v49 = vmul.f32 %v2514_v48, %v2952_v38 }
 0x3e0   : > { %v1054_v45 = vpack.c.bf16 %v1046_v42, %v1046_v42  ;;  %2333 = vmatmul.msk.bf16.vlgmr.msrb.gmra.mxu0 %vm962_vm13, %v1055_v46 }
 0x3e1   : > { %v1056_v53 = vpack.c.bf16 %v1048_v49, %v1048_v49 }
 0x3e2   : > { %2332 = vmatmul.msk.bf16.vlgmr.msrb.gmra.mxu3 %vm962_vm13, %v1054_v45 }
 0x3e3   : > { %1318 = vmatpush.bf16.xpose.msrb.mxu3 %v1309_v2 }
 0x3e6   : > { %v1279_v51 = vpop.permute.xlu1 %1278 }
 0x3ea   : > { %2334 = vmatmul.msk.bf16.vlgmr.msra.gmra.mxu1 %vm962_vm13, %v1056_v53 }
 0x3ee   : > { %v1350_v25 = vpop.permute.xlu1 %1349 }
 0x3ef   : > { %v1355_v50 = vsel %vm774_vm11, %v1350_v25, 0 }
 0x3f0   : > { %2337 = vmatmul.msk.bf16.vlgmr.msra.gmra.mxu0 %vm774_vm11, %v1233_v23  ;;  %1364 = vmatpush.bf16.xpose.msra.mxu1 %v1355_v50 }
 0x3f6   : > { %v1325_v12 = vpop.permute.xlu1 %1324 }
 0x3fe   : > { %v1394_v15 = vpop.permute.xlu1 %1393 }
 0x40d   : > { %v1034_v55 = vpop.xlane.xlu0 %1033 }
 0x40e   : > { %2515 = vrcp.f32 %v1034_v55 }
 0x412   : > { %v3016_v56 = vpop.f32.mrf.mxu3 }
 0x414   : > { %v2516_v57 = vpop.eup %2515 }
 0x415   : > { %v1050_v43 = vmul.f32 %v2516_v57, %v2977_v13 }
 0x416   : > { %v1031_v59 = vpop.xlane.xlu2 %1030 }
 0x417   : > { %v1058_v60 = vpack.c.bf16 %v1050_v43, %v1050_v43  ;;  %2517 = vrcp.f32 %v1031_v59 }
 0x419   : > { %2336 = vmatmul.msk.bf16.vlgmr.msra.gmra.mxu3 %vm962_vm13, %v1058_v60 }
 0x41a   : > { %v1079_v38 = vpop.f32.mrf.mxu3 }
 0x41d   : > { %v2518_v62 = vpop.eup %2517 }
 0x41e   : > { %v1049_v63 = vmul.f32 %v2518_v62, %v2981_v18  ;;  %v1256_v0 = vpop.permute.xlu2 %1255 }
 0x41f   : > { %2338 = vmatmul.msk.bf16.vlgmr.msrb.gmra.mxu1 %vm774_vm11, %v1256_v0 }
 0x420   : > { %v1057_v1 = vpack.c.bf16 %v1049_v63, %v1049_v63  ;;  %v1302_v7 = vpop.permute.xlu0 %1301 }
 0x422   : > { %2335 = vmatmul.msk.bf16.vlgmr.msra.gmra.mxu2 %vm962_vm13, %v1057_v1 }
 0x426   : > { %v1327_v41 = vpop.permute.xlu2 %1326 }
 0x427   : > { %v1332_v8 = vsel %vm774_vm11, %v1327_v41, 0 }
 0x428   : > { %v1373_v13 = vpop.permute.xlu0 %1372  ;;  %1341 = vmatpush.bf16.xpose.msrb.mxu0 %v1332_v8 }
 0x429   : > { %v1378_v14 = vsel %vm774_vm11, %v1373_v13, 0  ;;  %2340 = vmatmul.msk.bf16.vlgmr.msrb.gmra.mxu3 %vm774_vm11, %v1302_v7 }
 0x42a   : > { %1387 = vmatpush.bf16.xpose.msra.mxu2 %v1378_v14 }
 0x42e   : > { %v1396_v6 = vpop.permute.xlu2 %1395 }
 0x42f   : > { %v1401_v18 = vsel %vm774_vm11, %v1396_v6, 0  ;;  %2341 = vmatmul.msk.bf16.vlgmr.msrb.gmra.mxu0 %vm774_vm11, %v1325_v12 }
 0x430   : > { %v1348_v17 = vpop.permute.xlu0 %1347  ;;  %1410 = vmatpush.bf16.xpose.msra.mxu3 %v1401_v18 }
 0x431   : > { %2342 = vmatmul.msk.bf16.vlgmr.msra.gmra.mxu1 %vm774_vm11, %v1348_v17 }
 0x432   : > { %2339 = vmatmul.msk.bf16.vlgmr.msrb.gmra.mxu2 %vm774_vm11, %v1279_v51 }
 0x436   : > { %v1371_v21 = vpop.permute.xlu2 %1370 }
 0x439   : > { %2344 = vmatmul.msk.bf16.vlgmr.msra.gmra.mxu3 %vm774_vm11, %v1394_v15 }
 0x43e   : > { %v1513_v23 = vpop.permute.xlu2 %1512 }
 0x43f   : > { %v1518_v54 = vsel %vm1064_vm12, %v1513_v23, 0 }
 0x440   : > { %1527 = vmatpush.bf16.msra.mxu0 %v1518_v54 }
 0x442   : > { %2343 = vmatmul.msk.bf16.vlgmr.msra.gmra.mxu2 %vm774_vm11, %v1371_v21 }
 0x455   : > { %v3033_v22 = vpop.f32.mrf.mxu2 }
 0x457   : > { %v3035_v19 = vpop.f32.mrf.mxu1 }
 0x458   : > { %v1228_v26 = vpack.c.bf16 %v3035_v19, %v3016_v56 }
 0x45d   : > { %v3039_v27 = vpop.f32.mrf.mxu0  ;;  %v1121_v29 = vpop.f32.mrf.mxu2 }
 0x45f   : > { %v1100_v28 = vpop.f32.mrf.mxu1 }
 0x465   : > { %v3041_v20 = vpop.f32.mrf.mxu3  ;;  %v1163_v31 = vpop.f32.mrf.mxu0 }
 0x466   : > { %v1229_v33 = vpack.c.bf16 %v3041_v20, %v3033_v22 }
 0x467   : > { %v3045_v34 = vpop.f32.mrf.mxu1 }
 0x468   : > { %v1230_v35 = vpack.c.bf16 %v3045_v34, %v3039_v27 }
 0x46d   : > { %v1142_v36 = vpop.f32.mrf.mxu3  ;;  %v1251_v40 = vpop.f32.mrf.mxu0 }
 0x46e   : > { %v1252_v42 = vadd.f32 %v1251_v40, %v465_v44 }
 0x46f   : > { %v1184_v46 = vpop.f32.mrf.mxu1 }
 0x470   : > { %v1416_v45 = vsel %vm962_vm13, %v1252_v42, -inf }
 0x471   : > { %1417 = vmax.xlane.f32.xlu0 %v1416_v45 }
 0x475   : > { %v1253_v48 = vpop.f32.mrf.mxu0 }
 0x485   : > { %1554 = vrot.lane.b32.xlu0 %v2845_v32, %s2596_s15 }
 0x49c   : > { %v3055_v2 = vpop.f32.mrf.mxu3  ;;  %v1274_v49 = vpop.f32.mrf.mxu1 }
 0x49d   : > { %v1275_v51 = vadd.f32 %v1274_v49, %v465_v44 }
 0x49f   : > { %v1419_v53 = vsel %vm962_vm13, %v1275_v51, -inf }
 0x4a0   : > { %1420 = vmax.xlane.f32.xlu2 %v1419_v53 }
 0x4a4   : > { %v1226_v25 = vpop.f32.mrf.mxu3  ;;  %v1276_v50 = vpop.f32.mrf.mxu1 }
 0x4a5   : > { %v3058_v55 = vpop.f32.mrf.mxu2 }
 0x4a6   : > { %v1231_v57 = vpack.c.bf16 %v3055_v2, %v3058_v55 }
 0x4ac   : > { %v1320_v43 = vpop.f32.mrf.mxu3  ;;  %v1343_v59 = vpop.f32.mrf.mxu0 }
 0x4ad   : > { %v1321_v60 = vadd.f32 %v1320_v43, %v465_v44  ;;  %v1344_v38 = vadd.f32 %v1343_v59, %v465_v44  ;;  %v1205_v62 = vpop.f32.mrf.mxu2 }
 0x4ae   : > { %v1366_v32 = vpop.f32.mrf.mxu1 }
 0x4af   : > { %v1425_v63 = vsel %vm962_vm13, %v1321_v60, -inf  ;;  %v1428_v0 = vsel %vm962_vm13, %v1344_v38, -inf  ;;  %v1367_v12 = vadd.f32 %v1366_v32, %v465_v44 }
 0x4b0   : > { %1426 = vmax.xlane.f32.xlu0 %v1425_v63  ;;  %1429 = vmax.xlane.f32.xlu2 %v1428_v0 }
 0x4b1   : > { %v1431_v15 = vsel %vm962_vm13, %v1367_v12, -inf }
 0x4b4   : > { %v1322_v1 = vpop.f32.mrf.mxu3  ;;  %v1345_v7 = vpop.f32.mrf.mxu0 }
 0x4b5   : > { %v1297_v41 = vpop.f32.mrf.mxu2 }
 0x4b6   : > { %v1298_v8 = vadd.f32 %v1297_v41, %v465_v44  ;;  %v1368_v13 = vpop.f32.mrf.mxu1 }
 0x4b8   : > { %v1422_v14 = vsel %vm962_vm13, %v1298_v8, -inf }
 0x4b9   : > { %1423 = vmax.xlane.f32.xlu1 %v1422_v14 }
 0x4bc   : > { %v1412_v6 = vpop.f32.mrf.mxu3 }
 0x4bd   : > { %v1413_v18 = vadd.f32 %v1412_v6, %v465_v44  ;;  %v1299_v17 = vpop.f32.mrf.mxu2 }
 0x4bf   : > { %v1437_v21 = vsel %vm962_vm13, %v1413_v18, -inf }
 0x4c0   : > { %1438 = vmax.xlane.f32.xlu2 %v1437_v21 }
 0x4c1   : > { %1432 = vmax.xlane.f32.xlu1 %v1431_v15 }
 0x4c4   : > { %v1414_v23 = vpop.f32.mrf.mxu3 }
 0x4c5   : > { %v1389_v54 = vpop.f32.mrf.mxu2 }
 0x4c6   : > { %v3067_v29 = vadd.f32 %v1389_v54, %v465_v44 }
 0x4c8   : > { %v1434_v28 = vsel %vm962_vm13, %v3067_v29, -inf }
 0x4c9   : > { %1435 = vmax.xlane.f32.xlu0 %v1434_v28 }
 0x4cd   : > { %v1391_v31 = vpop.f32.mrf.mxu2 }
 0x4d8   : > { %1575 = vrot.lane.b32.xlu2 %v2849_v30, %s2596_s15 }
 0x4da   : > { %1533 = vrot.lane.b32.xlu1 %v2841_v58, %s2596_s15 }
 0x4dd   : > { %1596 = vrot.lane.b32.xlu0 %v2853_v37, %s2596_s15 }
 0x4e4   : > { %v1418_v36 = vpop.xlane.xlu0 %1417 }
 0x4e5   : > { %v1440_v40 = vsub.f32 %v1252_v42, %v1418_v36 }
 0x4e7   : > { %v1448_v46 = vmul.f32 1.442695, %v1440_v40 }
 0x4e9   : > { %2519 = vpow2.f32 %v1448_v46 }
 0x4ef   : > { %v3078_v48 = vpop.eup %2519 }
 0x4f0   : > { %v1464_v49 = vsel %vm962_vm13, %v3078_v48, 0.0 }
 0x4f7   : > { %v1555_v45 = vpop.permute.xlu0 %1554 }
 0x4f8   : > { %v1560_v44 = vsel %vm1064_vm12, %v1555_v45, 0 }
 0x4f9   : > { %1569 = vmatpush.bf16.msrb.mxu2 %v1560_v44 }
 0x504   : > { %1465 = vadd.xlane.f32.xlu1 %v1464_v49 }
 0x513   : > { %v1421_v30 = vpop.xlane.xlu2 %1420 }
 0x514   : > { %v1441_v53 = vsub.f32 %v1275_v51, %v1421_v30 }
 0x516   : > { %v1450_v58 = vmul.f32 1.442695, %v1441_v53 }
 0x518   : > { %2521 = vpow2.f32 %v1450_v58 }
 0x51e   : > { %v3082_v25 = vpop.eup %2521 }
 0x51f   : > { %v1467_v37 = vsel %vm962_vm13, %v3082_v25, 0.0 }
 0x520   : > { %1468 = vadd.xlane.f32.xlu0 %v1467_v37 }
 0x523   : > { %v1430_v42 = vpop.xlane.xlu2 %1429  ;;  %v1427_v59 = vpop.xlane.xlu0 %1426 }
 0x524   : > { %v1444_v50 = vsub.f32 %v1344_v38, %v1430_v42  ;;  %v1443_v0 = vsub.f32 %v1321_v60, %v1427_v59 }
 0x526   : > { %v1456_v43 = vmul.f32 1.442695, %v1444_v50  ;;  %v1454_v7 = vmul.f32 1.442695, %v1443_v0 }
 0x528   : > { %2523 = vpow2.f32 %v1456_v43 }
 0x52c   : > { %v1424_v62 = vpop.xlane.xlu1 %1423 }
 0x52d   : > { %v1442_v32 = vsub.f32 %v1298_v8, %v1424_v62 }
 0x52e   : > { %v2524_v63 = vpop.eup %2523 }
 0x52f   : > { %v1452_v1 = vmul.f32 1.442695, %v1442_v32  ;;  %v1476_v51 = vsel %vm962_vm13, %v2524_v63, 0.0 }
 0x530   : > { %1477 = vadd.xlane.f32.xlu1 %v1476_v51 }
 0x531   : > { %2525 = vpow2.f32 %v1452_v1 }
 0x532   : > { %2527 = vpow2.f32 %v1454_v7 }
 0x533   : > { %v1439_v41 = vpop.xlane.xlu2 %1438 }
 0x534   : > { %v1447_v13 = vsub.f32 %v1413_v18, %v1439_v41  ;;  %v1433_v14 = vpop.xlane.xlu1 %1432 }
 0x535   : > { %v1445_v6 = vsub.f32 %v1367_v12, %v1433_v14 }
 0x536   : > { %v1462_v17 = vmul.f32 1.442695, %v1447_v13 }
 0x537   : > { %v2526_v21 = vpop.eup %2525  ;;  %v1458_v38 = vmul.f32 1.442695, %v1445_v6 }
 0x538   : > { %2529 = vpow2.f32 %v1462_v17  ;;  %v1470_v15 = vsel %vm962_vm13, %v2526_v21, 0.0  ;;  %v2528_v23 = vpop.eup %2527 }
 0x539   : > { %2531 = vpow2.f32 %v1458_v38  ;;  %1471 = vadd.xlane.f32.xlu0 %v1470_v15  ;;  %v1473_v31 = vsel %vm962_vm13, %v2528_v23, 0.0 }
 0x53b   : > { %v1576_v60 = vpop.permute.xlu2 %1575 }
 0x53c   : > { %v1581_v8 = vsel %vm1064_vm12, %v1576_v60, 0  ;;  %v1436_v36 = vpop.xlane.xlu0 %1435  ;;  %v2417_v60 = vld [vmem:[%s3384_s4] sm:$0xff] }
 0x53d   : > { %1590 = vmatpush.bf16.msrb.mxu3 %v1581_v8  ;;  %v1446_v49 = vsub.f32 %v3067_v29, %v1436_v36 }
 0x53e   : > { %v3089_v54 = vpop.eup %2529 }
 0x53f   : > { %v2532_v28 = vpop.eup %2531  ;;  %v1485_v12 = vsel %vm962_vm13, %v3089_v54, 0.0  ;;  %v1460_v30 = vmul.f32 1.442695, %v1446_v49 }
 0x540   : > { %1486 = vadd.xlane.f32.xlu1 %v1485_v12  ;;  %v1479_v18 = vsel %vm962_vm13, %v2532_v28, 0.0 }
 0x541   : > { %1480 = vadd.xlane.f32.xlu2 %v1479_v18  ;;  %1474 = vadd.xlane.f32.xlu0 %v1473_v31  ;;  %2533 = vpow2.f32 %v1460_v30 }
 0x547   : > { %v2534_v58 = vpop.eup %2533 }
 0x548   : > { %v1482_v42 = vsel %vm962_vm13, %v2534_v58, 0.0 }
 0x54c   : > { %v1534_v40 = vpop.permute.xlu1 %1533 }
 0x54d   : > { %v1539_v46 = vsel %vm1064_vm12, %v1534_v40, 0 }
 0x54e   : > { %1548 = vmatpush.bf16.msrb.mxu1 %v1539_v46 }
 0x54f   : > { %v1597_v45 = vpop.permute.xlu0 %1596 }
 0x550   : > { %v1602_v44 = vsel %vm1064_vm12, %v1597_v45, 0 }
 0x551   : > { %1611 = vmatpush.bf16.msrb.mxu0 %v1602_v44 }
 0x555   : > { %1617 = vrot.lane.b32.xlu0 %v2857_v47, %s2596_s15 }
 0x559   : > { %1659 = vrot.lane.b32.xlu1 %v2880_v61, %s2596_s15  ;;  %1638 = vrot.lane.b32.xlu2 %v2874_v52, %s2596_s15 }
 0x577   : > { %v1466_v53 = vpop.xlane.xlu1 %1465 }
 0x578   : > { %2535 = vrcp.f32 %v1466_v53 }
 0x57e   : > { %v2536_v37 = vpop.eup %2535 }
 0x57f   : > { %v1496_v50 = vmul.f32 %v2536_v37, %v3078_v48  ;;  %1483 = vadd.xlane.f32.xlu0 %v1482_v42 }
 0x581   : > { %v1504_v47 = vpack.c.bf16 %v1496_v50, %v1496_v50 }
 0x583   : > { %2345 = vmatmul.msk.bf16.vlgmr.msra.gmra.mxu0 %vm962_vm13, %v1504_v47 }
 0x593   : > { %v1469_v61 = vpop.xlane.xlu0 %1468 }
 0x594   : > { %2537 = vrcp.f32 %v1469_v61 }
 0x59a   : > { %v2538_v43 = vpop.eup %2537 }
 0x59b   : > { %v1497_v52 = vmul.f32 %v2538_v43, %v3082_v25 }
 0x59d   : > { %v1505_v29 = vpack.c.bf16 %v1497_v52, %v1497_v52 }
 0x59f   : > { %2346 = vmatmul.msk.bf16.vlgmr.msrb.gmra.mxu1 %vm962_vm13, %v1505_v29 }
 0x5a3   : > { %v1478_v59 = vpop.xlane.xlu1 %1477 }
 0x5a4   : > { %2539 = vrcp.f32 %v1478_v59  ;;  %v3148_v59 = vld [vmem:[%s3385_s5] ss:$0 sm:$0xff] }
 0x5aa   : > { %v2540_v62 = vpop.eup %2539 }
 0x5ab   : > { %v1500_v32 = vmul.f32 %v2540_v62, %v2524_v63 }
 0x5ac   : > { %v1472_v0 = vpop.xlane.xlu0 %1471 }
 0x5ad   : > { %2541 = vrcp.f32 %v1472_v0  ;;  %v1508_v1 = vpack.c.bf16 %v1500_v32, %v1500_v32 }
 0x5af   : > { %2349 = vmatmul.msk.bf16.vlgmr.msrb.gmra.mxu0 %vm962_vm13, %v1508_v1 }
 0x5b3   : > { %v2542_v48 = vpop.eup %2541  ;;  %v1487_v63 = vpop.xlane.xlu1 %1486 }
 0x5b4   : > { %v1498_v51 = vmul.f32 %v2542_v48, %v2526_v21  ;;  %v1481_v7 = vpop.xlane.xlu2 %1480  ;;  %v1475_v41 = vpop.xlane.xlu0 %1474 }
 0x5b5   : > { %2543 = vrcp.f32 %v1475_v41 }
 0x5b6   : > { %v1506_v13 = vpack.c.bf16 %v1498_v51, %v1498_v51  ;;  %2545 = vrcp.f32 %v1481_v7 }
 0x5b7   : > { %2547 = vrcp.f32 %v1487_v63 }
 0x5b8   : > { %2347 = vmatmul.msk.bf16.vlgmr.msrb.gmra.mxu2 %vm962_vm13, %v1506_v13 }
 0x5bb   : > { %v2544_v25 = vpop.eup %2543 }
 0x5bc   : > { %v1639_v14 = vpop.permute.xlu2 %1638  ;;  %v1499_v6 = vmul.f32 %v2544_v25, %v2528_v23  ;;  %v2546_v15 = vpop.eup %2545 }
 0x5bd   : > { %v1644_v17 = vsel %vm1064_vm12, %v1639_v14, 0  ;;  %v1501_v21 = vmul.f32 %v2546_v15, %v2532_v28  ;;  %v2548_v12 = vpop.eup %2547 }
 0x5be   : > { %1653 = vmatpush.bf16.msra.mxu2 %v1644_v17  ;;  %v1507_v38 = vpack.c.bf16 %v1499_v6, %v1499_v6  ;;  %v1503_v31 = vmul.f32 %v2548_v12, %v3089_v54  ;;  %v2418_v54 = vld [vmem:[%s3384_s4 + $0x8] sm:$0xff] }
 0x5bf   : > { %v1509_v23 = vpack.c.bf16 %v1501_v21, %v1501_v21  ;;  %1709 = vmatpush.bf16.msra.mxu0 %v2418_v54 }
 0x5c0   : > { %2348 = vmatmul.msk.bf16.vlgmr.msrb.gmra.mxu3 %vm962_vm13, %v1507_v38  ;;  %v1511_v28 = vpack.c.bf16 %v1503_v31, %v1503_v31 }
 0x5c7   : > { %v1618_v8 = vpop.permute.xlu0 %1617 }
 0x5c8   : > { %v1623_v18 = vsel %vm1064_vm12, %v1618_v8, 0 }
 0x5c9   : > { %1632 = vmatpush.bf16.msra.mxu1 %v1623_v18 }
 0x5cb   : > { %v1660_v36 = vpop.permute.xlu1 %1659 }
 0x5cc   : > { %v1665_v40 = vsel %vm1064_vm12, %v1660_v36, 0  ;;  %2350 = vmatmul.msk.bf16.vlgmr.msra.gmra.mxu1 %vm962_vm13, %v1509_v23 }
 0x5cd   : > { %1756 = vmatpush.bf16.msrb.mxu1 %v2417_v60  ;;  %1674 = vmatpush.bf16.msra.mxu3 %v1665_v40 }
 0x5d0   : > { %2352 = vmatmul.msk.bf16.vlgmr.msra.gmra.mxu3 %vm962_vm13, %v1511_v28 }
 0x5dc   : > { %2365 = vmatmul.msk.bf16.vlgmr.msrb.gmra.mxu1 %vm774_vm11, %v1228_v26 }
 0x5ec   : > { %2366 = vmatmul.msk.bf16.gmra.mxu1 %vm774_vm11, %v1229_v33 }
 0x5f2   : > { %v1484_v46 = vpop.xlane.xlu0 %1483 }
 0x5f3   : > { %2549 = vrcp.f32 %v1484_v46 }
 0x5f9   : > { %v2550_v45 = vpop.eup %2549 }
 0x5fa   : > { %v1502_v44 = vmul.f32 %v2550_v45, %v2534_v58 }
 0x5fc   : > { %v1510_v49 = vpack.c.bf16 %v1502_v44, %v1502_v44  ;;  %2367 = vmatmul.msk.bf16.gmra.mxu1 %vm774_vm11, %v1230_v35 }
 0x5fe   : > { %2351 = vmatmul.msk.bf16.vlgmr.msra.gmra.mxu2 %vm962_vm13, %v1510_v49 }
 0x600   : > { %v1529_v56 = vpop.f32.mrf.mxu0 }
 0x608   : > { %v1531_v22 = vpop.f32.mrf.mxu0 }
 0x60c   : > { %2368 = vmatmul.msk.bf16.gmra.mxu1 %vm774_vm11, %v1231_v57 }
 0x61c   : > { %v1550_v19 = vpop.f32.mrf.mxu1 }
 0x61d   : > { %v1680_v26 = vpack.c.bf16 %v1550_v19, %v1529_v56 }
 0x61f   : > { %2357 = vmatmul.msk.bf16.vlgmr.msra.gmra.mxu0 %vm774_vm11, %v1680_v26 }
 0x624   : > { %v1552_v20 = vpop.f32.mrf.mxu1 }
 0x62c   : > { %v1613_v33 = vpop.f32.mrf.mxu0 }
 0x634   : > { %v1615_v30 = vpop.f32.mrf.mxu0 }
 0x63b   : > { %v1571_v53 = vpop.f32.mrf.mxu2 }
 0x643   : > { %v1573_v27 = vpop.f32.mrf.mxu2  ;;  %v1592_v34 = vpop.f32.mrf.mxu3 }
 0x644   : > { %v1681_v35 = vpack.c.bf16 %v1592_v34, %v1571_v53 }
 0x646   : > { %2358 = vmatmul.msk.bf16.gmra.mxu0 %vm774_vm11, %v1681_v35 }
 0x649   : > { %v1634_v58 = vpop.f32.mrf.mxu1 }
 0x64a   : > { %v1682_v2 = vpack.c.bf16 %v1634_v58, %v1613_v33 }
 0x64b   : > { %v1594_v37 = vpop.f32.mrf.mxu3 }
 0x651   : > { %v1636_v42 = vpop.f32.mrf.mxu1 }
 0x653   : > { %v1676_v50 = vpop.f32.mrf.mxu3 }
 0x656   : > { %2359 = vmatmul.msk.bf16.gmra.mxu0 %vm774_vm11, %v1682_v2 }
 0x659   : > { %v1758_v43 = vpop.f32.mrf.mxu1 }
 0x65b   : > { %v1678_v55 = vpop.f32.mrf.mxu3 }
 0x661   : > { %v1760_v1 = vpop.f32.mrf.mxu1 }
 0x681   : > { %v1655_v57 = vpop.f32.mrf.mxu2 }
 0x682   : > { %v1683_v47 = vpack.c.bf16 %v1676_v50, %v1655_v57 }
 0x684   : > { %2360 = vmatmul.msk.bf16.gmra.mxu0 %vm774_vm11, %v1683_v47 }
 0x689   : > { %v1657_v61 = vpop.f32.mrf.mxu2 }
 0x69c   : > { %v1711_v52 = vpop.f32.mrf.mxu0 }
 0x69d   : > { %v1759_v29 = vadd.f32 %v1758_v43, %v1711_v52 }
 0x69f   : > { %v1778_v62 = vadd.f32 %v2687_v5, %v1759_v29  ;;  %v1763_v5 = vpop.f32.mrf.mxu1 }
 0x6a1   : > { %v3152_v32 = vadd.f32 %v3148_v59, %v1778_v62 }
 0x6a3   : > { %v1797_v0 = vsel %vm498_vm0, %v3152_v32, 0.0 }
 0x6a4   : > { %v1713_v48 = vpop.f32.mrf.mxu0  ;;  %1798 = vadd.xlane.f32.xlu2 %v1797_v0 }
 0x6a5   : > { %v1761_v51 = vadd.f32 %v1760_v1, %v1713_v48 }
 0x6a7   : > { %v1779_v7 = vadd.f32 %v2699_v11, %v1761_v51  ;;  %v1765_v17 = vpop.f32.mrf.mxu1 }
 0x6a9   : > { %v3158_v41 = vadd.f32 %v3148_v59, %v1779_v7 }
 0x6ab   : > { %v1800_v13 = vsel %vm498_vm0, %v3158_v41, 0.0 }
 0x6ac   : > { %1801 = vadd.xlane.f32.xlu0 %v1800_v13 }
 0x6af   : > { %v1768_v8 = vpop.f32.mrf.mxu1 }
 0x6b7   : > { %v1770_v40 = vpop.f32.mrf.mxu1 }
 0x6bf   : > { %v1773_v44 = vpop.f32.mrf.mxu1 }
 0x6c3   : > { %v1716_v25 = vpop.f32.mrf.mxu0 }
 0x6c4   : > { %v1764_v14 = vadd.f32 %v1763_v5, %v1716_v25 }
 0x6c6   : > { %v1780_v6 = vadd.f32 %v2685_v4, %v1764_v14 }
 0x6c7   : > { %v1775_v27 = vpop.f32.mrf.mxu1 }
 0x6c8   : > { %v3164_v63 = vadd.f32 %v3148_v59, %v1780_v6 }
 0x6ca   : > { %v1803_v38 = vsel %vm498_vm0, %v3164_v63, 0.0 }
 0x6cb   : > { %v1718_v11 = vpop.f32.mrf.mxu0  ;;  %1804 = vadd.xlane.f32.xlu1 %v1803_v38 }
 0x6cc   : > { %v1766_v15 = vadd.f32 %v1765_v17, %v1718_v11  ;;  %v2420_v11 = vld [vmem:[%s3389_s9 + $0x8] sm:$0xff] }
 0x6cd   : > { %2032 = vmatpush.bf16.msrb.mxu2 %v2420_v11 }
 0x6ce   : > { %v1781_v21 = vadd.f32 %v2697_v10, %v1766_v15 }
 0x6d0   : > { %v3170_v60 = vadd.f32 %v3148_v59, %v1781_v21 }
 0x6d2   : > { %v1806_v12 = vsel %vm498_vm0, %v3170_v60, 0.0 }
 0x6d3   : > { %v1721_v4 = vpop.f32.mrf.mxu0  ;;  %1807 = vadd.xlane.f32.xlu0 %v1806_v12 }
 0x6d4   : > { %v1769_v18 = vadd.f32 %v1768_v8, %v1721_v4  ;;  %v2419_v8 = vld [vmem:[%s3389_s9] sm:$0xff] }
 0x6d5   : > { %2033 = vmatpush.bf16.msrb.mxu2 %v2419_v8 }
 0x6d6   : > { %v1782_v23 = vadd.f32 %v2683_v3, %v1769_v18 }
 0x6d8   : > { %v3176_v31 = vadd.f32 %v3148_v59, %v1782_v23 }
 0x6da   : > { %v1809_v36 = vsel %vm498_vm0, %v3176_v31, 0.0 }
 0x6db   : > { %v1723_v10 = vpop.f32.mrf.mxu0  ;;  %1810 = vadd.xlane.f32.xlu0 %v1809_v36 }
 0x6dc   : > { %v1771_v28 = vadd.f32 %v1770_v40, %v1723_v10 }
 0x6de   : > { %v1783_v54 = vadd.f32 %v2695_v9, %v1771_v28 }
 0x6e0   : > { %v3182_v46 = vadd.f32 %v3148_v59, %v1783_v54 }
 0x6e2   : > { %v1812_v45 = vsel %vm498_vm0, %v3182_v46, 0.0 }
 0x6e3   : > { %1813 = vadd.xlane.f32.xlu0 %v1812_v45 }
 0x701   : > { %v1726_v3 = vpop.f32.mrf.mxu0 }
 0x702   : > { %v1774_v22 = vadd.f32 %v1773_v44, %v1726_v3 }
 0x704   : > { %v1784_v9 = vadd.f32 %v2707_v16, %v1774_v22 }
 0x706   : > { %v3196_v34 = vadd.f32 %v3148_v59, %v1784_v9 }
 0x708   : > { %v1815_v42 = vsel %vm498_vm0, %v3196_v34, 0.0 }
 0x709   : > { %v1728_v33 = vpop.f32.mrf.mxu0 }
 0x70a   : > { %v1776_v35 = vadd.f32 %v1775_v27, %v1728_v33 }
 0x70c   : > { %v1785_v16 = vadd.f32 %v2724_v39, %v1776_v35 }
 0x70e   : > { %v3208_v2 = vadd.f32 %v3148_v59, %v1785_v16 }
 0x710   : > { %v1818_v55 = vsel %vm498_vm0, %v3208_v2, 0.0 }
 0x717   : > { %v1799_v49 = vpop.xlane.xlu2 %1798 }
 0x718   : > { %v1821_v56 = vmul.f32 %v1799_v49, %v2711_v24 }
 0x71a   : > { %v3188_v19 = vsub.f32 %v3152_v32, %v1821_v56 }
 0x71c   : > { %v1837_v26 = vmul.f32 %v3188_v19, %v3188_v19 }
 0x71e   : > { %v1845_v20 = vsel %vm498_vm0, %v1837_v26, 0.0 }
 0x71f   : > { %1846 = vadd.xlane.f32.xlu0 %v1845_v20  ;;  %v1802_v30 = vpop.xlane.xlu0 %1801 }
 0x720   : > { %v1822_v53 = vmul.f32 %v1802_v30, %v2711_v24 }
 0x722   : > { %v3199_v58 = vsub.f32 %v3158_v41, %v1822_v53 }
 0x724   : > { %v1838_v37 = vmul.f32 %v3199_v58, %v3199_v58 }
 0x726   : > { %v1848_v50 = vsel %vm498_vm0, %v1838_v37, 0.0 }
 0x727   : > { %1816 = vadd.xlane.f32.xlu0 %v1815_v42  ;;  %1849 = vadd.xlane.f32.xlu2 %v1848_v50  ;;  %v3265_v42 = vld [vmem:[%s3387_s7] ss:$0 sm:$0xff] }
 0x72f   : > { %1819 = vadd.xlane.f32.xlu2 %v1818_v55 }
 0x73e   : > { %v1805_v57 = vpop.xlane.xlu1 %1804 }
 0x73f   : > { %v1823_v47 = vmul.f32 %v1805_v57, %v2711_v24 }
 0x741   : > { %v3214_v61 = vsub.f32 %v3164_v63, %v1823_v47  ;;  %v3271_v47 = vld [vmem:[%s3388_s8] ss:$0 sm:$0xff] }
 0x743   : > { %v1839_v39 = vmul.f32 %v3214_v61, %v3214_v61 }
 0x745   : > { %v1851_v43 = vsel %vm498_vm0, %v1839_v39, 0.0 }
 0x746   : > { %1852 = vadd.xlane.f32.xlu1 %v1851_v43  ;;  %v1808_v52 = vpop.xlane.xlu0 %1807 }
 0x747   : > { %v1824_v29 = vmul.f32 %v1808_v52, %v2711_v24 }
 0x749   : > { %v3221_v59 = vsub.f32 %v3170_v60, %v1824_v29 }
 0x74b   : > { %v1840_v62 = vmul.f32 %v3221_v59, %v3221_v59 }
 0x74d   : > { %v1854_v0 = vsel %vm498_vm0, %v1840_v62, 0.0 }
 0x74e   : > { %1855 = vadd.xlane.f32.xlu0 %v1854_v0  ;;  %v1811_v1 = vpop.xlane.xlu0 %1810 }
 0x74f   : > { %v1825_v48 = vmul.f32 %v1811_v1, %v2711_v24 }
 0x751   : > { %v3228_v51 = vsub.f32 %v3176_v31, %v1825_v48 }
 0x753   : > { %v1841_v7 = vmul.f32 %v3228_v51, %v3228_v51 }
 0x755   : > { %v1857_v13 = vsel %vm498_vm0, %v1841_v7, 0.0 }
 0x756   : > { %1858 = vadd.xlane.f32.xlu2 %v1857_v13  ;;  %v1814_v5 = vpop.xlane.xlu0 %1813 }
 0x757   : > { %v1826_v25 = vmul.f32 %v1814_v5, %v2711_v24 }
 0x759   : > { %v3235_v14 = vsub.f32 %v3182_v46, %v1826_v25 }
 0x75b   : > { %v1842_v6 = vmul.f32 %v3235_v14, %v3235_v14 }
 0x75d   : > { %v1860_v17 = vsel %vm498_vm0, %v1842_v6, 0.0 }
 0x75e   : > { %1861 = vadd.xlane.f32.xlu1 %v1860_v17 }
 0x792   : > { %v1847_v38 = vpop.xlane.xlu0 %1846 }
 0x793   : > { %v1869_v15 = vmul.f32 %v1847_v38, %v2711_v24 }
 0x795   : > { %v1877_v21 = vadd.f32 1e-05, %v1869_v15 }
 0x797   : > { %2551 = vrsqrt.f32 %v1877_v21  ;;  %vm1891_vm15 = vweird.f32 %v1877_v21 }
 0x79a   : > { %v1850_v12 = vpop.xlane.xlu2 %1849  ;;  %v1817_v4 = vpop.xlane.xlu0 %1816 }
 0x79b   : > { %v1870_v18 = vmul.f32 %v1850_v12, %v2711_v24  ;;  %v1827_v23 = vmul.f32 %v1817_v4, %v2711_v24 }
 0x79d   : > { %v2552_v36 = vpop.eup %2551  ;;  %v1878_v40 = vadd.f32 1e-05, %v1870_v18  ;;  %v3250_v10 = vsub.f32 %v3196_v34, %v1827_v23 }
 0x79e   : > { %v1886_v28 = vmul.f32 %v2552_v36, %v1877_v21  ;;  %vm1892_vm14 = vweird.f32 %v2552_v36 }
 0x79f   : > { %2553 = vrsqrt.f32 %v1878_v40  ;;  %v1843_v54 = vmul.f32 %v3250_v10, %v3250_v10  ;;  %vm1893_vm1 = vmor %vm1891_vm15, %vm1892_vm14  ;;  %vm1901_vm3 = vweird.f32 %v1878_v40 }
 0x7a0   : > { %v1887_v45 = vmul.f32 %v2552_v36, %v1886_v28 }
 0x7a1   : > { %v1863_v3 = vsel %vm498_vm0, %v1843_v54, 0.0 }
 0x7a2   : > { %v1888_v44 = vmul.f32 0.5, %v1887_v45  ;;  %v1820_v49 = vpop.xlane.xlu2 %1819  ;;  %1864 = vadd.xlane.f32.xlu0 %v1863_v3 }
 0x7a3   : > { %v1828_v56 = vmul.f32 %v1820_v49, %v2711_v24 }
 0x7a4   : > { %v1889_v22 = vsub.f32 1.5, %v1888_v44 }
 0x7a5   : > { %v2554_v26 = vpop.eup %2553  ;;  %v3257_v9 = vsub.f32 %v3208_v2, %v1828_v56 }
 0x7a6   : > { %v1890_v20 = vmul.f32 %v2552_v36, %v1889_v22  ;;  %v1896_v33 = vmul.f32 %v2554_v26, %v1878_v40  ;;  %vm1902_vm2 = vweird.f32 %v2554_v26 }
 0x7a7   : > { %v1844_v30 = vmul.f32 %v3257_v9, %v3257_v9  ;;  %vm1903_vm4 = vmor %vm1901_vm3, %vm1902_vm2 }
 0x7a8   : > { %v1897_v53 = vmul.f32 %v2554_v26, %v1896_v33  ;;  %v1894_v35 = vsel %vm1893_vm1, %v2552_v36, %v1890_v20 }
 0x7a9   : > { %v1866_v27 = vsel %vm498_vm0, %v1844_v30, 0.0  ;;  %v1965_v50 = vmul.f32 %v1894_v35, %v3188_v19 }
 0x7aa   : > { %v1898_v37 = vmul.f32 0.5, %v1897_v53  ;;  %1867 = vadd.xlane.f32.xlu2 %v1866_v27 }
 0x7ab   : > { %v1976_v39 = vmul.f32 %v3265_v42, %v1965_v50 }
 0x7ac   : > { %v1899_v16 = vsub.f32 1.5, %v1898_v37 }
 0x7ad   : > { %v1987_v29 = vadd.f32 %v3271_v47, %v1976_v39 }
 0x7ae   : > { %v1900_v55 = vmul.f32 %v2554_v26, %v1899_v16 }
 0x7b0   : > { %v1904_v57 = vsel %vm1903_vm4, %v2554_v26, %v1900_v55 }
 0x7b1   : > { %v1966_v43 = vmul.f32 %v1904_v57, %v3199_v58 }
 0x7b3   : > { %v1977_v52 = vmul.f32 %v3265_v42, %v1966_v43 }
 0x7b5   : > { %v1988_v62 = vadd.f32 %v3271_v47, %v1977_v52 }
 0x7b7   : > { %v1995_v19 = vpack.c.bf16 %v1988_v62, %v1987_v29 }
 0x7b9   : > { %2377 = vmatmul.msk.bf16.vlgmr.msrb.gmra.mxu2 %vm498_vm0, %v1995_v19  ;;  %v1853_v0 = vpop.xlane.xlu1 %1852 }
 0x7ba   : > { %v1871_v1 = vmul.f32 %v1853_v0, %v2711_v24 }
 0x7bc   : > { %v1879_v48 = vadd.f32 1e-05, %v1871_v1 }
 0x7be   : > { %2555 = vrsqrt.f32 %v1879_v48  ;;  %vm1911_vm6 = vweird.f32 %v1879_v48 }
 0x7c1   : > { %v1856_v7 = vpop.xlane.xlu0 %1855 }
 0x7c2   : > { %v1872_v13 = vmul.f32 %v1856_v7, %v2711_v24 }
 0x7c4   : > { %v2556_v5 = vpop.eup %2555  ;;  %v1880_v25 = vadd.f32 1e-05, %v1872_v13 }
 0x7c5   : > { %v1906_v58 = vmul.f32 %v2556_v5, %v1879_v48  ;;  %vm1912_vm5 = vweird.f32 %v2556_v5 }
 0x7c6   : > { %2557 = vrsqrt.f32 %v1880_v25  ;;  %vm1913_vm7 = vmor %vm1911_vm6, %vm1912_vm5  ;;  %vm1921_vm9 = vweird.f32 %v1880_v25 }
 0x7c7   : > { %v1907_v6 = vmul.f32 %v2556_v5, %v1906_v58 }
 0x7c9   : > { %v1908_v17 = vmul.f32 0.5, %v1907_v6  ;;  %v1859_v38 = vpop.xlane.xlu2 %1858 }
 0x7ca   : > { %v1873_v11 = vmul.f32 %v1859_v38, %v2711_v24 }
 0x7cb   : > { %v1909_v15 = vsub.f32 1.5, %v1908_v17 }
 0x7cc   : > { %v2558_v21 = vpop.eup %2557  ;;  %v1881_v8 = vadd.f32 1e-05, %v1873_v11  ;;  %v2428_v11 = vld [vmem:[%s3391_s11 + $0x38] sm:$0xff] }
 0x7cd   : > { %v1910_v12 = vmul.f32 %v2556_v5, %v1909_v15  ;;  %v1916_v4 = vmul.f32 %v2558_v21, %v1880_v25  ;;  %vm1922_vm8 = vweird.f32 %v2558_v21  ;;  %2179 = vmatpush.bf16.msrb.mxu3 %v2428_v11 }
 0x7ce   : > { %2559 = vrsqrt.f32 %v1881_v8  ;;  %vm1923_vm10 = vmor %vm1921_vm9, %vm1922_vm8  ;;  %vm1931_vm12 = vweird.f32 %v1881_v8 }
 0x7cf   : > { %v1917_v18 = vmul.f32 %v2558_v21, %v1916_v4  ;;  %v1914_v23 = vsel %vm1913_vm7, %v2556_v5, %v1910_v12 }
 0x7d0   : > { %v1967_v3 = vmul.f32 %v1914_v23, %v3214_v61  ;;  %v2426_v23 = vld [vmem:[%s3391_s11 + $0x28] sm:$0xff] }
 0x7d1   : > { %v1918_v36 = vmul.f32 0.5, %v1917_v18  ;;  %v1862_v40 = vpop.xlane.xlu1 %1861 }
 0x7d2   : > { %v1874_v28 = vmul.f32 %v1862_v40, %v2711_v24  ;;  %v1978_v33 = vmul.f32 %v3265_v42, %v1967_v3 }
 0x7d3   : > { %v1919_v54 = vsub.f32 1.5, %v1918_v36 }
 0x7d4   : > { %v2560_v45 = vpop.eup %2559  ;;  %v1882_v44 = vadd.f32 1e-05, %v1874_v28  ;;  %v1989_v37 = vadd.f32 %v3271_v47, %v1978_v33 }
 0x7d5   : > { %v1920_v49 = vmul.f32 %v2558_v21, %v1919_v54  ;;  %v1926_v56 = vmul.f32 %v2560_v45, %v1881_v8  ;;  %vm1932_vm11 = vweird.f32 %v2560_v45  ;;  %v2427_v8 = vld [vmem:[%s3391_s11 + $0x30] sm:$0xff]  ;;  %v2425_v54 = vld [vmem:[%s3391_s11 + $0x20] sm:$0xff] }
 0x7d6   : > { %2561 = vrsqrt.f32 %v1882_v44  ;;  %vm1933_vm13 = vmor %vm1931_vm12, %vm1932_vm11  ;;  %vm1941_vm15 = vweird.f32 %v1882_v44  ;;  %2180 = vmatpush.bf16.msrb.mxu3 %v2427_v8 }
 0x7d7   : > { %v1924_v22 = vsel %vm1923_vm10, %v2558_v21, %v1920_v49  ;;  %v1927_v26 = vmul.f32 %v2560_v45, %v1926_v56  ;;  %v2424_v49 = vld [vmem:[%s3391_s11 + $0x18] sm:$0xff] }
 0x7d8   : > { %v1968_v20 = vmul.f32 %v1924_v22, %v3221_v59 }
 0x7d9   : > { %v1928_v30 = vmul.f32 0.5, %v1927_v26 }
 0x7da   : > { %v1979_v53 = vmul.f32 %v3265_v42, %v1968_v20  ;;  %2181 = vmatpush.bf16.msrb.mxu3 %v2426_v23  ;;  %v2423_v20 = vld [vmem:[%s3391_s11 + $0x10] sm:$0xff] }
 0x7db   : > { %v1929_v27 = vsub.f32 1.5, %v1928_v30 }
 0x7dc   : > { %v2562_v35 = vpop.eup %2561  ;;  %v1990_v61 = vadd.f32 %v3271_v47, %v1979_v53  ;;  %v3326_v53 = vld [vmem:[%s3390_s10] ss:$0 sm:$0xff] }
 0x7dd   : > { %v1930_v16 = vmul.f32 %v2560_v45, %v1929_v27  ;;  %v1936_v50 = vmul.f32 %v2562_v35, %v1882_v44  ;;  %vm1942_vm14 = vweird.f32 %v2562_v35 }
 0x7de   : > { %v1996_v55 = vpack.c.bf16 %v1990_v61, %v1989_v37  ;;  %vm1943_vm1 = vmor %vm1941_vm15, %vm1942_vm14  ;;  %2182 = vmatpush.bf16.msrb.mxu3 %v2425_v54 }
 0x7df   : > { %v1937_v57 = vmul.f32 %v2562_v35, %v1936_v50  ;;  %v1934_v59 = vsel %vm1933_vm13, %v2560_v45, %v1930_v16 }
 0x7e0   : > { %2378 = vmatmul.msk.bf16.gmra.mxu2 %vm498_vm0, %v1996_v55  ;;  %v1969_v52 = vmul.f32 %v1934_v59, %v3228_v51 }
 0x7e1   : > { %v1938_v39 = vmul.f32 0.5, %v1937_v57 }
 0x7e2   : > { %v1980_v0 = vmul.f32 %v3265_v42, %v1969_v52  ;;  %2183 = vmatpush.bf16.msrb.mxu3 %v2424_v49 }
 0x7e3   : > { %v1939_v43 = vsub.f32 1.5, %v1938_v39 }
 0x7e4   : > { %v1991_v48 = vadd.f32 %v3271_v47, %v1980_v0 }
 0x7e5   : > { %v1940_v29 = vmul.f32 %v2562_v35, %v1939_v43 }
 0x7e6   : > { %2184 = vmatpush.bf16.msrb.mxu3 %v2423_v20 }
 0x7e7   : > { %v1944_v62 = vsel %vm1943_vm1, %v2562_v35, %v1940_v29 }
 0x7e8   : > { %v1970_v19 = vmul.f32 %v1944_v62, %v3235_v14 }
 0x7ea   : > { %v1981_v1 = vmul.f32 %v3265_v42, %v1970_v19 }
 0x7ec   : > { %v1992_v7 = vadd.f32 %v3271_v47, %v1981_v1 }
 0x7ee   : > { %v1997_v13 = vpack.c.bf16 %v1992_v7, %v1991_v48 }
 0x7f0   : > { %2379 = vmatmul.msk.bf16.gmra.mxu2 %vm498_vm0, %v1997_v13 }
 0x815   : > { %v1865_v5 = vpop.xlane.xlu0 %1864 }
 0x816   : > { %v1875_v51 = vmul.f32 %v1865_v5, %v2711_v24 }
 0x818   : > { %v1883_v25 = vadd.f32 1e-05, %v1875_v51 }
 0x81a   : > { %2563 = vrsqrt.f32 %v1883_v25  ;;  %vm1951_vm3 = vweird.f32 %v1883_v25 }
 0x81d   : > { %v1868_v58 = vpop.xlane.xlu2 %1867 }
 0x81e   : > { %v1876_v6 = vmul.f32 %v1868_v58, %v2711_v24 }
 0x820   : > { %v2564_v14 = vpop.eup %2563  ;;  %v1884_v17 = vadd.f32 1e-05, %v1876_v6 }
 0x821   : > { %v1946_v38 = vmul.f32 %v2564_v14, %v1883_v25  ;;  %vm1952_vm2 = vweird.f32 %v2564_v14 }
 0x822   : > { %2565 = vrsqrt.f32 %v1884_v17  ;;  %vm1953_vm4 = vmor %vm1951_vm3, %vm1952_vm2  ;;  %vm1961_vm6 = vweird.f32 %v1884_v17 }
 0x823   : > { %v1947_v15 = vmul.f32 %v2564_v14, %v1946_v38 }
 0x825   : > { %v1948_v21 = vmul.f32 0.5, %v1947_v15 }
 0x827   : > { %v1949_v12 = vsub.f32 1.5, %v1948_v21 }
 0x828   : > { %v2566_v4 = vpop.eup %2565 }
 0x829   : > { %v1950_v18 = vmul.f32 %v2564_v14, %v1949_v12  ;;  %v1956_v24 = vmul.f32 %v2566_v4, %v1884_v17  ;;  %vm1962_vm5 = vweird.f32 %v2566_v4 }
 0x82a   : > { %vm1963_vm7 = vmor %vm1961_vm6, %vm1962_vm5 }
 0x82b   : > { %v1957_v36 = vmul.f32 %v2566_v4, %v1956_v24  ;;  %v1954_v40 = vsel %vm1953_vm4, %v2564_v14, %v1950_v18 }
 0x82c   : > { %v1971_v3 = vmul.f32 %v1954_v40, %v3250_v10 }
 0x82d   : > { %v1958_v28 = vmul.f32 0.5, %v1957_v36 }
 0x82e   : > { %v1982_v26 = vmul.f32 %v3265_v42, %v1971_v3 }
 0x82f   : > { %v1959_v45 = vsub.f32 1.5, %v1958_v28 }
 0x830   : > { %v1993_v10 = vadd.f32 %v3271_v47, %v1982_v26 }
 0x831   : > { %v1960_v44 = vmul.f32 %v2566_v4, %v1959_v45 }
 0x833   : > { %v1964_v56 = vsel %vm1963_vm7, %v2566_v4, %v1960_v44 }
 0x834   : > { %v1972_v22 = vmul.f32 %v1964_v56, %v3257_v9  ;;  %v2422_v9 = vld [vmem:[%s3391_s11 + $0x8] sm:$0xff] }
 0x835   : > { %2185 = vmatpush.bf16.msrb.mxu3 %v2422_v9 }
 0x836   : > { %v1983_v33 = vmul.f32 %v3265_v42, %v1972_v22  ;;  %v2421_v42 = vld [vmem:[%s3391_s11] sm:$0xff] }
 0x838   : > { %v1994_v30 = vadd.f32 %v3271_v47, %v1983_v33 }
 0x839   : > { %2186 = vmatpush.bf16.msrb.mxu3 %v2421_v42 }
 0x83a   : > { %v1998_v27 = vpack.c.bf16 %v1994_v30, %v1993_v10 }
 0x83c   : > { %v2035_v35 = vpop.f32.mrf.mxu2  ;;  %2380 = vmatmul.msk.bf16.gmra.mxu2 %vm498_vm0, %v1998_v27  ;;  %vm2235_vm0 = vcmask 257024  }
 0x83d   : > { %v2036_v47 = vadd.f32 %v3326_v53, %v2035_v35 }
 0x83f   : > { %v2055_v37 = vmul.f32 %v2036_v47, %v2036_v47 }
 0x841   : > { %v2063_v61 = vmul.f32 %v2055_v37, %v2036_v47 }
 0x843   : > { %v2071_v16 = vmul.f32 0.044715, %v2063_v61 }
 0x844   : > { %v2037_v50 = vpop.f32.mrf.mxu2 }
 0x845   : > { %v2079_v55 = vadd.f32 %v2071_v16, %v2036_v47  ;;  %v2038_v57 = vadd.f32 %v3326_v53, %v2037_v50 }
 0x847   : > { %v2087_v59 = vmul.f32 0.7978846, %v2079_v55  ;;  %v2056_v39 = vmul.f32 %v2038_v57, %v2038_v57 }
 0x849   : > { %v2064_v43 = vmul.f32 %v2056_v39, %v2038_v57  ;;  %2567 = vtanh.f32 %v2087_v59 }
 0x84b   : > { %v2072_v52 = vmul.f32 0.044715, %v2064_v43 }
 0x84d   : > { %v2080_v29 = vadd.f32 %v2072_v52, %v2038_v57 }
 0x84f   : > { %v2088_v62 = vmul.f32 0.7978846, %v2080_v29  ;;  %v2568_v19 = vpop.eup %2567 }
 0x850   : > { %v2103_v0 = vadd.f32 1.0, %v2568_v19 }
 0x851   : > { %2569 = vtanh.f32 %v2088_v62 }
 0x852   : > { %v2111_v48 = vmul.f32 0.5, %v2103_v0 }
 0x854   : > { %v2119_v5 = vmul.f32 %v2111_v48, %v2036_v47 }
 0x857   : > { %v2570_v1 = vpop.eup %2569 }
 0x858   : > { %v2104_v7 = vadd.f32 1.0, %v2570_v1 }
 0x85a   : > { %v2112_v13 = vmul.f32 0.5, %v2104_v7 }
 0x85c   : > { %v2120_v51 = vmul.f32 %v2112_v13, %v2038_v57 }
 0x85e   : > { %v2127_v25 = vpack.c.bf16 %v2120_v51, %v2119_v5 }
 0x860   : > { %2187 = vmatmul.bf16.vlgmr.msrb.gmra.mxu3 %v2127_v25 }
 0x863   : > { %v2040_v58 = vpop.f32.mrf.mxu2 }
 0x864   : > { %v2041_v6 = vadd.f32 %v3326_v53, %v2040_v58 }
 0x866   : > { %v2057_v14 = vmul.f32 %v2041_v6, %v2041_v6 }
 0x868   : > { %v2065_v17 = vmul.f32 %v2057_v14, %v2041_v6 }
 0x86a   : > { %v2073_v38 = vmul.f32 0.044715, %v2065_v17 }
 0x86b   : > { %v2042_v11 = vpop.f32.mrf.mxu2 }
 0x86c   : > { %v2081_v15 = vadd.f32 %v2073_v38, %v2041_v6  ;;  %v2043_v21 = vadd.f32 %v3326_v53, %v2042_v11 }
 0x86e   : > { %v2058_v8 = vmul.f32 %v2043_v21, %v2043_v21  ;;  %v2089_v12 = vmul.f32 0.7978846, %v2081_v15 }
 0x870   : > { %v2066_v4 = vmul.f32 %v2058_v8, %v2043_v21  ;;  %2571 = vtanh.f32 %v2089_v12 }
 0x872   : > { %v2074_v18 = vmul.f32 0.044715, %v2066_v4 }
 0x873   : > { %v2045_v24 = vpop.f32.mrf.mxu2 }
 0x874   : > { %v2082_v23 = vadd.f32 %v2074_v18, %v2043_v21  ;;  %v2046_v36 = vadd.f32 %v3326_v53, %v2045_v24 }
 0x876   : > { %v2059_v40 = vmul.f32 %v2046_v36, %v2046_v36  ;;  %v2090_v28 = vmul.f32 0.7978846, %v2082_v23  ;;  %v2572_v54 = vpop.eup %2571 }
 0x877   : > { %v2105_v49 = vadd.f32 1.0, %v2572_v54 }
 0x878   : > { %v2067_v45 = vmul.f32 %v2059_v40, %v2046_v36  ;;  %2573 = vtanh.f32 %v2090_v28 }
 0x879   : > { %v2113_v30 = vmul.f32 0.5, %v2105_v49 }
 0x87a   : > { %v2075_v3 = vmul.f32 0.044715, %v2067_v45 }
 0x87b   : > { %v2047_v44 = vpop.f32.mrf.mxu2  ;;  %v2121_v42 = vmul.f32 %v2113_v30, %v2041_v6 }
 0x87c   : > { %v2083_v56 = vadd.f32 %v2075_v3, %v2046_v36  ;;  %v2048_v22 = vadd.f32 %v3326_v53, %v2047_v44 }
 0x87e   : > { %v2574_v26 = vpop.eup %2573  ;;  %v2060_v20 = vmul.f32 %v2048_v22, %v2048_v22  ;;  %v2091_v33 = vmul.f32 0.7978846, %v2083_v56 }
 0x87f   : > { %v2106_v10 = vadd.f32 1.0, %v2574_v26 }
 0x880   : > { %v2068_v9 = vmul.f32 %v2060_v20, %v2048_v22  ;;  %2575 = vtanh.f32 %v2091_v33 }
 0x881   : > { %v2114_v27 = vmul.f32 0.5, %v2106_v10 }
 0x882   : > { %v2076_v35 = vmul.f32 0.044715, %v2068_v9 }
 0x883   : > { %v2122_v47 = vmul.f32 %v2114_v27, %v2043_v21 }
 0x884   : > { %v2084_v37 = vadd.f32 %v2076_v35, %v2048_v22 }
 0x885   : > { %v2128_v61 = vpack.c.bf16 %v2122_v47, %v2121_v42 }
 0x886   : > { %v2092_v16 = vmul.f32 0.7978846, %v2084_v37  ;;  %v2576_v50 = vpop.eup %2575 }
 0x887   : > { %2192 = vmatmul.bf16.gmra.mxu3 %v2128_v61  ;;  %v2107_v55 = vadd.f32 1.0, %v2576_v50 }
 0x888   : > { %2577 = vtanh.f32 %v2092_v16 }
 0x889   : > { %v2115_v39 = vmul.f32 0.5, %v2107_v55 }
 0x88b   : > { %v2123_v52 = vmul.f32 %v2115_v39, %v2046_v36 }
 0x88e   : > { %v2578_v57 = vpop.eup %2577 }
 0x88f   : > { %v2108_v59 = vadd.f32 1.0, %v2578_v57 }
 0x891   : > { %v2116_v43 = vmul.f32 0.5, %v2108_v59 }
 0x893   : > { %v2124_v29 = vmul.f32 %v2116_v43, %v2048_v22 }
 0x895   : > { %v2129_v62 = vpack.c.bf16 %v2124_v29, %v2123_v52 }
 0x897   : > { %2197 = vmatmul.bf16.gmra.mxu3 %v2129_v62 }
 0x8bf   : > { %v2050_v19 = vpop.f32.mrf.mxu2 }
 0x8c0   : > { %v2051_v0 = vadd.f32 %v3326_v53, %v2050_v19 }
 0x8c2   : > { %v2061_v1 = vmul.f32 %v2051_v0, %v2051_v0 }
 0x8c4   : > { %v2069_v48 = vmul.f32 %v2061_v1, %v2051_v0 }
 0x8c6   : > { %v2077_v7 = vmul.f32 0.044715, %v2069_v48 }
 0x8c7   : > { %v2052_v13 = vpop.f32.mrf.mxu2 }
 0x8c8   : > { %v2085_v5 = vadd.f32 %v2077_v7, %v2051_v0  ;;  %v2053_v51 = vadd.f32 %v3326_v53, %v2052_v13  ;;  %v2468_v53 = vld [vmem:[%s3392_s12] ss:$0 sm:$0xff] }
 0x8ca   : > { %v2093_v25 = vmul.f32 0.7978846, %v2085_v5  ;;  %v2062_v58 = vmul.f32 %v2053_v51, %v2053_v51 }
 0x8cc   : > { %v2070_v6 = vmul.f32 %v2062_v58, %v2053_v51  ;;  %2579 = vtanh.f32 %v2093_v25 }
 0x8ce   : > { %v2078_v14 = vmul.f32 0.044715, %v2070_v6 }
 0x8d0   : > { %v2086_v17 = vadd.f32 %v2078_v14, %v2053_v51 }
 0x8d2   : > { %v2094_v38 = vmul.f32 0.7978846, %v2086_v17  ;;  %v2580_v11 = vpop.eup %2579 }
 0x8d3   : > { %v2109_v15 = vadd.f32 1.0, %v2580_v11 }
 0x8d4   : > { %2581 = vtanh.f32 %v2094_v38 }
 0x8d5   : > { %v2117_v12 = vmul.f32 0.5, %v2109_v15 }
 0x8d7   : > { %v2125_v18 = vmul.f32 %v2117_v12, %v2051_v0 }
 0x8da   : > { %v2582_v21 = vpop.eup %2581 }
 0x8db   : > { %v2110_v8 = vadd.f32 1.0, %v2582_v21 }
 0x8dd   : > { %v2118_v4 = vmul.f32 0.5, %v2110_v8 }
 0x8df   : > { %v2126_v24 = vmul.f32 %v2118_v4, %v2053_v51 }
 0x8e1   : > { %v2130_v23 = vpack.c.bf16 %v2126_v24, %v2125_v18 }
 0x8e3   : > { %v2188_v36 = vpop.f32.mrf.mxu3  ;;  %2202 = vmatmul.bf16.gmra.mxu3 %v2130_v23 }
 0x8e4   : > { %v2208_v40 = vadd.f32 %v2188_v36, %v3152_v32 }
 0x8e6   : > { %v2219_v28 = vadd.f32 %v2468_v53, %v2208_v40 }
 0x8e8   : > { %v2227_v54 = vpack.c.bf16 %v2219_v28, %v2219_v28 }
 0x8ea   : > { %2236 = vst.msk [vmem:[%s3352_s29] sm:$0xf] %vm2235_vm0, %v2227_v54 }
 0x8eb   : > { %v2190_v45 = vpop.f32.mrf.mxu3 }
 0x8ec   : > { %v2209_v3 = vadd.f32 %v2190_v45, %v3158_v41 }
 0x8ee   : > { %v2220_v44 = vadd.f32 %v2468_v53, %v2209_v3 }
 0x8f0   : > { %v2228_v32 = vpack.c.bf16 %v2220_v44, %v2220_v44 }
 0x8f2   : > { %2237 = vst.msk [vmem:[%s3352_s29 + $0x4] sm:$0xf] %vm2235_vm0, %v2228_v32 }
 0x90a   : > { %v2193_v49 = vpop.f32.mrf.mxu3 }
 0x90b   : > { %v2210_v56 = vadd.f32 %v2193_v49, %v3164_v63 }
 0x90d   : > { %v2221_v22 = vadd.f32 %v2468_v53, %v2210_v56 }
 0x90f   : > { %v2229_v26 = vpack.c.bf16 %v2221_v22, %v2221_v22 }
 0x911   : > { %2238 = vst.msk [vmem:[%s3352_s29 + $0x8] sm:$0xf] %vm2235_vm0, %v2229_v26 }
 0x912   : > { %v2195_v20 = vpop.f32.mrf.mxu3 }
 0x913   : > { %v2211_v33 = vadd.f32 %v2195_v20, %v3170_v60 }
 0x915   : > { %v2222_v10 = vadd.f32 %v2468_v53, %v2211_v33 }
 0x917   : > { %v2230_v30 = vpack.c.bf16 %v2222_v10, %v2222_v10 }
 0x919   : > { %2239 = vst.msk [vmem:[%s3352_s29 + $0xc] sm:$0xf] %vm2235_vm0, %v2230_v30 }
 0x91a   : > { %v2198_v41 = vpop.f32.mrf.mxu3 }
 0x91b   : > { %v2212_v9 = vadd.f32 %v2198_v41, %v3176_v31 }
 0x91d   : > { %v2223_v27 = vadd.f32 %v2468_v53, %v2212_v9 }
 0x91f   : > { %v2231_v35 = vpack.c.bf16 %v2223_v27, %v2223_v27 }
 0x921   : > { %2240 = vst.msk [vmem:[%s3352_s29 + $0x10] sm:$0xf] %vm2235_vm0, %v2231_v35 }
 0x922   : > { %v2200_v63 = vpop.f32.mrf.mxu3 }
 0x923   : > { %v2213_v42 = vadd.f32 %v2200_v63, %v3182_v46 }
 0x925   : > { %v2224_v47 = vadd.f32 %v2468_v53, %v2213_v42 }
 0x927   : > { %v2232_v37 = vpack.c.bf16 %v2224_v47, %v2224_v47 }
 0x929   : > { %2241 = vst.msk [vmem:[%s3352_s29 + $0x14] sm:$0xf] %vm2235_vm0, %v2232_v37 }
 0x966   : > { %v2203_v60 = vpop.f32.mrf.mxu3 }
 0x967   : > { %v2214_v61 = vadd.f32 %v2203_v60, %v3196_v34 }
 0x969   : > { %v2225_v16 = vadd.f32 %v2468_v53, %v2214_v61 }
 0x96b   : > { %v2233_v50 = vpack.c.bf16 %v2225_v16, %v2225_v16 }
 0x96d   : > { %2242 = vst.msk [vmem:[%s3352_s29 + $0x18] sm:$0xf] %vm2235_vm0, %v2233_v50 }
 0x96e   : > { %v2205_v31 = vpop.f32.mrf.mxu3 }
 0x96f   : > { %v2215_v55 = vadd.f32 %v2205_v31, %v3208_v2 }
 0x971   : > { %v2226_v57 = vadd.f32 %v2468_v53, %v2215_v55 }
 0x973   : > { %v2234_v59 = vpack.c.bf16 %v2226_v57, %v2226_v57 }
 0x975   : > { %2243 = vst.msk [vmem:[%s3352_s29 + $0x1c] sm:$0xf] %vm2235_vm0, %v2234_v59 }
 0x976 PF: > { %s23_s25 = sadd.s32 1, %s2589_s25  }
 0x977   : > { %p20_p4 = scmp.ge.s32.totalorder %s23_s25, 4  }
 0x979   :  { %22 = sbr.rel (!%p20_p4) target bundleno = 1 (0x1), region = 102 }

// kernel: stage_module_forward.5
= control target key start
LH: loop header
LB: loop body
LE: loop exit
PB: predicated region body
PF: predicated region fallthrough
CT: control target
= control target key end

     0   :  { %s2800_s29 = smov 0   ;;  %s3528_s0 = inlined_call_operand.vmem [shape: bf16[16,8,32], index: 0, kind: input, shape index: {}]   ;;  %s3529_s1 = inlined_call_operand.vmem [shape: bf16[16,8,32], index: 1, kind: input, shape index: {}]   ;;  %s3530_s2 = inlined_call_operand.vmem [shape: f32[1,32], index: 2, kind: input, shape index: {}]   ;;  %s3531_s3 = inlined_call_operand.vmem [shape: f32[1,32], index: 3, kind: input, shape index: {}]   ;;  %s3532_s4 = inlined_call_operand.vmem [shape: bf16[32,96], index: 4, kind: input, shape index: {}]   ;;  %s3533_s5 = inlined_call_operand.vmem [shape: bf16[32,32], index: 5, kind: input, shape index: {}]   ;;  %s3534_s6 = inlined_call_operand.vmem [shape: f32[1,32], index: 6, kind: input, shape index: {}]   ;;  %s3535_s7 = inlined_call_operand.vmem [shape: f32[2,8,8,8], index: 7, kind: input, shape index: {}]   ;;  %s3536_s8 = inlined_call_operand.vmem [shape: f32[1,32], index: 8, kind: input, shape index: {}]   ;;  %s3537_s9 = inlined_call_operand.vmem [shape: f32[1,32], index: 9, kind: input, shape index: {}]   ;;  %s3538_s10 = inlined_call_operand.vmem [shape: bf16[32,128], index: 10, kind: input, shape index: {}]   ;;  %s3539_s11 = inlined_call_operand.vmem [shape: f32[1,128], index: 11, kind: input, shape index: {}]   ;;  %s3540_s12 = inlined_call_operand.vmem [shape: bf16[128,32], index: 12, kind: input, shape index: {}]   ;;  %s3541_s13 = inlined_call_operand.vmem [shape: f32[1,32], index: 13, kind: input, shape index: {}]   ;;  %s3542_s14 = inlined_call_operand.vmem [shape: bf16[16,8,32], index: 14, kind: output, shape index: {}]  }
   0x1 LB: > { %s2407_s30 = sadd.s32 4294967295, %s2717_s29   ;;  %p2411_p0 = scmp.ge.s32.totalorder %s2717_s29, 1  ;;  %s2717_s29 = sphi %s2800_s29, %s24_s29  }
   0x2   : > { %p424_p1 = scmp.lt.s32.totalorder %s2717_s29, 3 }
   0x4   : > { %p425_p2 = pnand %p2411_p0, %p424_p1 }
   0x5   : > { %s2412_s15 = sshll.u32 (!%p425_p2), %s2407_s30, 3  ;;  %s2720_s28 = smov (!%p425_p2), 96  }
   0x6   : > { %428 = sbr.rel (%p425_p2) target bundleno = 2422 (0x976), region = 76  ;;  %p476_p3 = scmp.lt.s32.totalorder (!%p425_p2), %s2412_s15, 15 }
   0x7   : > { %s2721_s30 = smov (!%p425_p2), 64   ;;  %s2723_s20 = smov (!%p425_p2), 112  }
   0xb   : > { %s3544_s15 = smov (!%p476_p3, %s2412_s15), 15  ;;  %vm577_vm0 = vcmask 261120   ;;  %v2719_v18 = vmov 32.0   ;;  %v2525_v62 = vld [vmem:[%s3532_s4 + $0x8] sm:$0xff] }
   0xc   : > { %s2808_s16 = sshll.u32 %s3544_s15, 2  ;;  %2597 = vrcp.f32 %v2719_v18  ;;  %817 = vmatpush.bf16.msra.mxu0 %v2525_v62  ;;  %s2722_s15 = smov 80  }
   0xd   : > { %s485_s19 = scalar_lea.vmem %s3529_s1, %s2808_s16  ;;  %s3500_s21 = scalar_lea.vmem %s3542_s14, %s2808_s16 }
   0xe   : > { %v2814_v0 = vld [vmem:[%s485_s19 + $0x10] sm:$0xff]   ;;  %v2573_v1 = vld [vmem:[%s485_s19 + $0x8] sm:$0xff]   ;;  %v2555_v2 = vld [vmem:[%s485_s19] sm:$0xff]  }
   0xf   : > { %v2564_v3 = vunpack.c.l.bf16 %v2814_v0  ;;  %v2560_v4 = vunpack.c.l.bf16 %v2573_v1  ;;  %v2556_v5 = vunpack.c.l.bf16 %v2555_v2  ;;  %v2565_v9 = vunpack.c.h.bf16 %v2814_v0  ;;  %v2824_v15 = vld [vmem:[%s485_s19 + $0x18] sm:$0xff]  }
  0x10   : > { %v2561_v10 = vunpack.c.h.bf16 %v2573_v1  ;;  %v2557_v11 = vunpack.c.h.bf16 %v2555_v2  ;;  %v2568_v16 = vunpack.c.l.bf16 %v2824_v15  ;;  %v2569_v39 = vunpack.c.h.bf16 %v2824_v15  ;;  %v2524_v2 = vld [vmem:[%s3532_s4] sm:$0xff] }
  0x11   : > { %v590_v6 = vsel %vm577_vm0, %v2564_v3, 0.0  ;;  %v584_v7 = vsel %vm577_vm0, %v2560_v4, 0.0  ;;  %v578_v8 = vsel %vm577_vm0, %v2556_v5, 0.0  ;;  %v593_v12 = vsel %vm577_vm0, %v2565_v9, 0.0  ;;  %818 = vmatpush.bf16.msra.mxu0 %v2524_v2 }
  0x12   : > { %591 = vadd.xlane.f32.xlu2 %v590_v6  ;;  %585 = vadd.xlane.f32.xlu1 %v584_v7  ;;  %v587_v13 = vsel %vm577_vm0, %v2561_v10, 0.0  ;;  %v581_v14 = vsel %vm577_vm0, %v2557_v11, 0.0  ;;  %v596_v17 = vsel %vm577_vm0, %v2568_v16, 0.0  ;;  %v2598_v19 = vpop.eup %2597  ;;  %v599_v45 = vsel %vm577_vm0, %v2569_v39, 0.0 }
  0x13   : > { %579 = vadd.xlane.f32.xlu0 %v578_v8  ;;  %v603_v20 = vmul.f32 32.0, %v2598_v19  ;;  %vm607_vm1 = vweird.f32 %v2598_v19 }
  0x15   : > { %v604_v21 = vsub.f32 1.0, %v603_v20 }
  0x17   : > { %v605_v22 = vmul.f32 %v2598_v19, %v604_v21 }
  0x19   : > { %v606_v23 = vadd.f32 %v2598_v19, %v605_v22 }
  0x1a   : > { %594 = vadd.xlane.f32.xlu2 %v593_v12  ;;  %588 = vadd.xlane.f32.xlu1 %v587_v13 }
  0x1b   : > { %582 = vadd.xlane.f32.xlu0 %v581_v14  ;;  %v2828_v24 = vsel %vm607_vm1, %v2598_v19, %v606_v23 }
  0x22   : > { %597 = vadd.xlane.f32.xlu2 %v596_v17 }
  0x85   : > { %v592_v25 = vpop.xlane.xlu2 %591  ;;  %v586_v26 = vpop.xlane.xlu1 %585 }
  0x86   : > { %v580_v27 = vpop.xlane.xlu0 %579  ;;  %v613_v36 = vmul.f32 %v2828_v24, %v592_v25  ;;  %v611_v37 = vmul.f32 %v2828_v24, %v586_v26 }
  0x87   : > { %v609_v28 = vmul.f32 %v2828_v24, %v580_v27 }
  0x88   : > { %v2847_v43 = vsub.f32 %v2564_v3, %v613_v36  ;;  %v2849_v44 = vsub.f32 %v2560_v4, %v611_v37 }
  0x89   : > { %v2831_v29 = vsub.f32 %v2556_v5, %v609_v28 }
  0x8a   : > { %v629_v52 = vmul.f32 %v2847_v43, %v2847_v43  ;;  %v627_v53 = vmul.f32 %v2849_v44, %v2849_v44 }
  0x8b   : > { %v625_v30 = vmul.f32 %v2831_v29, %v2831_v29 }
  0x8c   : > { %v645_v57 = vsel %vm577_vm0, %v629_v52, 0.0  ;;  %v639_v58 = vsel %vm577_vm0, %v627_v53, 0.0 }
  0x8d   : > { %v595_v31 = vpop.xlane.xlu2 %594  ;;  %v589_v32 = vpop.xlane.xlu1 %588  ;;  %v633_v33 = vsel %vm577_vm0, %v625_v30, 0.0 }
  0x8e   : > { %v612_v34 = vmul.f32 %v2828_v24, %v589_v32  ;;  %634 = vadd.xlane.f32.xlu0 %v633_v33  ;;  %v583_v35 = vpop.xlane.xlu0 %582  ;;  %v614_v51 = vmul.f32 %v2828_v24, %v595_v31 }
  0x8f   : > { %v610_v38 = vmul.f32 %v2828_v24, %v583_v35 }
  0x90   : > { %v2841_v40 = vsub.f32 %v2561_v10, %v612_v34  ;;  %v2866_v56 = vsub.f32 %v2565_v9, %v614_v51 }
  0x91   : > { %v2843_v41 = vsub.f32 %v2557_v11, %v610_v38 }
  0x92   : > { %v628_v42 = vmul.f32 %v2841_v40, %v2841_v40  ;;  %v630_v60 = vmul.f32 %v2866_v56, %v2866_v56 }
  0x93   : > { %v626_v46 = vmul.f32 %v2843_v41, %v2843_v41 }
  0x94   : > { %v642_v47 = vsel %vm577_vm0, %v628_v42, 0.0  ;;  %v648_v61 = vsel %vm577_vm0, %v630_v60, 0.0 }
  0x95   : > { %v598_v48 = vpop.xlane.xlu2 %597  ;;  %643 = vadd.xlane.f32.xlu2 %v642_v47  ;;  %v636_v49 = vsel %vm577_vm0, %v626_v46, 0.0 }
  0x96   : > { %v615_v50 = vmul.f32 %v2828_v24, %v598_v48  ;;  %600 = vadd.xlane.f32.xlu0 %v599_v45  ;;  %637 = vadd.xlane.f32.xlu1 %v636_v49  ;;  %v2904_v48 = vld [vmem:[%s3530_s2] ss:$0 sm:$0xff] }
  0x98   : > { %v2862_v54 = vsub.f32 %v2568_v16, %v615_v50 }
  0x9a   : > { %v631_v55 = vmul.f32 %v2862_v54, %v2862_v54 }
  0x9c   : > { %v651_v59 = vsel %vm577_vm0, %v631_v55, 0.0 }
  0x9d   : > { %652 = vadd.xlane.f32.xlu2 %v651_v59 }
  0x9e   : > { %646 = vadd.xlane.f32.xlu0 %v645_v57  ;;  %640 = vadd.xlane.f32.xlu1 %v639_v58 }
  0xa6   : > { %649 = vadd.xlane.f32.xlu1 %v648_v61 }
 0x101   : > { %v635_v63 = vpop.xlane.xlu0 %634 }
 0x102   : > { %v657_v0 = vmul.f32 %v635_v63, %v2828_v24 }
 0x104   : > { %v665_v1 = vadd.f32 1e-05, %v657_v0 }
 0x106   : > { %2599 = vrsqrt.f32 %v665_v1  ;;  %vm679_vm3 = vweird.f32 %v665_v1 }
 0x108   : > { %v644_v3 = vpop.xlane.xlu2 %643 }
 0x109   : > { %v660_v4 = vmul.f32 %v644_v3, %v2828_v24  ;;  %v638_v5 = vpop.xlane.xlu1 %637  ;;  %v601_v6 = vpop.xlane.xlu0 %600 }
 0x10a   : > { %v658_v7 = vmul.f32 %v638_v5, %v2828_v24  ;;  %v616_v8 = vmul.f32 %v2828_v24, %v601_v6 }
 0x10b   : > { %v2884_v9 = vadd.f32 1e-05, %v660_v4 }
 0x10c   : > { %v2600_v10 = vpop.eup %2599  ;;  %v666_v11 = vadd.f32 1e-05, %v658_v7  ;;  %v2886_v12 = vsub.f32 %v2569_v39, %v616_v8 }
 0x10d   : > { %v674_v13 = vmul.f32 %v2600_v10, %v665_v1  ;;  %2601 = vrsqrt.f32 %v2884_v9  ;;  %vm680_vm2 = vweird.f32 %v2600_v10  ;;  %vm709_vm10 = vweird.f32 %v2884_v9 }
 0x10e   : > { %2603 = vrsqrt.f32 %v666_v11  ;;  %v632_v14 = vmul.f32 %v2886_v12, %v2886_v12  ;;  %vm681_vm4 = vmor %vm679_vm3, %vm680_vm2  ;;  %vm689_vm5 = vweird.f32 %v666_v11 }
 0x10f   : > { %v675_v15 = vmul.f32 %v2600_v10, %v674_v13 }
 0x110   : > { %v654_v16 = vsel %vm577_vm0, %v632_v14, 0.0 }
 0x111   : > { %v676_v17 = vmul.f32 0.5, %v675_v15  ;;  %v641_v18 = vpop.xlane.xlu1 %640  ;;  %655 = vadd.xlane.f32.xlu0 %v654_v16  ;;  %v647_v20 = vpop.xlane.xlu0 %646 }
 0x112   : > { %v659_v19 = vmul.f32 %v641_v18, %v2828_v24  ;;  %v661_v27 = vmul.f32 %v647_v20, %v2828_v24 }
 0x113   : > { %v2893_v21 = vpop.eup %2601  ;;  %v677_v22 = vsub.f32 1.5, %v676_v17 }
 0x114   : > { %v2604_v23 = vpop.eup %2603  ;;  %v667_v25 = vadd.f32 1e-05, %v659_v19  ;;  %v704_v30 = vmul.f32 %v2893_v21, %v2884_v9  ;;  %v669_v33 = vadd.f32 1e-05, %v661_v27  ;;  %vm710_vm11 = vweird.f32 %v2893_v21 }
 0x115   : > { %v684_v26 = vmul.f32 %v2604_v23, %v666_v11  ;;  %v678_v28 = vmul.f32 %v2600_v10, %v677_v22  ;;  %vm690_vm6 = vweird.f32 %v2604_v23  ;;  %vm711_vm13 = vmor %vm709_vm10, %vm710_vm11  ;;  %vm853_vm11 = vcmask 130048  }
 0x116   : > { %2605 = vrsqrt.f32 %v667_v25  ;;  %v705_v36 = vmul.f32 %v2893_v21, %v704_v30  ;;  %vm691_vm7 = vmor %vm689_vm5, %vm690_vm6  ;;  %vm699_vm8 = vweird.f32 %v667_v25  ;;  %vm719_vm1 = vweird.f32 %v669_v33 }
 0x117   : > { %v685_v31 = vmul.f32 %v2604_v23, %v684_v26  ;;  %v682_v35 = vsel %vm681_vm4, %v2600_v10, %v678_v28  ;;  %2607 = vrsqrt.f32 %v669_v33 }
 0x118   : > { %v753_v45 = vmul.f32 %v682_v35, %v2831_v29  ;;  %v706_v49 = vmul.f32 0.5, %v705_v36  ;;  %v2911_v29 = vld [vmem:[%s3531_s3] ss:$0 sm:$0xff] }
 0x119   : > { %v686_v32 = vmul.f32 0.5, %v685_v31  ;;  %v650_v34 = vpop.xlane.xlu1 %649  ;;  %v653_v31 = vpop.xlane.xlu2 %652 }
 0x11a   : > { %v662_v37 = vmul.f32 %v650_v34, %v2828_v24  ;;  %v764_v55 = vmul.f32 %v2904_v48, %v753_v45  ;;  %v707_v57 = vsub.f32 1.5, %v706_v49 }
 0x11b   : > { %v687_v38 = vsub.f32 1.5, %v686_v32  ;;  %v663_v32 = vmul.f32 %v653_v31, %v2828_v24 }
 0x11c   : > { %v2606_v39 = vpop.eup %2605  ;;  %v670_v42 = vadd.f32 1e-05, %v662_v37  ;;  %v775_v63 = vadd.f32 %v2911_v29, %v764_v55  ;;  %v708_v0 = vmul.f32 %v2893_v21, %v707_v57 }
 0x11d   : > { %v688_v46 = vmul.f32 %v2604_v23, %v687_v38  ;;  %v694_v47 = vmul.f32 %v2606_v39, %v667_v25  ;;  %vm700_vm9 = vweird.f32 %v2606_v39  ;;  %v2608_v59 = vpop.eup %2607 }
 0x11e   : > { %2609 = vrsqrt.f32 %v670_v42  ;;  %vm701_vm12 = vmor %vm699_vm8, %vm700_vm9  ;;  %v714_v1 = vmul.f32 %v2608_v59, %v669_v33  ;;  %v712_v6 = vsel %vm711_vm13, %v2893_v21, %v708_v0  ;;  %vm729_vm14 = vweird.f32 %v670_v42 }
 0x11f   : > { %v692_v50 = vsel %vm691_vm7, %v2604_v23, %v688_v46  ;;  %v695_v51 = vmul.f32 %v2606_v39, %v694_v47  ;;  %v756_v10 = vmul.f32 %v712_v6, %v2841_v40  ;;  %vm720_vm2 = vweird.f32 %v2608_v59 }
 0x120   : > { %v754_v52 = vmul.f32 %v692_v50, %v2843_v41  ;;  %v715_v7 = vmul.f32 %v2608_v59, %v714_v1  ;;  %vm721_vm4 = vmor %vm719_vm1, %vm720_vm2  ;;  %v671_v33 = vadd.f32 1e-05, %v663_v32  ;;  %vm1049_vm13 = vcmask 64512  }
 0x121   : > { %v696_v53 = vmul.f32 0.5, %v695_v51  ;;  %v767_v15 = vmul.f32 %v2904_v48, %v756_v10 }
 0x122   : > { %v765_v58 = vmul.f32 %v2904_v48, %v754_v52  ;;  %v716_v11 = vmul.f32 0.5, %v715_v7  ;;  %2611 = vrsqrt.f32 %v671_v33  ;;  %vm739_vm5 = vweird.f32 %v671_v33 }
 0x123   : > { %v697_v60 = vsub.f32 1.5, %v696_v53 }
 0x124   : > { %v776_v41 = vadd.f32 %v2911_v29, %v765_v58  ;;  %v2610_v61 = vpop.eup %2609  ;;  %v717_v16 = vsub.f32 1.5, %v716_v11 }
 0x125   : > { %v698_v62 = vmul.f32 %v2606_v39, %v697_v60  ;;  %v724_v2 = vmul.f32 %v2610_v61, %v670_v42  ;;  %vm730_vm15 = vweird.f32 %v2610_v61 }
 0x126   : > { %v783_v3 = vpack.c.bf16 %v776_v41, %v775_v63  ;;  %vm731_vm3 = vmor %vm729_vm14, %vm730_vm15  ;;  %v718_v19 = vmul.f32 %v2608_v59, %v717_v16 }
 0x127   : > { %v702_v4 = vsel %vm701_vm12, %v2606_v39, %v698_v62  ;;  %v725_v5 = vmul.f32 %v2610_v61, %v724_v2  ;;  %vm1151_vm12 = vcmask 1043456  }
 0x128   : > { %2426 = vmatmul.msk.bf16.vlgmr.msra.gmra.mxu0 %vm577_vm0, %v783_v3  ;;  %v755_v8 = vmul.f32 %v702_v4, %v2849_v44  ;;  %v778_v44 = vadd.f32 %v2911_v29, %v767_v15  ;;  %v722_v21 = vsel %vm721_vm4, %v2608_v59, %v718_v19  ;;  %v2612_v34 = vpop.eup %2611 }
 0x129   : > { %v726_v9 = vmul.f32 0.5, %v725_v5  ;;  %v757_v23 = vmul.f32 %v722_v21, %v2847_v43  ;;  %vm740_vm6 = vweird.f32 %v2612_v34 }
 0x12a   : > { %v766_v13 = vmul.f32 %v2904_v48, %v755_v8  ;;  %vm741_vm7 = vmor %vm739_vm5, %vm740_vm6 }
 0x12b   : > { %v727_v14 = vsub.f32 1.5, %v726_v9  ;;  %v768_v26 = vmul.f32 %v2904_v48, %v757_v23 }
 0x12c   : > { %v777_v17 = vadd.f32 %v2911_v29, %v766_v13 }
 0x12d   : > { %v728_v18 = vmul.f32 %v2610_v61, %v727_v14  ;;  %v779_v28 = vadd.f32 %v2911_v29, %v768_v26 }
 0x12e   : > { %v784_v40 = vpack.c.bf16 %v778_v44, %v777_v17 }
 0x12f   : > { %v732_v20 = vsel %vm731_vm3, %v2610_v61, %v728_v18 }
 0x130   : > { %v758_v22 = vmul.f32 %v732_v20, %v2866_v56  ;;  %v734_v56 = vmul.f32 %v2612_v34, %v671_v33 }
 0x132   : > { %v769_v25 = vmul.f32 %v2904_v48, %v758_v22  ;;  %v735_v35 = vmul.f32 %v2612_v34, %v734_v56 }
 0x134   : > { %v780_v27 = vadd.f32 %v2911_v29, %v769_v25  ;;  %v736_v38 = vmul.f32 0.5, %v735_v35 }
 0x136   : > { %v785_v30 = vpack.c.bf16 %v780_v27, %v779_v28  ;;  %v737_v39 = vsub.f32 1.5, %v736_v38 }
 0x138   : > { %2427 = vmatmul.msk.bf16.gmra.mxu0 %vm577_vm0, %v784_v40  ;;  %v738_v45 = vmul.f32 %v2612_v34, %v737_v39 }
 0x13a   : > { %v742_v49 = vsel %vm741_vm7, %v2612_v34, %v738_v45 }
 0x13b   : > { %v759_v52 = vmul.f32 %v742_v49, %v2862_v54 }
 0x13d   : > { %v770_v58 = vmul.f32 %v2904_v48, %v759_v52 }
 0x13f   : > { %v781_v60 = vadd.f32 %v2911_v29, %v770_v58 }
 0x148   : > { %2428 = vmatmul.msk.bf16.gmra.mxu0 %vm577_vm0, %v785_v30 }
 0x184   : > { %v656_v43 = vpop.xlane.xlu0 %655 }
 0x185   : > { %v664_v36 = vmul.f32 %v656_v43, %v2828_v24 }
 0x187   : > { %v672_v37 = vadd.f32 1e-05, %v664_v36 }
 0x189   : > { %2613 = vrsqrt.f32 %v672_v37  ;;  %vm749_vm9 = vweird.f32 %v672_v37 }
 0x18f   : > { %v2614_v42 = vpop.eup %2613 }
 0x190   : > { %v744_v46 = vmul.f32 %v2614_v42, %v672_v37  ;;  %vm750_vm8 = vweird.f32 %v2614_v42 }
 0x191   : > { %vm751_vm10 = vmor %vm749_vm9, %vm750_vm8 }
 0x192   : > { %v745_v47 = vmul.f32 %v2614_v42, %v744_v46 }
 0x194   : > { %v746_v50 = vmul.f32 0.5, %v745_v47 }
 0x196   : > { %v747_v51 = vsub.f32 1.5, %v746_v50  ;;  %v521_v50 = vld [vmem:[%s3535_s7] sm:$0xff] }
 0x198   : > { %v748_v53 = vmul.f32 %v2614_v42, %v747_v51 }
 0x19a   : > { %v752_v55 = vsel %vm751_vm10, %v2614_v42, %v748_v53 }
 0x19b   : > { %v760_v57 = vmul.f32 %v752_v55, %v2886_v12 }
 0x19d   : > { %v771_v59 = vmul.f32 %v2904_v48, %v760_v57 }
 0x19f   : > { %v782_v41 = vadd.f32 %v2911_v29, %v771_v59 }
 0x1a1   : > { %v786_v61 = vpack.c.bf16 %v782_v41, %v781_v60 }
 0x1a3   : > { %2429 = vmatmul.msk.bf16.gmra.mxu0 %vm577_vm0, %v786_v61 }
 0x1a5   : > { %v820_v62 = vpop.f32.mrf.mxu0 }
 0x1a6   : > { %v840_v63 = vpack.c.bf16 %v820_v62, %v820_v62 }
 0x1a8   : > { %v849_v54 = vunpack.c.l.b16 %v840_v63 }
 0x1aa   : > { %v2944_v0 = vpack.c.b16 %v849_v54, %v849_v54 }
 0x1ac   : > { %851 = vrot.lane.b32.xlu2 %v2944_v0, %s2720_s28 }
 0x1ad   : > { %v822_v12 = vpop.f32.mrf.mxu0 }
 0x1ae   : > { %v841_v1 = vpack.c.bf16 %v822_v12, %v822_v12 }
 0x1b0   : > { %v874_v2 = vunpack.c.l.b16 %v841_v1 }
 0x1b2   : > { %v2948_v48 = vpack.c.b16 %v874_v2, %v874_v2  ;;  %v522_v2 = vld [vmem:[%s3535_s7 + $0x8] sm:$0xff] }
 0x1b4   : > { %876 = vrot.lane.b32.xlu1 %v2948_v48, %s2720_s28 }
 0x1b5   : > { %v825_v29 = vpop.f32.mrf.mxu0 }
 0x1b6   : > { %v842_v3 = vpack.c.bf16 %v825_v29, %v825_v29 }
 0x1b8   : > { %v898_v4 = vunpack.c.l.b16 %v842_v3 }
 0x1ba   : > { %v2952_v5 = vpack.c.b16 %v898_v4, %v898_v4 }
 0x1bc   : > { %900 = vrot.lane.b32.xlu0 %v2952_v5, %s2720_s28 }
 0x1bd   : > { %v827_v6 = vpop.f32.mrf.mxu0 }
 0x1be   : > { %v843_v7 = vpack.c.bf16 %v827_v6, %v827_v6 }
 0x1c0   : > { %v922_v8 = vunpack.c.l.b16 %v843_v7 }
 0x1c2   : > { %v2956_v9 = vpack.c.b16 %v922_v8, %v922_v8 }
 0x1c4   : > { %924 = vrot.lane.b32.xlu1 %v2956_v9, %s2720_s28 }
 0x1c5   : > { %v830_v10 = vpop.f32.mrf.mxu0 }
 0x1c6   : > { %v844_v11 = vpack.c.bf16 %v830_v10, %v830_v10 }
 0x1c8   : > { %v946_v13 = vunpack.c.l.b16 %v844_v11 }
 0x1ca   : > { %v2960_v14 = vpack.c.b16 %v946_v13, %v946_v13 }
 0x1cc   : > { %948 = vrot.lane.b32.xlu2 %v2960_v14, %s2720_s28 }
 0x1cd   : > { %v832_v15 = vpop.f32.mrf.mxu0 }
 0x1ce   : > { %v845_v16 = vpack.c.bf16 %v832_v15, %v832_v15 }
 0x1d0   : > { %v970_v17 = vunpack.c.l.b16 %v845_v16 }
 0x1d2   : > { %v2964_v18 = vpack.c.b16 %v970_v17, %v970_v17 }
 0x1d4   : > { %972 = vrot.lane.b32.xlu0 %v2964_v18, %s2720_s28 }
 0x1dc   : > { %1146 = vrot.lane.b32.xlu0 %v2944_v0, %s2721_s30 }
 0x1e4   : > { %1210 = vrot.lane.b32.xlu0 %v2956_v9, %s2721_s30 }
 0x1ec   : > { %1231 = vrot.lane.b32.xlu0 %v2960_v14, %s2721_s30 }
 0x1f4   : > { %1344 = vrot.lane.b32.xlu0 %v2948_v48, %s2722_s15 }
 0x206   : > { %v852_v44 = vpop.permute.xlu2 %851 }
 0x207   : > { %v858_v19 = vsel %vm853_vm11, %v852_v44, 0 }
 0x208   : > { %867 = vmatpush.bf16.xpose.msra.mxu1 %v858_v19  ;;  %v525_v19 = vld [vmem:[%s3535_s7 + $0x20] sm:$0xff] }
 0x20f   : > { %2430 = vmatmul.msk.bf16.vlgmr.msra.gmra.mxu1 %vm853_vm11, %v840_v63 }
 0x220   : > { %v835_v40 = vpop.f32.mrf.mxu0 }
 0x221   : > { %v2978_v20 = vpack.c.bf16 %v835_v40, %v835_v40 }
 0x223   : > { %v994_v21 = vunpack.c.l.b16 %v2978_v20 }
 0x225   : > { %v2981_v22 = vpack.c.b16 %v994_v21, %v994_v21 }
 0x226   : > { %v877_v23 = vpop.permute.xlu1 %876  ;;  %v949_v25 = vpop.permute.xlu2 %948 }
 0x227   : > { %996 = vrot.lane.b32.xlu1 %v2981_v22, %s2720_s28  ;;  %v882_v27 = vsel %vm853_vm11, %v877_v23, 0  ;;  %v954_v28 = vsel %vm853_vm11, %v949_v25, 0 }
 0x228   : > { %v837_v26 = vpop.f32.mrf.mxu0  ;;  %891 = vmatpush.bf16.xpose.msra.mxu2 %v882_v27  ;;  %v526_v27 = vld [vmem:[%s3535_s7 + $0x28] sm:$0xff] }
 0x229   : > { %v847_v30 = vpack.c.bf16 %v837_v26, %v837_v26 }
 0x22b   : > { %v1018_v31 = vunpack.c.l.b16 %v847_v30 }
 0x22d   : > { %v2987_v32 = vpack.c.b16 %v1018_v31, %v1018_v31 }
 0x22e   : > { %v901_v33 = vpop.permute.xlu0 %900 }
 0x22f   : > { %1168 = vrot.lane.b32.xlu1 %v2948_v48, %s2721_s30  ;;  %1294 = vrot.lane.b32.xlu0 %v2987_v32, %s2721_s30  ;;  %v906_v34 = vsel %vm853_vm11, %v901_v33, 0 }
 0x230   : > { %963 = vmatpush.bf16.xpose.msrb.mxu2 %v954_v28  ;;  %1020 = vrot.lane.b32.xlu2 %v2987_v32, %s2720_s28 }
 0x231   : > { %2431 = vmatmul.msk.bf16.vlgmr.msra.gmra.mxu2 %vm853_vm11, %v841_v1  ;;  %915 = vmatpush.bf16.xpose.msra.mxu3 %v906_v34 }
 0x236   : > { %v925_v56 = vpop.permute.xlu1 %924 }
 0x237   : > { %1252 = vrot.lane.b32.xlu1 %v2964_v18, %s2721_s30  ;;  %v930_v35 = vsel %vm853_vm11, %v925_v56, 0 }
 0x238   : > { %1189 = vrot.lane.b32.xlu2 %v2952_v5, %s2721_s30  ;;  %2432 = vmatmul.msk.bf16.vlgmr.msra.gmra.mxu3 %vm853_vm11, %v842_v3 }
 0x239   : > { %939 = vmatpush.bf16.xpose.msrb.mxu1 %v930_v35 }
 0x23f   : > { %1321 = vrot.lane.b32.xlu1 %v2944_v0, %s2722_s15 }
 0x240   : > { %2433 = vmatmul.msk.bf16.vlgmr.msrb.gmra.mxu1 %vm853_vm11, %v843_v7  ;;  %1273 = vrot.lane.b32.xlu2 %v2981_v22, %s2721_s30  ;;  %v523_v7 = vld [vmem:[%s3535_s7 + $0x10] sm:$0xff]  ;;  %s3296_s30 = scalar_lea.vmem %s3528_s0, %s2808_s16 }
 0x241   : > { %2434 = vmatmul.msk.bf16.vlgmr.msrb.gmra.mxu2 %vm853_vm11, %v844_v11  ;;  %v524_v11 = vld [vmem:[%s3535_s7 + $0x18] sm:$0xff] }
 0x246   : > { %v973_v43 = vpop.permute.xlu0 %972 }
 0x247   : > { %v978_v36 = vsel %vm853_vm11, %v973_v43, 0 }
 0x248   : > { %987 = vmatpush.bf16.xpose.msrb.mxu3 %v978_v36 }
 0x24e   : > { %v1147_v37 = vpop.permute.xlu0 %1146 }
 0x24f   : > { %v1153_v38 = vsel %vm1151_vm12, %v1147_v37, 0  ;;  %2435 = vmatmul.msk.bf16.vlgmr.msrb.gmra.mxu3 %vm853_vm11, %v845_v16 }
 0x250   : > { %1162 = vmatpush.bf16.msra.mxu3 %v1153_v38 }
 0x256   : > { %v1211_v39 = vpop.permute.xlu0 %1210 }
 0x257   : > { %v1216_v42 = vsel %vm1151_vm12, %v1211_v39, 0  ;;  %v528_v39 = vld [vmem:[%s3535_s7 + $0x38] sm:$0xff] }
 0x258   : > { %1225 = vmatpush.bf16.msrb.mxu3 %v1216_v42 }
 0x25e   : > { %v1232_v45 = vpop.permute.xlu0 %1231 }
 0x25f   : > { %v1237_v46 = vsel %vm1151_vm12, %v1232_v45, 0 }
 0x260   : > { %1246 = vmatpush.bf16.msrb.mxu0 %v1237_v46 }
 0x266   : > { %v3051_v34 = vpop.permute.xlu0 %1344 }
 0x28a   : > { %v1021_v47 = vpop.permute.xlu2 %1020 }
 0x28b   : > { %v1026_v49 = vsel %vm853_vm11, %v1021_v47, 0  ;;  %v527_v47 = vld [vmem:[%s3535_s7 + $0x30] sm:$0xff] }
 0x28c   : > { %1035 = vmatpush.bf16.xpose.msra.mxu2 %v1026_v49  ;;  %v869_v51 = vpop.f32.mrf.mxu1 }
 0x28d   : > { %v1041_v52 = vadd.f32 %v869_v51, %v521_v50 }
 0x28f   : > { %v1050_v53 = vsel %vm1049_vm13, %v1041_v52, -inf }
 0x290   : > { %1051 = vmax.xlane.f32.xlu0 %v1050_v53 }
 0x292   : > { %v1190_v55 = vpop.permute.xlu2 %1189 }
 0x293   : > { %v1195_v57 = vsel %vm1151_vm12, %v1190_v55, 0  ;;  %2437 = vmatmul.msk.bf16.vlgmr.msra.gmra.mxu2 %vm853_vm11, %v847_v30 }
 0x294   : > { %1204 = vmatpush.bf16.msrb.mxu2 %v1195_v57  ;;  %v871_v58 = vpop.f32.mrf.mxu1 }
 0x299   : > { %v997_v59 = vpop.permute.xlu1 %996 }
 0x29a   : > { %v1002_v60 = vsel %vm853_vm11, %v997_v59, 0  ;;  %v1274_v41 = vpop.permute.xlu2 %1273 }
 0x29b   : > { %1011 = vmatpush.bf16.xpose.msra.mxu1 %v1002_v60  ;;  %v1279_v61 = vsel %vm1151_vm12, %v1274_v41, 0 }
 0x29c   : > { %1288 = vmatpush.bf16.msra.mxu2 %v1279_v61 }
 0x2a1   : > { %v1169_v62 = vpop.permute.xlu1 %1168  ;;  %v3053_v56 = vpop.permute.xlu0 %1294 }
 0x2a2   : > { %v1174_v63 = vsel %vm1151_vm12, %v1169_v62, 0  ;;  %2436 = vmatmul.msk.bf16.vlgmr.msra.gmra.mxu1 %vm853_vm11, %v2978_v20 }
 0x2a3   : > { %1183 = vmatpush.bf16.msrb.mxu1 %v1174_v63 }
 0x2a9   : > { %v1253_v54 = vpop.permute.xlu1 %1252 }
 0x2aa   : > { %v1258_v12 = vsel %vm1151_vm12, %v1253_v54, 0 }
 0x2ab   : > { %1267 = vmatpush.bf16.msra.mxu1 %v1258_v12 }
 0x2b1   : > { %v1322_v1 = vpop.permute.xlu1 %1321 }
 0x2b2   : > { %v1327_v29 = vsel %vm853_vm11, %v1322_v1, 0 }
 0x2b3   : > { %1336 = vmatpush.bf16.xpose.msra.mxu0 %v1327_v29 }
 0x2b4   : > { %v893_v3 = vpop.f32.mrf.mxu2 }
 0x2b5   : > { %v1042_v4 = vadd.f32 %v893_v3, %v522_v2 }
 0x2b7   : > { %v1053_v6 = vsel %vm1049_vm13, %v1042_v4, -inf }
 0x2b8   : > { %1054 = vmax.xlane.f32.xlu2 %v1053_v6 }
 0x2bb   : > { %v917_v10 = vpop.f32.mrf.mxu3 }
 0x2bc   : > { %v895_v8 = vpop.f32.mrf.mxu2  ;;  %v1043_v13 = vadd.f32 %v917_v10, %v523_v7 }
 0x2bd   : > { %v941_v15 = vpop.f32.mrf.mxu1 }
 0x2be   : > { %v3038_v16 = vadd.f32 %v941_v15, %v524_v11  ;;  %v1056_v17 = vsel %vm1049_vm13, %v1043_v13, -inf }
 0x2bf   : > { %1057 = vmax.xlane.f32.xlu1 %v1056_v17 }
 0x2c0   : > { %v1059_v44 = vsel %vm1049_vm13, %v3038_v16, -inf }
 0x2c1   : > { %1060 = vmax.xlane.f32.xlu0 %v1059_v44 }
 0x2c3   : > { %v919_v40 = vpop.f32.mrf.mxu3 }
 0x2c4   : > { %v965_v20 = vpop.f32.mrf.mxu2 }
 0x2c5   : > { %v1045_v21 = vadd.f32 %v965_v20, %v525_v19  ;;  %v943_v23 = vpop.f32.mrf.mxu1 }
 0x2c7   : > { %v1062_v25 = vsel %vm1049_vm13, %v1045_v21, -inf }
 0x2c8   : > { %1063 = vmax.xlane.f32.xlu2 %v1062_v25  ;;  %v1300_v25 = vsel %vm1151_vm12, %v3053_v56, 0 }
 0x2cc   : > { %v967_v26 = vpop.f32.mrf.mxu2 }
 0x2d2   : > { %v989_v28 = vpop.f32.mrf.mxu3 }
 0x2d3   : > { %v1046_v30 = vadd.f32 %v989_v28, %v526_v27 }
 0x2d5   : > { %v1065_v31 = vsel %vm1049_vm13, %v1046_v30, -inf }
 0x2d6   : > { %1066 = vmax.xlane.f32.xlu1 %v1065_v31 }
 0x2da   : > { %v991_v33 = vpop.f32.mrf.mxu3 }
 0x303   : > { %v1052_v35 = vpop.xlane.xlu0 %1051 }
 0x304   : > { %v1074_v43 = vsub.f32 %v1041_v52, %v1052_v35 }
 0x306   : > { %v1082_v36 = vmul.f32 1.442695, %v1074_v43 }
 0x308   : > { %2615 = vpow2.f32 %v1082_v36 }
 0x30e   : > { %v2616_v37 = vpop.eup %2615 }
 0x30f   : > { %v1098_v38 = vsel %vm1049_vm13, %v2616_v37, 0.0 }
 0x310   : > { %1099 = vadd.xlane.f32.xlu1 %v1098_v38 }
 0x316   : > { %v1037_v42 = vpop.f32.mrf.mxu2 }
 0x317   : > { %v1048_v45 = vadd.f32 %v1037_v42, %v528_v39 }
 0x319   : > { %v1071_v46 = vsel %vm1049_vm13, %v1048_v45, -inf }
 0x31a   : > { %1072 = vmax.xlane.f32.xlu2 %v1071_v46 }
 0x31e   : > { %v1039_v49 = vpop.f32.mrf.mxu2 }
 0x31f   : > { %v1013_v50 = vpop.f32.mrf.mxu1 }
 0x320   : > { %v1047_v51 = vadd.f32 %v1013_v50, %v527_v47 }
 0x322   : > { %v1068_v52 = vsel %vm1049_vm13, %v1047_v51, -inf }
 0x323   : > { %1069 = vmax.xlane.f32.xlu0 %v1068_v52 }
 0x327   : > { %v1015_v53 = vpop.f32.mrf.mxu1 }
 0x329   : > { %1390 = vrot.lane.b32.xlu1 %v2956_v9, %s2722_s15 }
 0x32b   : > { %v1055_v58 = vpop.xlane.xlu2 %1054 }
 0x32c   : > { %v1075_v60 = vsub.f32 %v1042_v4, %v1055_v58 }
 0x32e   : > { %v1084_v63 = vmul.f32 1.442695, %v1075_v60 }
 0x332   : > { %1367 = vrot.lane.b32.xlu2 %v2952_v5, %s2722_s15  ;;  %v1058_v55 = vpop.xlane.xlu1 %1057 }
 0x333   : > { %v1076_v57 = vsub.f32 %v1043_v13, %v1058_v55 }
 0x334   : > { %v1061_v54 = vpop.xlane.xlu0 %1060 }
 0x335   : > { %v1086_v59 = vmul.f32 1.442695, %v1076_v57  ;;  %v1077_v29 = vsub.f32 %v3038_v16, %v1061_v54  ;;  %v1350_v57 = vsel %vm853_vm11, %v3051_v34, 0 }
 0x337   : > { %1319 = vrot.lane.b32.xlu0 %v2944_v0, %s2723_s20  ;;  %2617 = vpow2.f32 %v1086_v59  ;;  %v1088_v7 = vmul.f32 1.442695, %v1077_v29 }
 0x338   : > { %2619 = vpow2.f32 %v1084_v63 }
 0x33b   : > { %v1064_v62 = vpop.xlane.xlu2 %1063 }
 0x33c   : > { %v1078_v1 = vsub.f32 %v1045_v21, %v1064_v62 }
 0x33d   : > { %v2618_v2 = vpop.eup %2617 }
 0x33e   : > { %v1090_v3 = vmul.f32 1.442695, %v1078_v1  ;;  %v1104_v6 = vsel %vm1049_vm13, %v2618_v2, 0.0  ;;  %v3072_v8 = vpop.eup %2619 }
 0x33f   : > { %v1101_v10 = vsel %vm1049_vm13, %v3072_v8, 0.0 }
 0x349   : > { %v1067_v41 = vpop.xlane.xlu1 %1066 }
 0x34a   : > { %v1079_v61 = vsub.f32 %v1046_v30, %v1067_v41 }
 0x34c   : > { %v1092_v12 = vmul.f32 1.442695, %v1079_v61 }
 0x34e   : > { %2621 = vpow2.f32 %v1092_v12 }
 0x34f   : > { %2623 = vpow2.f32 %v1090_v3 }
 0x350   : > { %2625 = vpow2.f32 %v1088_v7 }
 0x353   : > { %1105 = vadd.xlane.f32.xlu1 %v1104_v6 }
 0x354   : > { %v3074_v4 = vpop.eup %2621 }
 0x355   : > { %v1113_v11 = vsel %vm1049_vm13, %v3074_v4, 0.0  ;;  %v3080_v13 = vpop.eup %2623 }
 0x356   : > { %v3082_v15 = vpop.eup %2625  ;;  %v1110_v16 = vsel %vm1049_vm13, %v3080_v13, 0.0 }
 0x357   : > { %v1107_v17 = vsel %vm1049_vm13, %v3082_v15, 0.0 }
 0x35b   : > { %1102 = vadd.xlane.f32.xlu2 %v1101_v10  ;;  %1114 = vadd.xlane.f32.xlu1 %v1113_v11 }
 0x361   : > { %1111 = vadd.xlane.f32.xlu0 %v1110_v16 }
 0x363   : > { %1108 = vadd.xlane.f32.xlu2 %v1107_v17 }
 0x374   : > { %1365 = vrot.lane.b32.xlu1 %v2952_v5, %s2723_s20 }
 0x37c   : > { %1436 = vrot.lane.b32.xlu1 %v2964_v18, %s2722_s15 }
 0x383   : > { %v1100_v44 = vpop.xlane.xlu1 %1099 }
 0x384   : > { %2627 = vrcp.f32 %v1100_v44  ;;  %1411 = vrot.lane.b32.xlu1 %v2960_v14, %s2723_s20 }
 0x38a   : > { %v2628_v19 = vpop.eup %2627 }
 0x38b   : > { %v1130_v40 = vmul.f32 %v2628_v19, %v2616_v37 }
 0x38c   : > { %1480 = vrot.lane.b32.xlu1 %v2987_v32, %s2723_s20 }
 0x38d   : > { %v1073_v20 = vpop.xlane.xlu2 %1072  ;;  %v1138_v21 = vpack.c.bf16 %v1130_v40, %v1130_v40 }
 0x38e   : > { %v1081_v23 = vsub.f32 %v1048_v45, %v1073_v20 }
 0x38f   : > { %2438 = vmatmul.msk.bf16.vlgmr.msra.gmra.mxu3 %vm1049_vm13, %v1138_v21 }
 0x390   : > { %v1096_v26 = vmul.f32 1.442695, %v1081_v23  ;;  %1309 = vmatpush.bf16.msra.mxu3 %v1300_v25 }
 0x392   : > { %2629 = vpow2.f32 %v1096_v26 }
 0x395   : > { %v1368_v36 = vpop.permute.xlu2 %1367 }
 0x396   : > { %v1070_v27 = vpop.xlane.xlu0 %1069  ;;  %v1373_v47 = vsel %vm853_vm11, %v1368_v36, 0 }
 0x397   : > { %v1080_v28 = vsub.f32 %v1047_v51, %v1070_v27 }
 0x398   : > { %v3099_v30 = vpop.eup %2629 }
 0x399   : > { %v1094_v31 = vmul.f32 1.442695, %v1080_v28  ;;  %v1119_v33 = vsel %vm1049_vm13, %v3099_v30, 0.0 }
 0x39a   : > { %1120 = vadd.xlane.f32.xlu0 %v1119_v33 }
 0x39b   : > { %2631 = vpow2.f32 %v1094_v31  ;;  %v1391_v43 = vpop.permute.xlu1 %1390 }
 0x39c   : > { %v1396_v34 = vsel %vm853_vm11, %v1391_v43, 0 }
 0x3a1   : > { %v3103_v35 = vpop.eup %2631 }
 0x3a2   : > { %v1116_v56 = vsel %vm1049_vm13, %v3103_v35, 0.0 }
 0x3a3   : > { %1117 = vadd.xlane.f32.xlu2 %v1116_v56 }
 0x3a9   : > { %v1320_v38 = vpop.permute.xlu0 %1319 }
 0x3ae   : > { %1388 = vrot.lane.b32.xlu0 %v2956_v9, %s2723_s20 }
 0x3b6   : > { %1459 = vrot.lane.b32.xlu0 %v2981_v22, %s2722_s15 }
 0x3bb   : > { %1342 = vrot.lane.b32.xlu2 %v2948_v48, %s2723_s20 }
 0x3be   : > { %1434 = vrot.lane.b32.xlu0 %v2964_v18, %s2723_s20 }
 0x3c3   : > { %1413 = vrot.lane.b32.xlu2 %v2960_v14, %s2722_s15 }
 0x3c6   : > { %v1106_v37 = vpop.xlane.xlu1 %1105 }
 0x3c7   : > { %2633 = vrcp.f32 %v1106_v37 }
 0x3cb   : > { %1482 = vrot.lane.b32.xlu2 %v2987_v32, %s2722_s15  ;;  %s2724_s15 = smov 48  }
 0x3cd   : > { %v2634_v39 = vpop.eup %2633 }
 0x3ce   : > { %v1103_v42 = vpop.xlane.xlu2 %1102  ;;  %v1132_v45 = vmul.f32 %v2634_v39, %v2618_v2  ;;  %v1115_v55 = vpop.xlane.xlu1 %1114 }
 0x3cf   : > { %2635 = vrcp.f32 %v1103_v42 }
 0x3d0   : > { %v1140_v46 = vpack.c.bf16 %v1132_v45, %v1132_v45 }
 0x3d2   : > { %2440 = vmatmul.msk.bf16.vlgmr.msrb.gmra.mxu2 %vm1049_vm13, %v1140_v46 }
 0x3d3   : > { %1457 = vrot.lane.b32.xlu2 %v2981_v22, %s2723_s20  ;;  %1382 = vmatpush.bf16.xpose.msrb.mxu2 %v1373_v47  ;;  %v529_v47 = vld [vmem:[%s3535_s7 + $0x40] sm:$0xff] }
 0x3d4   : > { %v1112_v49 = vpop.xlane.xlu0 %1111 }
 0x3d5   : > { %v2636_v50 = vpop.eup %2635  ;;  %2637 = vrcp.f32 %v1112_v49 }
 0x3d6   : > { %v1131_v51 = vmul.f32 %v2636_v50, %v3072_v8  ;;  %v1109_v52 = vpop.xlane.xlu2 %1108 }
 0x3d7   : > { %2639 = vrcp.f32 %v1109_v52 }
 0x3d8   : > { %v1139_v53 = vpack.c.bf16 %v1131_v51, %v1131_v51  ;;  %2641 = vrcp.f32 %v1115_v55 }
 0x3da   : > { %2439 = vmatmul.msk.bf16.vlgmr.msrb.gmra.mxu1 %vm1049_vm13, %v1139_v53 }
 0x3db   : > { %v2638_v58 = vpop.eup %2637  ;;  %1359 = vmatpush.bf16.xpose.msrb.mxu1 %v1350_v57  ;;  %1607 = vrot.lane.b32.xlu2 %v2944_v0, %s2724_s15  ;;  %v530_v57 = vld [vmem:[%s3535_s7 + $0x48] sm:$0xff] }
 0x3dc   : > { %v1134_v59 = vmul.f32 %v2638_v58, %v3080_v13 }
 0x3dd   : > { %v2640_v60 = vpop.eup %2639 }
 0x3de   : > { %v1133_v41 = vmul.f32 %v2640_v60, %v3082_v15  ;;  %v1142_v61 = vpack.c.bf16 %v1134_v59, %v1134_v59  ;;  %v2642_v63 = vpop.eup %2641 }
 0x3df   : > { %v1135_v54 = vmul.f32 %v2642_v63, %v3074_v4 }
 0x3e0   : > { %v1141_v62 = vpack.c.bf16 %v1133_v41, %v1133_v41  ;;  %2442 = vmatmul.msk.bf16.vlgmr.msrb.gmra.mxu0 %vm1049_vm13, %v1142_v61 }
 0x3e1   : > { %v1143_v1 = vpack.c.bf16 %v1135_v54, %v1135_v54  ;;  %v533_v54 = vld [vmem:[%s3535_s7 + $0x60] sm:$0xff] }
 0x3e2   : > { %2441 = vmatmul.msk.bf16.vlgmr.msrb.gmra.mxu3 %vm1049_vm13, %v1141_v62 }
 0x3e3   : > { %1405 = vmatpush.bf16.xpose.msrb.mxu3 %v1396_v34 }
 0x3e6   : > { %v1366_v12 = vpop.permute.xlu1 %1365 }
 0x3ea   : > { %2443 = vmatmul.msk.bf16.vlgmr.msra.gmra.mxu1 %vm1049_vm13, %v1143_v1 }
 0x3ee   : > { %v1437_v0 = vpop.permute.xlu1 %1436 }
 0x3ef   : > { %v1442_v2 = vsel %vm853_vm11, %v1437_v0, 0 }
 0x3f0   : > { %2446 = vmatmul.msk.bf16.vlgmr.msra.gmra.mxu0 %vm853_vm11, %v1320_v38  ;;  %1451 = vmatpush.bf16.xpose.msra.mxu1 %v1442_v2 }
 0x3f6   : > { %v1412_v21 = vpop.permute.xlu1 %1411 }
 0x3fe   : > { %v1481_v28 = vpop.permute.xlu1 %1480 }
 0x40d   : > { %v1121_v29 = vpop.xlane.xlu0 %1120 }
 0x40e   : > { %2643 = vrcp.f32 %v1121_v29 }
 0x412   : > { %v3138_v3 = vpop.f32.mrf.mxu3 }
 0x414   : > { %v2644_v6 = vpop.eup %2643 }
 0x415   : > { %v1137_v7 = vmul.f32 %v2644_v6, %v3099_v30 }
 0x416   : > { %v1118_v8 = vpop.xlane.xlu2 %1117 }
 0x417   : > { %v1145_v10 = vpack.c.bf16 %v1137_v7, %v1137_v7  ;;  %2645 = vrcp.f32 %v1118_v8 }
 0x419   : > { %2445 = vmatmul.msk.bf16.vlgmr.msra.gmra.mxu3 %vm1049_vm13, %v1145_v10  ;;  %v531_v10 = vld [vmem:[%s3535_s7 + $0x50] sm:$0xff] }
 0x41a   : > { %v1166_v4 = vpop.f32.mrf.mxu3 }
 0x41d   : > { %v2646_v11 = vpop.eup %2645 }
 0x41e   : > { %v1136_v13 = vmul.f32 %v2646_v11, %v3103_v35  ;;  %v1343_v15 = vpop.permute.xlu2 %1342 }
 0x41f   : > { %2447 = vmatmul.msk.bf16.vlgmr.msrb.gmra.mxu1 %vm853_vm11, %v1343_v15 }
 0x420   : > { %v1144_v16 = vpack.c.bf16 %v1136_v13, %v1136_v13  ;;  %v1389_v17 = vpop.permute.xlu0 %1388 }
 0x422   : > { %2444 = vmatmul.msk.bf16.vlgmr.msra.gmra.mxu2 %vm1049_vm13, %v1144_v16 }
 0x426   : > { %v1414_v44 = vpop.permute.xlu2 %1413 }
 0x427   : > { %v1419_v19 = vsel %vm853_vm11, %v1414_v44, 0  ;;  %v534_v44 = vld [vmem:[%s3535_s7 + $0x68] sm:$0xff] }
 0x428   : > { %v1460_v40 = vpop.permute.xlu0 %1459  ;;  %1428 = vmatpush.bf16.xpose.msrb.mxu0 %v1419_v19  ;;  %v536_v19 = vld [vmem:[%s3535_s7 + $0x78] sm:$0xff] }
 0x429   : > { %v1465_v20 = vsel %vm853_vm11, %v1460_v40, 0  ;;  %2449 = vmatmul.msk.bf16.vlgmr.msrb.gmra.mxu3 %vm853_vm11, %v1389_v17 }
 0x42a   : > { %1474 = vmatpush.bf16.xpose.msra.mxu2 %v1465_v20 }
 0x42e   : > { %v1483_v23 = vpop.permute.xlu2 %1482 }
 0x42f   : > { %v1488_v25 = vsel %vm853_vm11, %v1483_v23, 0  ;;  %2450 = vmatmul.msk.bf16.vlgmr.msrb.gmra.mxu0 %vm853_vm11, %v1412_v21 }
 0x430   : > { %v1435_v26 = vpop.permute.xlu0 %1434  ;;  %1497 = vmatpush.bf16.xpose.msra.mxu3 %v1488_v25 }
 0x431   : > { %2451 = vmatmul.msk.bf16.vlgmr.msra.gmra.mxu1 %vm853_vm11, %v1435_v26 }
 0x432   : > { %2448 = vmatmul.msk.bf16.vlgmr.msrb.gmra.mxu2 %vm853_vm11, %v1366_v12 }
 0x436   : > { %v1458_v27 = vpop.permute.xlu2 %1457 }
 0x439   : > { %2453 = vmatmul.msk.bf16.vlgmr.msra.gmra.mxu3 %vm853_vm11, %v1481_v28 }
 0x43e   : > { %v1608_v30 = vpop.permute.xlu2 %1607 }
 0x43f   : > { %v1613_v31 = vsel %vm1151_vm12, %v1608_v30, 0 }
 0x440   : > { %1622 = vmatpush.bf16.msra.mxu0 %v1613_v31 }
 0x442   : > { %2452 = vmatmul.msk.bf16.vlgmr.msra.gmra.mxu2 %vm853_vm11, %v1458_v27  ;;  %v535_v27 = vld [vmem:[%s3535_s7 + $0x70] sm:$0xff] }
 0x455   : > { %v3155_v33 = vpop.f32.mrf.mxu2 }
 0x457   : > { %v3157_v35 = vpop.f32.mrf.mxu1 }
 0x458   : > { %v1315_v56 = vpack.c.bf16 %v3157_v35, %v3138_v3 }
 0x45d   : > { %v3161_v43 = vpop.f32.mrf.mxu0  ;;  %v1208_v36 = vpop.f32.mrf.mxu2 }
 0x45f   : > { %v1187_v37 = vpop.f32.mrf.mxu1 }
 0x465   : > { %v3163_v38 = vpop.f32.mrf.mxu3  ;;  %v1250_v39 = vpop.f32.mrf.mxu0 }
 0x466   : > { %v1316_v42 = vpack.c.bf16 %v3163_v38, %v3155_v33 }
 0x467   : > { %v3167_v45 = vpop.f32.mrf.mxu1 }
 0x468   : > { %v1317_v46 = vpack.c.bf16 %v3167_v45, %v3161_v43 }
 0x46d   : > { %v1229_v49 = vpop.f32.mrf.mxu3  ;;  %v1338_v50 = vpop.f32.mrf.mxu0 }
 0x46e   : > { %v1503_v51 = vadd.f32 %v1338_v50, %v529_v47 }
 0x46f   : > { %v1271_v52 = vpop.f32.mrf.mxu1 }
 0x470   : > { %v1511_v53 = vsel %vm1049_vm13, %v1503_v51, -inf }
 0x471   : > { %1512 = vmax.xlane.f32.xlu0 %v1511_v53 }
 0x475   : > { %v1340_v55 = vpop.f32.mrf.mxu0 }
 0x485   : > { %1649 = vrot.lane.b32.xlu0 %v2952_v5, %s2724_s15  ;;  %v532_v5 = vld [vmem:[%s3535_s7 + $0x58] sm:$0xff] }
 0x49c   : > { %v3180_v58 = vpop.f32.mrf.mxu3  ;;  %v1361_v59 = vpop.f32.mrf.mxu1 }
 0x49d   : > { %v1504_v60 = vadd.f32 %v1361_v59, %v530_v57 }
 0x49f   : > { %v1514_v41 = vsel %vm1049_vm13, %v1504_v60, -inf }
 0x4a0   : > { %1515 = vmax.xlane.f32.xlu2 %v1514_v41 }
 0x4a4   : > { %v1313_v61 = vpop.f32.mrf.mxu3  ;;  %v1363_v62 = vpop.f32.mrf.mxu1 }
 0x4a5   : > { %v3183_v63 = vpop.f32.mrf.mxu2 }
 0x4a6   : > { %v1318_v34 = vpack.c.bf16 %v3180_v58, %v3183_v63 }
 0x4ac   : > { %v1407_v12 = vpop.f32.mrf.mxu3  ;;  %v1430_v1 = vpop.f32.mrf.mxu0 }
 0x4ad   : > { %v3193_v0 = vadd.f32 %v1407_v12, %v532_v5  ;;  %v1507_v2 = vadd.f32 %v1430_v1, %v533_v54  ;;  %v1292_v29 = vpop.f32.mrf.mxu2 }
 0x4ae   : > { %v1453_v6 = vpop.f32.mrf.mxu1 }
 0x4af   : > { %v1520_v7 = vsel %vm1049_vm13, %v3193_v0, -inf  ;;  %v1523_v8 = vsel %vm1049_vm13, %v1507_v2, -inf  ;;  %v1508_v40 = vadd.f32 %v1453_v6, %v534_v44 }
 0x4b0   : > { %1521 = vmax.xlane.f32.xlu0 %v1520_v7  ;;  %1524 = vmax.xlane.f32.xlu2 %v1523_v8 }
 0x4b1   : > { %v1526_v26 = vsel %vm1049_vm13, %v1508_v40, -inf }
 0x4b4   : > { %v1409_v4 = vpop.f32.mrf.mxu3  ;;  %v1432_v11 = vpop.f32.mrf.mxu0 }
 0x4b5   : > { %v1384_v13 = vpop.f32.mrf.mxu2 }
 0x4b6   : > { %v1505_v15 = vadd.f32 %v1384_v13, %v531_v10  ;;  %v1455_v16 = vpop.f32.mrf.mxu1 }
 0x4b8   : > { %v1517_v17 = vsel %vm1049_vm13, %v1505_v15, -inf }
 0x4b9   : > { %1518 = vmax.xlane.f32.xlu1 %v1517_v17 }
 0x4bc   : > { %v1499_v20 = vpop.f32.mrf.mxu3 }
 0x4bd   : > { %v1510_v21 = vadd.f32 %v1499_v20, %v536_v19  ;;  %v1386_v23 = vpop.f32.mrf.mxu2 }
 0x4bf   : > { %v1532_v25 = vsel %vm1049_vm13, %v1510_v21, -inf }
 0x4c0   : > { %1533 = vmax.xlane.f32.xlu2 %v1532_v25 }
 0x4c1   : > { %1527 = vmax.xlane.f32.xlu1 %v1526_v26 }
 0x4c4   : > { %v1501_v28 = vpop.f32.mrf.mxu3 }
 0x4c5   : > { %v1476_v30 = vpop.f32.mrf.mxu2 }
 0x4c6   : > { %v3213_v31 = vadd.f32 %v1476_v30, %v535_v27 }
 0x4c8   : > { %v1529_v36 = vsel %vm1049_vm13, %v3213_v31, -inf }
 0x4c9   : > { %1530 = vmax.xlane.f32.xlu0 %v1529_v36 }
 0x4cd   : > { %v1478_v37 = vpop.f32.mrf.mxu2 }
 0x4d8   : > { %1670 = vrot.lane.b32.xlu2 %v2956_v9, %s2724_s15 }
 0x4da   : > { %1628 = vrot.lane.b32.xlu1 %v2948_v48, %s2724_s15 }
 0x4dd   : > { %1691 = vrot.lane.b32.xlu0 %v2960_v14, %s2724_s15 }
 0x4e4   : > { %v1513_v39 = vpop.xlane.xlu0 %1512 }
 0x4e5   : > { %v1535_v47 = vsub.f32 %v1503_v51, %v1513_v39 }
 0x4e7   : > { %v1543_v49 = vmul.f32 1.442695, %v1535_v47 }
 0x4e9   : > { %2647 = vpow2.f32 %v1543_v49 }
 0x4ef   : > { %v3224_v53 = vpop.eup %2647 }
 0x4f0   : > { %v1559_v55 = vsel %vm1049_vm13, %v3224_v53, 0.0 }
 0x4f7   : > { %v1650_v50 = vpop.permute.xlu0 %1649 }
 0x4f8   : > { %v1655_v52 = vsel %vm1151_vm12, %v1650_v50, 0 }
 0x4f9   : > { %1664 = vmatpush.bf16.msrb.mxu2 %v1655_v52 }
 0x504   : > { %1560 = vadd.xlane.f32.xlu1 %v1559_v55 }
 0x513   : > { %v1516_v9 = vpop.xlane.xlu2 %1515 }
 0x514   : > { %v1536_v57 = vsub.f32 %v1504_v60, %v1516_v9 }
 0x516   : > { %v1545_v48 = vmul.f32 1.442695, %v1536_v57 }
 0x518   : > { %2649 = vpow2.f32 %v1545_v48 }
 0x51e   : > { %v3228_v59 = vpop.eup %2649 }
 0x51f   : > { %v1562_v14 = vsel %vm1049_vm13, %v3228_v59, 0.0 }
 0x520   : > { %1563 = vadd.xlane.f32.xlu0 %v1562_v14 }
 0x523   : > { %v1525_v51 = vpop.xlane.xlu2 %1524  ;;  %v1522_v62 = vpop.xlane.xlu0 %1521 }
 0x524   : > { %v1539_v41 = vsub.f32 %v1507_v2, %v1525_v51  ;;  %v1538_v1 = vsub.f32 %v3193_v0, %v1522_v62 }
 0x526   : > { %v1551_v61 = vmul.f32 1.442695, %v1539_v41  ;;  %v1549_v6 = vmul.f32 1.442695, %v1538_v1 }
 0x528   : > { %2651 = vpow2.f32 %v1551_v61 }
 0x52c   : > { %v1519_v5 = vpop.xlane.xlu1 %1518 }
 0x52d   : > { %v1537_v54 = vsub.f32 %v1505_v15, %v1519_v5 }
 0x52e   : > { %v2652_v12 = vpop.eup %2651 }
 0x52f   : > { %v1547_v29 = vmul.f32 1.442695, %v1537_v54  ;;  %v1571_v60 = vsel %vm1049_vm13, %v2652_v12, 0.0 }
 0x530   : > { %1572 = vadd.xlane.f32.xlu1 %v1571_v60 }
 0x531   : > { %2653 = vpow2.f32 %v1547_v29 }
 0x532   : > { %2655 = vpow2.f32 %v1549_v6 }
 0x533   : > { %v1534_v7 = vpop.xlane.xlu2 %1533 }
 0x534   : > { %v1542_v8 = vsub.f32 %v1510_v21, %v1534_v7  ;;  %v1528_v10 = vpop.xlane.xlu1 %1527  ;;  %v2526_v7 = vld [vmem:[%s3533_s5] sm:$0xff] }
 0x535   : > { %v1540_v4 = vsub.f32 %v1508_v40, %v1528_v10 }
 0x536   : > { %v1557_v11 = vmul.f32 1.442695, %v1542_v8 }
 0x537   : > { %v2654_v2 = vpop.eup %2653  ;;  %v1553_v13 = vmul.f32 1.442695, %v1540_v4 }
 0x538   : > { %2657 = vpow2.f32 %v1557_v11  ;;  %v1565_v15 = vsel %vm1049_vm13, %v2654_v2, 0.0  ;;  %v2656_v17 = vpop.eup %2655 }
 0x539   : > { %2659 = vpow2.f32 %v1553_v13  ;;  %1566 = vadd.xlane.f32.xlu0 %v1565_v15  ;;  %v1568_v21 = vsel %vm1049_vm13, %v2656_v17, 0.0 }
 0x53b   : > { %v1671_v0 = vpop.permute.xlu2 %1670 }
 0x53c   : > { %v1676_v16 = vsel %vm1151_vm12, %v1671_v0, 0  ;;  %v1531_v23 = vpop.xlane.xlu0 %1530 }
 0x53d   : > { %1685 = vmatpush.bf16.msrb.mxu3 %v1676_v16  ;;  %v1541_v30 = vsub.f32 %v3213_v31, %v1531_v23  ;;  %v2527_v16 = vld [vmem:[%s3533_s5 + $0x8] sm:$0xff] }
 0x53e   : > { %v3236_v44 = vpop.eup %2657 }
 0x53f   : > { %v2660_v19 = vpop.eup %2659  ;;  %v1580_v40 = vsel %vm1049_vm13, %v3236_v44, 0.0  ;;  %v1555_v36 = vmul.f32 1.442695, %v1541_v30 }
 0x540   : > { %1581 = vadd.xlane.f32.xlu1 %v1580_v40  ;;  %v1574_v20 = vsel %vm1049_vm13, %v2660_v19, 0.0 }
 0x541   : > { %1575 = vadd.xlane.f32.xlu2 %v1574_v20  ;;  %1569 = vadd.xlane.f32.xlu0 %v1568_v21  ;;  %2661 = vpow2.f32 %v1555_v36  ;;  %v2539_v36 = vld [vmem:[%s3296_s30] sm:$0xff]  }
 0x547   : > { %v2662_v39 = vpop.eup %2661 }
 0x548   : > { %v1577_v49 = vsel %vm1049_vm13, %v2662_v39, 0.0 }
 0x54c   : > { %v1629_v25 = vpop.permute.xlu1 %1628 }
 0x54d   : > { %v1634_v26 = vsel %vm1151_vm12, %v1629_v25, 0 }
 0x54e   : > { %1643 = vmatpush.bf16.msrb.mxu1 %v1634_v26 }
 0x54f   : > { %v1692_v27 = vpop.permute.xlu0 %1691 }
 0x550   : > { %v1697_v28 = vsel %vm1151_vm12, %v1692_v27, 0 }
 0x551   : > { %1706 = vmatpush.bf16.msrb.mxu0 %v1697_v28 }
 0x555   : > { %1712 = vrot.lane.b32.xlu0 %v2964_v18, %s2724_s15 }
 0x559   : > { %1754 = vrot.lane.b32.xlu1 %v2987_v32, %s2724_s15  ;;  %1733 = vrot.lane.b32.xlu2 %v2981_v22, %s2724_s15 }
 0x577   : > { %v1561_v37 = vpop.xlane.xlu1 %1560 }
 0x578   : > { %2663 = vrcp.f32 %v1561_v37 }
 0x57e   : > { %v2664_v47 = vpop.eup %2663 }
 0x57f   : > { %v1591_v50 = vmul.f32 %v2664_v47, %v3224_v53  ;;  %1578 = vadd.xlane.f32.xlu0 %v1577_v49 }
 0x581   : > { %v1599_v18 = vpack.c.bf16 %v1591_v50, %v1591_v50  ;;  %v3302_v50 = vld [vmem:[%s3534_s6] ss:$0 sm:$0xff] }
 0x583   : > { %2454 = vmatmul.msk.bf16.vlgmr.msra.gmra.mxu0 %vm1049_vm13, %v1599_v18 }
 0x584   : > { %1804 = vmatpush.bf16.msra.mxu0 %v2527_v16 }
 0x593   : > { %v1564_v32 = vpop.xlane.xlu0 %1563 }
 0x594   : > { %2665 = vrcp.f32 %v1564_v32 }
 0x59a   : > { %v2666_v52 = vpop.eup %2665 }
 0x59b   : > { %v1592_v22 = vmul.f32 %v2666_v52, %v3228_v59  ;;  %v2541_v52 = vunpack.c.h.bf16 %v2539_v36 }
 0x59d   : > { %v1600_v31 = vpack.c.bf16 %v1592_v22, %v1592_v22 }
 0x59f   : > { %2455 = vmatmul.msk.bf16.vlgmr.msrb.gmra.mxu1 %vm1049_vm13, %v1600_v31 }
 0x5a3   : > { %v1573_v55 = vpop.xlane.xlu1 %1572 }
 0x5a4   : > { %2667 = vrcp.f32 %v1573_v55 }
 0x5aa   : > { %v2668_v9 = vpop.eup %2667 }
 0x5ab   : > { %v1595_v57 = vmul.f32 %v2668_v9, %v2652_v12 }
 0x5ac   : > { %v1567_v48 = vpop.xlane.xlu0 %1566 }
 0x5ad   : > { %2669 = vrcp.f32 %v1567_v48  ;;  %v1603_v14 = vpack.c.bf16 %v1595_v57, %v1595_v57 }
 0x5af   : > { %2458 = vmatmul.msk.bf16.vlgmr.msrb.gmra.mxu0 %vm1049_vm13, %v1603_v14 }
 0x5b3   : > { %v2670_v53 = vpop.eup %2669  ;;  %v1582_v12 = vpop.xlane.xlu1 %1581 }
 0x5b4   : > { %v1593_v51 = vmul.f32 %v2670_v53, %v2654_v2  ;;  %v1576_v41 = vpop.xlane.xlu2 %1575  ;;  %v1570_v61 = vpop.xlane.xlu0 %1569 }
 0x5b5   : > { %2671 = vrcp.f32 %v1570_v61 }
 0x5b6   : > { %v1601_v62 = vpack.c.bf16 %v1593_v51, %v1593_v51  ;;  %2673 = vrcp.f32 %v1576_v41  ;;  %v2570_v51 = vld [vmem:[%s3296_s30 + $0x8] sm:$0xff]  }
 0x5b7   : > { %2675 = vrcp.f32 %v1582_v12  ;;  %v2544_v41 = vunpack.c.l.bf16 %v2570_v51 }
 0x5b8   : > { %2456 = vmatmul.msk.bf16.vlgmr.msrb.gmra.mxu2 %vm1049_vm13, %v1601_v62 }
 0x5bb   : > { %v2672_v59 = vpop.eup %2671 }
 0x5bc   : > { %v1734_v5 = vpop.permute.xlu2 %1733  ;;  %v1594_v54 = vmul.f32 %v2672_v59, %v2656_v17  ;;  %v2674_v60 = vpop.eup %2673 }
 0x5bd   : > { %v1739_v1 = vsel %vm1151_vm12, %v1734_v5, 0  ;;  %v1596_v6 = vmul.f32 %v2674_v60, %v2660_v19  ;;  %v2676_v10 = vpop.eup %2675 }
 0x5be   : > { %1748 = vmatpush.bf16.msra.mxu2 %v1739_v1  ;;  %v1602_v29 = vpack.c.bf16 %v1594_v54, %v1594_v54  ;;  %v1598_v2 = vmul.f32 %v2676_v10, %v3236_v44  ;;  %v2545_v1 = vunpack.c.h.bf16 %v2570_v51 }
 0x5bf   : > { %v1604_v11 = vpack.c.bf16 %v1596_v6, %v1596_v6 }
 0x5c0   : > { %2457 = vmatmul.msk.bf16.vlgmr.msrb.gmra.mxu3 %vm1049_vm13, %v1602_v29  ;;  %v1606_v0 = vpack.c.bf16 %v1598_v2, %v1598_v2 }
 0x5c7   : > { %v1713_v8 = vpop.permute.xlu0 %1712 }
 0x5c8   : > { %v1718_v4 = vsel %vm1151_vm12, %v1713_v8, 0 }
 0x5c9   : > { %1727 = vmatpush.bf16.msra.mxu1 %v1718_v4 }
 0x5cb   : > { %v1755_v13 = vpop.permute.xlu1 %1754 }
 0x5cc   : > { %v1760_v15 = vsel %vm1151_vm12, %v1755_v13, 0  ;;  %2459 = vmatmul.msk.bf16.vlgmr.msra.gmra.mxu1 %vm1049_vm13, %v1604_v11 }
 0x5cd   : > { %1851 = vmatpush.bf16.msrb.mxu1 %v2526_v7  ;;  %1769 = vmatpush.bf16.msra.mxu3 %v1760_v15  ;;  %v2571_v7 = vld [vmem:[%s3296_s30 + $0x10] sm:$0xff]  }
 0x5ce   : > { %v2548_v4 = vunpack.c.l.bf16 %v2571_v7  ;;  %v2549_v16 = vunpack.c.h.bf16 %v2571_v7 }
 0x5d0   : > { %2461 = vmatmul.msk.bf16.vlgmr.msra.gmra.mxu3 %vm1049_vm13, %v1606_v0 }
 0x5dc   : > { %2474 = vmatmul.msk.bf16.vlgmr.msrb.gmra.mxu1 %vm853_vm11, %v1315_v56 }
 0x5ec   : > { %2475 = vmatmul.msk.bf16.gmra.mxu1 %vm853_vm11, %v1316_v42 }
 0x5f2   : > { %v1579_v17 = vpop.xlane.xlu0 %1578 }
 0x5f3   : > { %2677 = vrcp.f32 %v1579_v17 }
 0x5f9   : > { %v2678_v44 = vpop.eup %2677 }
 0x5fa   : > { %v1597_v19 = vmul.f32 %v2678_v44, %v2662_v39  ;;  %v2540_v39 = vunpack.c.l.bf16 %v2539_v36 }
 0x5fc   : > { %v1605_v40 = vpack.c.bf16 %v1597_v19, %v1597_v19  ;;  %2476 = vmatmul.msk.bf16.gmra.mxu1 %vm853_vm11, %v1317_v46 }
 0x5fe   : > { %2460 = vmatmul.msk.bf16.vlgmr.msra.gmra.mxu2 %vm1049_vm13, %v1605_v40 }
 0x600   : > { %v1624_v3 = vpop.f32.mrf.mxu0 }
 0x608   : > { %v1626_v33 = vpop.f32.mrf.mxu0 }
 0x60c   : > { %2477 = vmatmul.msk.bf16.gmra.mxu1 %vm853_vm11, %v1318_v34 }
 0x61c   : > { %v1645_v35 = vpop.f32.mrf.mxu1 }
 0x61d   : > { %v1775_v56 = vpack.c.bf16 %v1645_v35, %v1624_v3 }
 0x61f   : > { %2466 = vmatmul.msk.bf16.vlgmr.msra.gmra.mxu0 %vm853_vm11, %v1775_v56 }
 0x624   : > { %v1647_v38 = vpop.f32.mrf.mxu1 }
 0x62c   : > { %v1708_v42 = vpop.f32.mrf.mxu0 }
 0x634   : > { %v1710_v20 = vpop.f32.mrf.mxu0 }
 0x63b   : > { %v1666_v21 = vpop.f32.mrf.mxu2 }
 0x643   : > { %v1668_v43 = vpop.f32.mrf.mxu2  ;;  %v1687_v45 = vpop.f32.mrf.mxu3 }
 0x644   : > { %v1776_v46 = vpack.c.bf16 %v1687_v45, %v1666_v21 }
 0x646   : > { %2467 = vmatmul.msk.bf16.gmra.mxu0 %vm853_vm11, %v1776_v46 }
 0x649   : > { %v1729_v23 = vpop.f32.mrf.mxu1 }
 0x64a   : > { %v1777_v63 = vpack.c.bf16 %v1729_v23, %v1708_v42  ;;  %v2572_v42 = vld [vmem:[%s3296_s30 + $0x18] sm:$0xff]  }
 0x64b   : > { %v1689_v25 = vpop.f32.mrf.mxu3  ;;  %v2552_v43 = vunpack.c.l.bf16 %v2572_v42 }
 0x651   : > { %v1731_v26 = vpop.f32.mrf.mxu1 }
 0x653   : > { %v1771_v58 = vpop.f32.mrf.mxu3 }
 0x656   : > { %2468 = vmatmul.msk.bf16.gmra.mxu0 %vm853_vm11, %v1777_v63 }
 0x659   : > { %v1853_v37 = vpop.f32.mrf.mxu1 }
 0x65b   : > { %v1773_v34 = vpop.f32.mrf.mxu3 }
 0x661   : > { %v1855_v31 = vpop.f32.mrf.mxu1 }
 0x669   : > { %v1858_v53 = vpop.f32.mrf.mxu1 }
 0x671   : > { %v1860_v5 = vpop.f32.mrf.mxu1 }
 0x679   : > { %v1863_v10 = vpop.f32.mrf.mxu1 }
 0x681   : > { %v1750_v27 = vpop.f32.mrf.mxu2  ;;  %v1865_v44 = vpop.f32.mrf.mxu1 }
 0x682   : > { %v1778_v28 = vpack.c.bf16 %v1771_v58, %v1750_v27 }
 0x684   : > { %2469 = vmatmul.msk.bf16.gmra.mxu0 %vm853_vm11, %v1778_v28 }
 0x689   : > { %v1752_v30 = vpop.f32.mrf.mxu2  ;;  %v1868_v38 = vpop.f32.mrf.mxu1 }
 0x68a   : > { %v2553_v30 = vunpack.c.h.bf16 %v2572_v42 }
 0x691   : > { %v1870_v27 = vpop.f32.mrf.mxu1 }
 0x69c   : > { %v1806_v47 = vpop.f32.mrf.mxu0 }
 0x69d   : > { %v1854_v49 = vadd.f32 %v1853_v37, %v1806_v47 }
 0x69f   : > { %v1873_v18 = vadd.f32 %v2540_v39, %v1854_v49 }
 0x6a1   : > { %v3305_v32 = vadd.f32 %v3302_v50, %v1873_v18 }
 0x6a3   : > { %v1892_v22 = vsel %vm577_vm0, %v3305_v32, 0.0 }
 0x6a4   : > { %v1808_v55 = vpop.f32.mrf.mxu0  ;;  %1893 = vadd.xlane.f32.xlu2 %v1892_v22 }
 0x6a5   : > { %v1856_v9 = vadd.f32 %v1855_v31, %v1808_v55 }
 0x6a7   : > { %v1874_v57 = vadd.f32 %v2541_v52, %v1856_v9 }
 0x6a9   : > { %v3310_v48 = vadd.f32 %v3302_v50, %v1874_v57 }
 0x6ab   : > { %v1895_v14 = vsel %vm577_vm0, %v3310_v48, 0.0 }
 0x6ac   : > { %1896 = vadd.xlane.f32.xlu0 %v1895_v14 }
 0x6c3   : > { %v1811_v61 = vpop.f32.mrf.mxu0 }
 0x6c4   : > { %v1859_v62 = vadd.f32 %v1858_v53, %v1811_v61 }
 0x6c6   : > { %v1875_v59 = vadd.f32 %v2544_v41, %v1859_v62 }
 0x6c8   : > { %v3316_v54 = vadd.f32 %v3302_v50, %v1875_v59 }
 0x6ca   : > { %v1898_v12 = vsel %vm577_vm0, %v3316_v54, 0.0 }
 0x6cb   : > { %v1813_v29 = vpop.f32.mrf.mxu0  ;;  %1899 = vadd.xlane.f32.xlu1 %v1898_v12 }
 0x6cc   : > { %v1861_v60 = vadd.f32 %v1860_v5, %v1813_v29 }
 0x6ce   : > { %v1876_v6 = vadd.f32 %v2545_v1, %v1861_v60 }
 0x6d0   : > { %v3322_v8 = vadd.f32 %v3302_v50, %v1876_v6 }
 0x6d2   : > { %v1901_v11 = vsel %vm577_vm0, %v3322_v8, 0.0 }
 0x6d3   : > { %v1816_v2 = vpop.f32.mrf.mxu0  ;;  %1902 = vadd.xlane.f32.xlu0 %v1901_v11  ;;  %v2529_v11 = vld [vmem:[%s3538_s10 + $0x8] sm:$0xff] }
 0x6d4   : > { %v1864_v13 = vadd.f32 %v1863_v10, %v1816_v2  ;;  %2127 = vmatpush.bf16.msrb.mxu2 %v2529_v11 }
 0x6d6   : > { %v1877_v15 = vadd.f32 %v2548_v4, %v1864_v13 }
 0x6d8   : > { %v3327_v0 = vadd.f32 %v3302_v50, %v1877_v15  ;;  %v2528_v15 = vld [vmem:[%s3538_s10] sm:$0xff] }
 0x6d9   : > { %2128 = vmatpush.bf16.msrb.mxu2 %v2528_v15 }
 0x6da   : > { %v1904_v17 = vsel %vm577_vm0, %v3327_v0, 0.0 }
 0x6db   : > { %v1818_v19 = vpop.f32.mrf.mxu0  ;;  %1905 = vadd.xlane.f32.xlu0 %v1904_v17 }
 0x6dc   : > { %v1866_v40 = vadd.f32 %v1865_v44, %v1818_v19 }
 0x6de   : > { %v1878_v3 = vadd.f32 %v2549_v16, %v1866_v40 }
 0x6e0   : > { %v3332_v33 = vadd.f32 %v3302_v50, %v1878_v3 }
 0x6e2   : > { %v1907_v35 = vsel %vm577_vm0, %v3332_v33, 0.0 }
 0x6e3   : > { %1908 = vadd.xlane.f32.xlu0 %v1907_v35 }
 0x701   : > { %v1821_v56 = vpop.f32.mrf.mxu0 }
 0x702   : > { %v1869_v45 = vadd.f32 %v1868_v38, %v1821_v56 }
 0x704   : > { %v1879_v25 = vadd.f32 %v2552_v43, %v1869_v45 }
 0x706   : > { %v3346_v28 = vadd.f32 %v3302_v50, %v1879_v25 }
 0x708   : > { %v1910_v18 = vsel %vm577_vm0, %v3346_v28, 0.0 }
 0x709   : > { %v1823_v58 = vpop.f32.mrf.mxu0 }
 0x70a   : > { %v1871_v36 = vadd.f32 %v1870_v27, %v1823_v58 }
 0x70c   : > { %v1880_v47 = vadd.f32 %v2553_v30, %v1871_v36 }
 0x70e   : > { %v3357_v52 = vadd.f32 %v3302_v50, %v1880_v47 }
 0x710   : > { %v1913_v22 = vsel %vm577_vm0, %v3357_v52, 0.0 }
 0x717   : > { %v1894_v20 = vpop.xlane.xlu2 %1893 }
 0x718   : > { %v1916_v21 = vmul.f32 %v1894_v20, %v2828_v24 }
 0x71a   : > { %v3339_v46 = vsub.f32 %v3305_v32, %v1916_v21 }
 0x71c   : > { %v1932_v23 = vmul.f32 %v3339_v46, %v3339_v46 }
 0x71e   : > { %v1940_v26 = vsel %vm577_vm0, %v1932_v23, 0.0 }
 0x71f   : > { %v1897_v63 = vpop.xlane.xlu0 %1896  ;;  %1941 = vadd.xlane.f32.xlu0 %v1940_v26 }
 0x720   : > { %v1917_v34 = vmul.f32 %v1897_v63, %v2828_v24 }
 0x722   : > { %v3349_v37 = vsub.f32 %v3310_v48, %v1917_v34 }
 0x724   : > { %v1933_v39 = vmul.f32 %v3349_v37, %v3349_v37 }
 0x726   : > { %v1943_v49 = vsel %vm577_vm0, %v1933_v39, 0.0 }
 0x727   : > { %1944 = vadd.xlane.f32.xlu2 %v1943_v49  ;;  %1911 = vadd.xlane.f32.xlu0 %v1910_v18  ;;  %v3414_v49 = vld [vmem:[%s3536_s8] ss:$0 sm:$0xff] }
 0x72f   : > { %1914 = vadd.xlane.f32.xlu2 %v1913_v22 }
 0x73e   : > { %v1900_v31 = vpop.xlane.xlu1 %1899 }
 0x73f   : > { %v1918_v55 = vmul.f32 %v1900_v31, %v2828_v24 }
 0x741   : > { %v3363_v9 = vsub.f32 %v3316_v54, %v1918_v55  ;;  %v3420_v55 = vld [vmem:[%s3537_s9] ss:$0 sm:$0xff] }
 0x743   : > { %v1934_v57 = vmul.f32 %v3363_v9, %v3363_v9 }
 0x745   : > { %v1946_v14 = vsel %vm577_vm0, %v1934_v57, 0.0 }
 0x746   : > { %1947 = vadd.xlane.f32.xlu1 %v1946_v14  ;;  %v1903_v53 = vpop.xlane.xlu0 %1902 }
 0x747   : > { %v1919_v50 = vmul.f32 %v1903_v53, %v2828_v24 }
 0x749   : > { %v3370_v51 = vsub.f32 %v3322_v8, %v1919_v50 }
 0x74b   : > { %v1935_v41 = vmul.f32 %v3370_v51, %v3370_v51 }
 0x74d   : > { %v1949_v61 = vsel %vm577_vm0, %v1935_v41, 0.0 }
 0x74e   : > { %v1906_v62 = vpop.xlane.xlu0 %1905  ;;  %1950 = vadd.xlane.f32.xlu0 %v1949_v61 }
 0x74f   : > { %v1920_v59 = vmul.f32 %v1906_v62, %v2828_v24 }
 0x751   : > { %v3377_v5 = vsub.f32 %v3327_v0, %v1920_v59 }
 0x753   : > { %v1936_v1 = vmul.f32 %v3377_v5, %v3377_v5 }
 0x755   : > { %v1952_v12 = vsel %vm577_vm0, %v1936_v1, 0.0 }
 0x756   : > { %v1909_v29 = vpop.xlane.xlu0 %1908  ;;  %1953 = vadd.xlane.f32.xlu2 %v1952_v12 }
 0x757   : > { %v1921_v60 = vmul.f32 %v1909_v29, %v2828_v24 }
 0x759   : > { %v3384_v6 = vsub.f32 %v3332_v33, %v1921_v60 }
 0x75b   : > { %v1937_v7 = vmul.f32 %v3384_v6, %v3384_v6 }
 0x75d   : > { %v1955_v10 = vsel %vm577_vm0, %v1937_v7, 0.0 }
 0x75e   : > { %1956 = vadd.xlane.f32.xlu1 %v1955_v10 }
 0x792   : > { %v1942_v4 = vpop.xlane.xlu0 %1941 }
 0x793   : > { %v1964_v2 = vmul.f32 %v1942_v4, %v2828_v24 }
 0x795   : > { %v1972_v13 = vadd.f32 1e-05, %v1964_v2 }
 0x797   : > { %2679 = vrsqrt.f32 %v1972_v13  ;;  %vm1986_vm15 = vweird.f32 %v1972_v13 }
 0x79a   : > { %v1912_v16 = vpop.xlane.xlu0 %1911  ;;  %v1945_v17 = vpop.xlane.xlu2 %1944 }
 0x79b   : > { %v1922_v44 = vmul.f32 %v1912_v16, %v2828_v24  ;;  %v1965_v19 = vmul.f32 %v1945_v17, %v2828_v24 }
 0x79d   : > { %v2680_v40 = vpop.eup %2679  ;;  %v3399_v3 = vsub.f32 %v3346_v28, %v1922_v44  ;;  %v1973_v35 = vadd.f32 1e-05, %v1965_v19 }
 0x79e   : > { %v1981_v56 = vmul.f32 %v2680_v40, %v1972_v13  ;;  %vm1987_vm14 = vweird.f32 %v2680_v40 }
 0x79f   : > { %2681 = vrsqrt.f32 %v1973_v35  ;;  %v1938_v38 = vmul.f32 %v3399_v3, %v3399_v3  ;;  %vm1988_vm1 = vmor %vm1986_vm15, %vm1987_vm14  ;;  %vm1996_vm3 = vweird.f32 %v1973_v35 }
 0x7a0   : > { %v1982_v42 = vmul.f32 %v2680_v40, %v1981_v56 }
 0x7a1   : > { %v1958_v20 = vsel %vm577_vm0, %v1938_v38, 0.0 }
 0x7a2   : > { %v1983_v21 = vmul.f32 0.5, %v1982_v42  ;;  %1959 = vadd.xlane.f32.xlu0 %v1958_v20  ;;  %v1915_v43 = vpop.xlane.xlu2 %1914 }
 0x7a3   : > { %v1923_v45 = vmul.f32 %v1915_v43, %v2828_v24 }
 0x7a4   : > { %v1984_v23 = vsub.f32 1.5, %v1983_v21 }
 0x7a5   : > { %v2682_v25 = vpop.eup %2681  ;;  %v3406_v26 = vsub.f32 %v3357_v52, %v1923_v45 }
 0x7a6   : > { %v1985_v58 = vmul.f32 %v2680_v40, %v1984_v23  ;;  %v1991_v63 = vmul.f32 %v2682_v25, %v1973_v35  ;;  %vm1997_vm2 = vweird.f32 %v2682_v25 }
 0x7a7   : > { %v1939_v34 = vmul.f32 %v3406_v26, %v3406_v26  ;;  %vm1998_vm4 = vmor %vm1996_vm3, %vm1997_vm2 }
 0x7a8   : > { %v1992_v27 = vmul.f32 %v2682_v25, %v1991_v63  ;;  %v1989_v36 = vsel %vm1988_vm1, %v2680_v40, %v1985_v58 }
 0x7a9   : > { %v1961_v30 = vsel %vm577_vm0, %v1939_v34, 0.0  ;;  %v2060_v18 = vmul.f32 %v1989_v36, %v3339_v46 }
 0x7aa   : > { %v1993_v39 = vmul.f32 0.5, %v1992_v27  ;;  %1962 = vadd.xlane.f32.xlu2 %v1961_v30 }
 0x7ab   : > { %v2071_v57 = vmul.f32 %v3414_v49, %v2060_v18 }
 0x7ac   : > { %v1994_v47 = vsub.f32 1.5, %v1993_v39 }
 0x7ad   : > { %v2082_v50 = vadd.f32 %v3420_v55, %v2071_v57 }
 0x7ae   : > { %v1995_v22 = vmul.f32 %v2682_v25, %v1994_v47 }
 0x7b0   : > { %v1999_v31 = vsel %vm1998_vm4, %v2682_v25, %v1995_v22 }
 0x7b1   : > { %v2061_v14 = vmul.f32 %v1999_v31, %v3349_v37 }
 0x7b3   : > { %v2072_v53 = vmul.f32 %v3414_v49, %v2061_v14 }
 0x7b5   : > { %v2083_v41 = vadd.f32 %v3420_v55, %v2072_v53 }
 0x7b7   : > { %v2090_v46 = vpack.c.bf16 %v2083_v41, %v2082_v50 }
 0x7b9   : > { %2486 = vmatmul.msk.bf16.vlgmr.msrb.gmra.mxu2 %vm577_vm0, %v2090_v46  ;;  %v1948_v61 = vpop.xlane.xlu1 %1947 }
 0x7ba   : > { %v1966_v62 = vmul.f32 %v1948_v61, %v2828_v24 }
 0x7bc   : > { %v1974_v59 = vadd.f32 1e-05, %v1966_v62 }
 0x7be   : > { %2683 = vrsqrt.f32 %v1974_v59  ;;  %vm2006_vm6 = vweird.f32 %v1974_v59 }
 0x7c1   : > { %v1951_v1 = vpop.xlane.xlu0 %1950 }
 0x7c2   : > { %v1967_v12 = vmul.f32 %v1951_v1, %v2828_v24 }
 0x7c4   : > { %v2684_v29 = vpop.eup %2683  ;;  %v1975_v60 = vadd.f32 1e-05, %v1967_v12 }
 0x7c5   : > { %v2001_v37 = vmul.f32 %v2684_v29, %v1974_v59  ;;  %vm2007_vm5 = vweird.f32 %v2684_v29 }
 0x7c6   : > { %2685 = vrsqrt.f32 %v1975_v60  ;;  %vm2008_vm7 = vmor %vm2006_vm6, %vm2007_vm5  ;;  %vm2016_vm9 = vweird.f32 %v1975_v60 }
 0x7c7   : > { %v2002_v7 = vmul.f32 %v2684_v29, %v2001_v37 }
 0x7c9   : > { %v2003_v10 = vmul.f32 0.5, %v2002_v7  ;;  %v1954_v4 = vpop.xlane.xlu2 %1953 }
 0x7ca   : > { %v1968_v11 = vmul.f32 %v1954_v4, %v2828_v24 }
 0x7cb   : > { %v2004_v2 = vsub.f32 1.5, %v2003_v10 }
 0x7cc   : > { %v2686_v13 = vpop.eup %2685  ;;  %v1976_v15 = vadd.f32 1e-05, %v1968_v11  ;;  %v2537_v11 = vld [vmem:[%s3540_s12 + $0x38] sm:$0xff] }
 0x7cd   : > { %v2005_v16 = vmul.f32 %v2684_v29, %v2004_v2  ;;  %v2011_v17 = vmul.f32 %v2686_v13, %v1975_v60  ;;  %vm2017_vm8 = vweird.f32 %v2686_v13  ;;  %2274 = vmatpush.bf16.msrb.mxu3 %v2537_v11 }
 0x7ce   : > { %2687 = vrsqrt.f32 %v1976_v15  ;;  %vm2018_vm10 = vmor %vm2016_vm9, %vm2017_vm8  ;;  %vm2026_vm12 = vweird.f32 %v1976_v15 }
 0x7cf   : > { %v2012_v44 = vmul.f32 %v2686_v13, %v2011_v17  ;;  %v2009_v19 = vsel %vm2008_vm7, %v2684_v29, %v2005_v16 }
 0x7d0   : > { %v2062_v20 = vmul.f32 %v2009_v19, %v3363_v9  ;;  %v2535_v19 = vld [vmem:[%s3540_s12 + $0x28] sm:$0xff] }
 0x7d1   : > { %v2013_v40 = vmul.f32 0.5, %v2012_v44  ;;  %v1957_v35 = vpop.xlane.xlu1 %1956 }
 0x7d2   : > { %v1969_v56 = vmul.f32 %v1957_v35, %v2828_v24  ;;  %v2073_v63 = vmul.f32 %v3414_v49, %v2062_v20 }
 0x7d3   : > { %v2014_v38 = vsub.f32 1.5, %v2013_v40 }
 0x7d4   : > { %v2688_v42 = vpop.eup %2687  ;;  %v1977_v21 = vadd.f32 1e-05, %v1969_v56  ;;  %v2084_v39 = vadd.f32 %v3420_v55, %v2073_v63 }
 0x7d5   : > { %v2015_v43 = vmul.f32 %v2686_v13, %v2014_v38  ;;  %v2021_v45 = vmul.f32 %v2688_v42, %v1976_v15  ;;  %vm2027_vm11 = vweird.f32 %v2688_v42  ;;  %v2536_v15 = vld [vmem:[%s3540_s12 + $0x30] sm:$0xff]  ;;  %v2534_v38 = vld [vmem:[%s3540_s12 + $0x20] sm:$0xff] }
 0x7d6   : > { %2689 = vrsqrt.f32 %v1977_v21  ;;  %vm2028_vm13 = vmor %vm2026_vm12, %vm2027_vm11  ;;  %vm2036_vm15 = vweird.f32 %v1977_v21  ;;  %2275 = vmatpush.bf16.msrb.mxu3 %v2536_v15 }
 0x7d7   : > { %v2019_v23 = vsel %vm2018_vm10, %v2686_v13, %v2015_v43  ;;  %v2022_v25 = vmul.f32 %v2688_v42, %v2021_v45  ;;  %v2533_v43 = vld [vmem:[%s3540_s12 + $0x18] sm:$0xff] }
 0x7d8   : > { %v2063_v58 = vmul.f32 %v2019_v23, %v3370_v51 }
 0x7d9   : > { %v2023_v34 = vmul.f32 0.5, %v2022_v25 }
 0x7da   : > { %v2074_v27 = vmul.f32 %v3414_v49, %v2063_v58  ;;  %2276 = vmatpush.bf16.msrb.mxu3 %v2535_v19  ;;  %v2532_v58 = vld [vmem:[%s3540_s12 + $0x10] sm:$0xff] }
 0x7db   : > { %v2024_v30 = vsub.f32 1.5, %v2023_v34 }
 0x7dc   : > { %v2690_v36 = vpop.eup %2689  ;;  %v2085_v9 = vadd.f32 %v3420_v55, %v2074_v27  ;;  %v3475_v27 = vld [vmem:[%s3539_s11] ss:$0 sm:$0xff] }
 0x7dd   : > { %v2025_v47 = vmul.f32 %v2688_v42, %v2024_v30  ;;  %v2031_v18 = vmul.f32 %v2690_v36, %v1977_v21  ;;  %vm2037_vm14 = vweird.f32 %v2690_v36 }
 0x7de   : > { %v2091_v22 = vpack.c.bf16 %v2085_v9, %v2084_v39  ;;  %vm2038_vm1 = vmor %vm2036_vm15, %vm2037_vm14  ;;  %2277 = vmatpush.bf16.msrb.mxu3 %v2534_v38 }
 0x7df   : > { %v2032_v31 = vmul.f32 %v2690_v36, %v2031_v18  ;;  %v2029_v51 = vsel %vm2028_vm13, %v2688_v42, %v2025_v47 }
 0x7e0   : > { %2487 = vmatmul.msk.bf16.gmra.mxu2 %vm577_vm0, %v2091_v22  ;;  %v2064_v53 = vmul.f32 %v2029_v51, %v3377_v5 }
 0x7e1   : > { %v2033_v57 = vmul.f32 0.5, %v2032_v31 }
 0x7e2   : > { %v2075_v61 = vmul.f32 %v3414_v49, %v2064_v53  ;;  %2278 = vmatpush.bf16.msrb.mxu3 %v2533_v43 }
 0x7e3   : > { %v2034_v14 = vsub.f32 1.5, %v2033_v57 }
 0x7e4   : > { %v2086_v59 = vadd.f32 %v3420_v55, %v2075_v61 }
 0x7e5   : > { %v2035_v50 = vmul.f32 %v2690_v36, %v2034_v14 }
 0x7e6   : > { %2279 = vmatpush.bf16.msrb.mxu3 %v2532_v58 }
 0x7e7   : > { %v2039_v41 = vsel %vm2038_vm1, %v2690_v36, %v2035_v50 }
 0x7e8   : > { %v2065_v46 = vmul.f32 %v2039_v41, %v3384_v6 }
 0x7ea   : > { %v2076_v62 = vmul.f32 %v3414_v49, %v2065_v46 }
 0x7ec   : > { %v2087_v1 = vadd.f32 %v3420_v55, %v2076_v62 }
 0x7ee   : > { %v2092_v12 = vpack.c.bf16 %v2087_v1, %v2086_v59 }
 0x7f0   : > { %2488 = vmatmul.msk.bf16.gmra.mxu2 %vm577_vm0, %v2092_v12 }
 0x815   : > { %v1960_v29 = vpop.xlane.xlu0 %1959 }
 0x816   : > { %v1970_v5 = vmul.f32 %v1960_v29, %v2828_v24 }
 0x818   : > { %v1978_v60 = vadd.f32 1e-05, %v1970_v5 }
 0x81a   : > { %2691 = vrsqrt.f32 %v1978_v60  ;;  %vm2046_vm3 = vweird.f32 %v1978_v60 }
 0x81d   : > { %v1963_v37 = vpop.xlane.xlu2 %1962 }
 0x81e   : > { %v1971_v7 = vmul.f32 %v1963_v37, %v2828_v24 }
 0x820   : > { %v2692_v6 = vpop.eup %2691  ;;  %v1979_v10 = vadd.f32 1e-05, %v1971_v7 }
 0x821   : > { %v2041_v4 = vmul.f32 %v2692_v6, %v1978_v60  ;;  %vm2047_vm2 = vweird.f32 %v2692_v6 }
 0x822   : > { %2693 = vrsqrt.f32 %v1979_v10  ;;  %vm2048_vm4 = vmor %vm2046_vm3, %vm2047_vm2  ;;  %vm2056_vm6 = vweird.f32 %v1979_v10 }
 0x823   : > { %v2042_v2 = vmul.f32 %v2692_v6, %v2041_v4 }
 0x825   : > { %v2043_v13 = vmul.f32 0.5, %v2042_v2 }
 0x827   : > { %v2044_v16 = vsub.f32 1.5, %v2043_v13 }
 0x828   : > { %v2694_v17 = vpop.eup %2693 }
 0x829   : > { %v2045_v44 = vmul.f32 %v2692_v6, %v2044_v16  ;;  %v2051_v24 = vmul.f32 %v2694_v17, %v1979_v10  ;;  %vm2057_vm5 = vweird.f32 %v2694_v17 }
 0x82a   : > { %vm2058_vm7 = vmor %vm2056_vm6, %vm2057_vm5 }
 0x82b   : > { %v2052_v40 = vmul.f32 %v2694_v17, %v2051_v24  ;;  %v2049_v35 = vsel %vm2048_vm4, %v2692_v6, %v2045_v44 }
 0x82c   : > { %v2066_v20 = vmul.f32 %v2049_v35, %v3399_v3 }
 0x82d   : > { %v2053_v56 = vmul.f32 0.5, %v2052_v40 }
 0x82e   : > { %v2077_v25 = vmul.f32 %v3414_v49, %v2066_v20 }
 0x82f   : > { %v2054_v42 = vsub.f32 1.5, %v2053_v56 }
 0x830   : > { %v2088_v3 = vadd.f32 %v3420_v55, %v2077_v25 }
 0x831   : > { %v2055_v21 = vmul.f32 %v2694_v17, %v2054_v42 }
 0x833   : > { %v2059_v45 = vsel %vm2058_vm7, %v2694_v17, %v2055_v21 }
 0x834   : > { %v2067_v23 = vmul.f32 %v2059_v45, %v3406_v26  ;;  %v2531_v26 = vld [vmem:[%s3540_s12 + $0x8] sm:$0xff] }
 0x835   : > { %2280 = vmatpush.bf16.msrb.mxu3 %v2531_v26 }
 0x836   : > { %v2078_v63 = vmul.f32 %v3414_v49, %v2067_v23  ;;  %v2530_v49 = vld [vmem:[%s3540_s12] sm:$0xff] }
 0x838   : > { %v2089_v34 = vadd.f32 %v3420_v55, %v2078_v63 }
 0x839   : > { %2281 = vmatpush.bf16.msrb.mxu3 %v2530_v49 }
 0x83a   : > { %v2093_v30 = vpack.c.bf16 %v2089_v34, %v2088_v3 }
 0x83c   : > { %v2130_v36 = vpop.f32.mrf.mxu2  ;;  %2489 = vmatmul.msk.bf16.gmra.mxu2 %vm577_vm0, %v2093_v30  ;;  %vm2330_vm0 = vcmask 257024  }
 0x83d   : > { %v2131_v55 = vadd.f32 %v3475_v27, %v2130_v36 }
 0x83f   : > { %v2150_v39 = vmul.f32 %v2131_v55, %v2131_v55 }
 0x841   : > { %v2158_v9 = vmul.f32 %v2150_v39, %v2131_v55 }
 0x843   : > { %v2166_v47 = vmul.f32 0.044715, %v2158_v9 }
 0x844   : > { %v2132_v18 = vpop.f32.mrf.mxu2 }
 0x845   : > { %v2174_v22 = vadd.f32 %v2166_v47, %v2131_v55  ;;  %v2133_v31 = vadd.f32 %v3475_v27, %v2132_v18 }
 0x847   : > { %v2182_v51 = vmul.f32 0.7978846, %v2174_v22  ;;  %v2151_v57 = vmul.f32 %v2133_v31, %v2133_v31 }
 0x849   : > { %v2159_v14 = vmul.f32 %v2151_v57, %v2133_v31  ;;  %2695 = vtanh.f32 %v2182_v51 }
 0x84b   : > { %v2167_v53 = vmul.f32 0.044715, %v2159_v14 }
 0x84d   : > { %v2175_v50 = vadd.f32 %v2167_v53, %v2133_v31 }
 0x84f   : > { %v2183_v41 = vmul.f32 0.7978846, %v2175_v50  ;;  %v2696_v46 = vpop.eup %2695 }
 0x850   : > { %v2198_v61 = vadd.f32 1.0, %v2696_v46 }
 0x851   : > { %2697 = vtanh.f32 %v2183_v41 }
 0x852   : > { %v2206_v59 = vmul.f32 0.5, %v2198_v61 }
 0x854   : > { %v2214_v29 = vmul.f32 %v2206_v59, %v2131_v55 }
 0x857   : > { %v2698_v62 = vpop.eup %2697 }
 0x858   : > { %v2199_v1 = vadd.f32 1.0, %v2698_v62 }
 0x85a   : > { %v2207_v12 = vmul.f32 0.5, %v2199_v1 }
 0x85c   : > { %v2215_v5 = vmul.f32 %v2207_v12, %v2133_v31 }
 0x85e   : > { %v2222_v60 = vpack.c.bf16 %v2215_v5, %v2214_v29 }
 0x860   : > { %2282 = vmatmul.bf16.vlgmr.msrb.gmra.mxu3 %v2222_v60 }
 0x863   : > { %v2135_v37 = vpop.f32.mrf.mxu2 }
 0x864   : > { %v2136_v7 = vadd.f32 %v3475_v27, %v2135_v37 }
 0x866   : > { %v2152_v6 = vmul.f32 %v2136_v7, %v2136_v7 }
 0x868   : > { %v2160_v10 = vmul.f32 %v2152_v6, %v2136_v7 }
 0x86a   : > { %v2168_v4 = vmul.f32 0.044715, %v2160_v10 }
 0x86b   : > { %v2137_v11 = vpop.f32.mrf.mxu2 }
 0x86c   : > { %v2176_v2 = vadd.f32 %v2168_v4, %v2136_v7  ;;  %v2138_v13 = vadd.f32 %v3475_v27, %v2137_v11 }
 0x86e   : > { %v2153_v15 = vmul.f32 %v2138_v13, %v2138_v13  ;;  %v2184_v16 = vmul.f32 0.7978846, %v2176_v2 }
 0x870   : > { %v2161_v17 = vmul.f32 %v2153_v15, %v2138_v13  ;;  %2699 = vtanh.f32 %v2184_v16 }
 0x872   : > { %v2169_v44 = vmul.f32 0.044715, %v2161_v17 }
 0x873   : > { %v2140_v24 = vpop.f32.mrf.mxu2 }
 0x874   : > { %v2177_v19 = vadd.f32 %v2169_v44, %v2138_v13  ;;  %v2141_v40 = vadd.f32 %v3475_v27, %v2140_v24 }
 0x876   : > { %v2154_v35 = vmul.f32 %v2141_v40, %v2141_v40  ;;  %v2185_v56 = vmul.f32 0.7978846, %v2177_v19  ;;  %v2700_v38 = vpop.eup %2699 }
 0x877   : > { %v2200_v43 = vadd.f32 1.0, %v2700_v38 }
 0x878   : > { %v2162_v42 = vmul.f32 %v2154_v35, %v2141_v40  ;;  %2701 = vtanh.f32 %v2185_v56 }
 0x879   : > { %v2208_v34 = vmul.f32 0.5, %v2200_v43 }
 0x87a   : > { %v2170_v20 = vmul.f32 0.044715, %v2162_v42 }
 0x87b   : > { %v2142_v21 = vpop.f32.mrf.mxu2  ;;  %v2216_v49 = vmul.f32 %v2208_v34, %v2136_v7 }
 0x87c   : > { %v2178_v45 = vadd.f32 %v2170_v20, %v2141_v40  ;;  %v2143_v23 = vadd.f32 %v3475_v27, %v2142_v21 }
 0x87e   : > { %v2702_v25 = vpop.eup %2701  ;;  %v2155_v58 = vmul.f32 %v2143_v23, %v2143_v23  ;;  %v2186_v63 = vmul.f32 0.7978846, %v2178_v45 }
 0x87f   : > { %v2201_v3 = vadd.f32 1.0, %v2702_v25 }
 0x880   : > { %v2163_v26 = vmul.f32 %v2155_v58, %v2143_v23  ;;  %2703 = vtanh.f32 %v2186_v63 }
 0x881   : > { %v2209_v30 = vmul.f32 0.5, %v2201_v3 }
 0x882   : > { %v2171_v36 = vmul.f32 0.044715, %v2163_v26 }
 0x883   : > { %v2217_v55 = vmul.f32 %v2209_v30, %v2138_v13 }
 0x884   : > { %v2179_v39 = vadd.f32 %v2171_v36, %v2143_v23 }
 0x885   : > { %v2223_v9 = vpack.c.bf16 %v2217_v55, %v2216_v49 }
 0x886   : > { %v2187_v47 = vmul.f32 0.7978846, %v2179_v39  ;;  %v2704_v18 = vpop.eup %2703 }
 0x887   : > { %2287 = vmatmul.bf16.gmra.mxu3 %v2223_v9  ;;  %v2202_v22 = vadd.f32 1.0, %v2704_v18 }
 0x888   : > { %2705 = vtanh.f32 %v2187_v47 }
 0x889   : > { %v2210_v57 = vmul.f32 0.5, %v2202_v22 }
 0x88b   : > { %v2218_v53 = vmul.f32 %v2210_v57, %v2141_v40 }
 0x88e   : > { %v2706_v31 = vpop.eup %2705 }
 0x88f   : > { %v2203_v51 = vadd.f32 1.0, %v2706_v31 }
 0x891   : > { %v2211_v14 = vmul.f32 0.5, %v2203_v51 }
 0x893   : > { %v2219_v50 = vmul.f32 %v2211_v14, %v2143_v23 }
 0x895   : > { %v2224_v41 = vpack.c.bf16 %v2219_v50, %v2218_v53 }
 0x897   : > { %2292 = vmatmul.bf16.gmra.mxu3 %v2224_v41 }
 0x8bf   : > { %v2145_v46 = vpop.f32.mrf.mxu2 }
 0x8c0   : > { %v2146_v61 = vadd.f32 %v3475_v27, %v2145_v46 }
 0x8c2   : > { %v2156_v62 = vmul.f32 %v2146_v61, %v2146_v61 }
 0x8c4   : > { %v2164_v59 = vmul.f32 %v2156_v62, %v2146_v61 }
 0x8c6   : > { %v2172_v1 = vmul.f32 0.044715, %v2164_v59 }
 0x8c7   : > { %v2147_v12 = vpop.f32.mrf.mxu2 }
 0x8c8   : > { %v2180_v29 = vadd.f32 %v2172_v1, %v2146_v61  ;;  %v2148_v5 = vadd.f32 %v3475_v27, %v2147_v12  ;;  %v2596_v27 = vld [vmem:[%s3541_s13] ss:$0 sm:$0xff] }
 0x8ca   : > { %v2188_v60 = vmul.f32 0.7978846, %v2180_v29  ;;  %v2157_v37 = vmul.f32 %v2148_v5, %v2148_v5 }
 0x8cc   : > { %v2165_v7 = vmul.f32 %v2157_v37, %v2148_v5  ;;  %2707 = vtanh.f32 %v2188_v60 }
 0x8ce   : > { %v2173_v6 = vmul.f32 0.044715, %v2165_v7 }
 0x8d0   : > { %v2181_v10 = vadd.f32 %v2173_v6, %v2148_v5 }
 0x8d2   : > { %v2189_v4 = vmul.f32 0.7978846, %v2181_v10  ;;  %v2708_v11 = vpop.eup %2707 }
 0x8d3   : > { %v2204_v2 = vadd.f32 1.0, %v2708_v11 }
 0x8d4   : > { %2709 = vtanh.f32 %v2189_v4 }
 0x8d5   : > { %v2212_v16 = vmul.f32 0.5, %v2204_v2 }
 0x8d7   : > { %v2220_v44 = vmul.f32 %v2212_v16, %v2146_v61 }
 0x8da   : > { %v2710_v13 = vpop.eup %2709 }
 0x8db   : > { %v2205_v15 = vadd.f32 1.0, %v2710_v13 }
 0x8dd   : > { %v2213_v17 = vmul.f32 0.5, %v2205_v15 }
 0x8df   : > { %v2221_v24 = vmul.f32 %v2213_v17, %v2148_v5 }
 0x8e1   : > { %v2225_v19 = vpack.c.bf16 %v2221_v24, %v2220_v44 }
 0x8e3   : > { %v2283_v40 = vpop.f32.mrf.mxu3  ;;  %2297 = vmatmul.bf16.gmra.mxu3 %v2225_v19 }
 0x8e4   : > { %v2303_v35 = vadd.f32 %v2283_v40, %v3305_v32 }
 0x8e6   : > { %v2314_v56 = vadd.f32 %v2596_v27, %v2303_v35 }
 0x8e8   : > { %v2322_v38 = vpack.c.bf16 %v2314_v56, %v2314_v56 }
 0x8ea   : > { %2331 = vst.msk [vmem:[%s3500_s21] sm:$0xf] %vm2330_vm0, %v2322_v38 }
 0x8eb   : > { %v2285_v42 = vpop.f32.mrf.mxu3 }
 0x8ec   : > { %v2304_v20 = vadd.f32 %v2285_v42, %v3310_v48 }
 0x8ee   : > { %v2315_v21 = vadd.f32 %v2596_v27, %v2304_v20 }
 0x8f0   : > { %v2323_v43 = vpack.c.bf16 %v2315_v21, %v2315_v21 }
 0x8f2   : > { %2332 = vst.msk [vmem:[%s3500_s21 + $0x4] sm:$0xf] %vm2330_vm0, %v2323_v43 }
 0x90a   : > { %v2288_v32 = vpop.f32.mrf.mxu3 }
 0x90b   : > { %v2305_v45 = vadd.f32 %v2288_v32, %v3316_v54 }
 0x90d   : > { %v2316_v23 = vadd.f32 %v2596_v27, %v2305_v45 }
 0x90f   : > { %v2324_v25 = vpack.c.bf16 %v2316_v23, %v2316_v23 }
 0x911   : > { %2333 = vst.msk [vmem:[%s3500_s21 + $0x8] sm:$0xf] %vm2330_vm0, %v2324_v25 }
 0x912   : > { %v2290_v58 = vpop.f32.mrf.mxu3 }
 0x913   : > { %v2306_v63 = vadd.f32 %v2290_v58, %v3322_v8 }
 0x915   : > { %v2317_v3 = vadd.f32 %v2596_v27, %v2306_v63 }
 0x917   : > { %v2325_v34 = vpack.c.bf16 %v2317_v3, %v2317_v3 }
 0x919   : > { %2334 = vst.msk [vmem:[%s3500_s21 + $0xc] sm:$0xf] %vm2330_vm0, %v2325_v34 }
 0x91a   : > { %v2293_v48 = vpop.f32.mrf.mxu3 }
 0x91b   : > { %v2307_v26 = vadd.f32 %v2293_v48, %v3327_v0 }
 0x91d   : > { %v2318_v30 = vadd.f32 %v2596_v27, %v2307_v26 }
 0x91f   : > { %v2326_v36 = vpack.c.bf16 %v2318_v30, %v2318_v30 }
 0x921   : > { %2335 = vst.msk [vmem:[%s3500_s21 + $0x10] sm:$0xf] %vm2330_vm0, %v2326_v36 }
 0x922   : > { %v2295_v54 = vpop.f32.mrf.mxu3 }
 0x923   : > { %v2308_v49 = vadd.f32 %v2295_v54, %v3332_v33 }
 0x925   : > { %v2319_v55 = vadd.f32 %v2596_v27, %v2308_v49 }
 0x927   : > { %v2327_v39 = vpack.c.bf16 %v2319_v55, %v2319_v55 }
 0x929   : > { %2336 = vst.msk [vmem:[%s3500_s21 + $0x14] sm:$0xf] %vm2330_vm0, %v2327_v39 }
 0x966   : > { %v2298_v8 = vpop.f32.mrf.mxu3 }
 0x967   : > { %v2309_v9 = vadd.f32 %v2298_v8, %v3346_v28 }
 0x969   : > { %v2320_v47 = vadd.f32 %v2596_v27, %v2309_v9 }
 0x96b   : > { %v2328_v18 = vpack.c.bf16 %v2320_v47, %v2320_v47 }
 0x96d   : > { %2337 = vst.msk [vmem:[%s3500_s21 + $0x18] sm:$0xf] %vm2330_vm0, %v2328_v18 }
 0x96e   : > { %v2300_v0 = vpop.f32.mrf.mxu3 }
 0x96f   : > { %v2310_v22 = vadd.f32 %v2300_v0, %v3357_v52 }
 0x971   : > { %v2321_v31 = vadd.f32 %v2596_v27, %v2310_v22 }
 0x973   : > { %v2329_v51 = vpack.c.bf16 %v2321_v31, %v2321_v31 }
 0x975   : > { %2338 = vst.msk [vmem:[%s3500_s21 + $0x1c] sm:$0xf] %vm2330_vm0, %v2329_v51 }
 0x976 PF: > { %s24_s29 = sadd.s32 1, %s2717_s29  }
 0x977   : > { %p21_p4 = scmp.ge.s32.totalorder %s24_s29, 4  }
 0x979   :  { %23 = sbr.rel (!%p21_p4) target bundleno = 1 (0x1), region = 109 }

</bundles_post_ra>
